<compile_context>
chip_gen: v5e
topology: v5e:2x2
jax: 0.10.0
libtpu: 0.0.40
codegen_flags: <defaults>
</compile_context>

<pallas_src>
import functools

import jax
import jax.numpy as jnp
from jax import lax
from jax.experimental import pallas as pl
from jax.experimental.pallas import tpu as pltpu

_INV_SQRT2 = 0.7071067811865476   # 1/sqrt(2) for the exact (erf) GELU
_LN_EPS = 1e-5                    # nn.LayerNorm default eps


# ---------------------------------------------------------------------------
# kernels
# ---------------------------------------------------------------------------
def _ln_stats_normalize(x, g, b, d_true, eps):
    # x: (tm, Dp) f32, zero-padded beyond the true d_true columns, so the sums
    # only see real data; padded gamma/beta are zero -> padded output columns
    # are exactly zero.
    s = jnp.sum(x, axis=-1, keepdims=True)
    ss = jnp.sum(x * x, axis=-1, keepdims=True)
    mean = s / d_true
    var = ss / d_true - mean * mean
    return (x - mean) * lax.rsqrt(var + eps) * g + b


def _ln_kernel(x_ref, g_ref, b_ref, o_ref, *, d_true, eps):
    x = x_ref[...].astype(jnp.float32)
    y = _ln_stats_normalize(x, g_ref[...], b_ref[...], d_true, eps)
    o_ref[...] = y.astype(o_ref.dtype)


def _linear_kernel(x_ref, w_ref, b_ref, o_ref):
    out = jnp.dot(x_ref[...], w_ref[...],
                  preferred_element_type=jnp.float32) + b_ref[...]
    o_ref[...] = out.astype(o_ref.dtype)


def _ln_mlp_kernel(x_ref, g_ref, be_ref, w1_ref, b1_ref, w2_ref, b2_ref, o_ref,
                   *, d_true, eps):
    x = x_ref[...].astype(jnp.float32)
    y = _ln_stats_normalize(x, g_ref[...], be_ref[...], d_true, eps)
    h = jnp.dot(y.astype(w1_ref.dtype), w1_ref[...],
                preferred_element_type=jnp.float32) + b1_ref[...]
    h = 0.5 * h * (1.0 + lax.erf(h * _INV_SQRT2))       # exact GELU, f32
    out = jnp.dot(h.astype(w2_ref.dtype), w2_ref[...],
                  preferred_element_type=jnp.float32) + b2_ref[...]
    o_ref[...] = out.astype(o_ref.dtype)


# ---------------------------------------------------------------------------
# wrapper helpers
# ---------------------------------------------------------------------------
def _round_up(x, m):
    return (x + m - 1) // m * m


def _row_tile(m, tm):
    # tm multiple of 8 sublanes (use >=16/32 multiples for bf16/int8 packing),
    # clamped for small row counts; rows are padded up to a tile multiple.
    tm_eff = _round_up(min(tm, _round_up(m, 8)), 8)
    mp = _round_up(m, tm_eff)
    return tm_eff, mp


def _pad2(x, rows, cols):
    r, c = x.shape
    if r == rows and c == cols:
        return x
    return jnp.pad(x, ((0, rows - r), (0, cols - c)))


def _vmem_limit_bytes(block_bytes):
    # Double-buffered resident blocks + headroom, clamped to the chip's VMEM
    # capacity so the request stays satisfiable on v7x (64 MiB/TC) as well as
    # v5e/v6e (128 MiB).
    try:
        cap = int(pltpu.get_tpu_info().vmem_capacity_bytes * 0.9)
    except Exception:
        cap = 56 << 20
    need = 2 * int(block_bytes) + (4 << 20)
    return int(min(max(need, 32 << 20), cap))


def _compiler_params(block_bytes):
    return pltpu.CompilerParams(
        dimension_semantics=("parallel",),   # row axis shards across v7x's 2 TCs
        vmem_limit_bytes=_vmem_limit_bytes(block_bytes))


# ---------------------------------------------------------------------------
# pallas_call wrappers
# ---------------------------------------------------------------------------
def layernorm_pallas(x, gamma, beta, *, eps=_LN_EPS, tm=512):
    orig = x.shape
    d = orig[-1]
    x2 = x.reshape(-1, d)
    m = x2.shape[0]
    dp = _round_up(d, 128)
    tm_eff, mp = _row_tile(m, tm)
    itemsize = x.dtype.itemsize

    xp = _pad2(x2, mp, dp)
    gp = _pad2(gamma.astype(jnp.float32).reshape(1, d), 1, dp)
    bp = _pad2(beta.astype(jnp.float32).reshape(1, d), 1, dp)

    block_bytes = 4 * (2 * tm_eff * dp + 2 * dp)
    cost = pl.CostEstimate(
        flops=int(10 * mp * dp),
        transcendentals=int(mp),
        bytes_accessed=int(itemsize * 2 * mp * dp + 4 * 2 * dp))

    out = pl.pallas_call(
        functools.partial(_ln_kernel, d_true=float(d), eps=float(eps)),
        out_shape=jax.ShapeDtypeStruct((mp, dp), x.dtype),
        grid_spec=pltpu.PrefetchScalarGridSpec(
            num_scalar_prefetch=0,
            grid=(mp // tm_eff,),
            in_specs=[
                pl.BlockSpec((tm_eff, dp), lambda i: (i, 0)),
                pl.BlockSpec((1, dp), lambda i: (0, 0)),
                pl.BlockSpec((1, dp), lambda i: (0, 0)),
            ],
            out_specs=pl.BlockSpec((tm_eff, dp), lambda i: (i, 0))),
        compiler_params=_compiler_params(block_bytes),
        cost_estimate=cost,
    )(xp, gp, bp)
    return out[:m, :d].reshape(orig)


def linear_pallas(x, w, b=None, *, tm=512):
    orig = x.shape
    d_in = orig[-1]
    d_out = w.shape[1]
    x2 = x.reshape(-1, d_in)
    m = x2.shape[0]
    dpi, dpo = _round_up(d_in, 128), _round_up(d_out, 128)
    tm_eff, mp = _row_tile(m, tm)
    itemsize = x.dtype.itemsize

    xp = _pad2(x2, mp, dpi)
    wp = _pad2(w, dpi, dpo)
    if b is None:
        bp = jnp.zeros((1, dpo), jnp.float32)
    else:
        bp = _pad2(b.astype(jnp.float32).reshape(1, d_out), 1, dpo)

    block_bytes = 4 * (tm_eff * dpi + dpi * dpo + dpo + tm_eff * dpo)
    cost = pl.CostEstimate(
        flops=int(2 * mp * dpi * dpo),
        transcendentals=0,
        bytes_accessed=int(itemsize * (mp * dpi + dpi * dpo + mp * dpo) + 4 * dpo))

    out = pl.pallas_call(
        _linear_kernel,
        out_shape=jax.ShapeDtypeStruct((mp, dpo), x.dtype),
        grid_spec=pltpu.PrefetchScalarGridSpec(
            num_scalar_prefetch=0,
            grid=(mp // tm_eff,),
            in_specs=[
                pl.BlockSpec((tm_eff, dpi), lambda i: (i, 0)),   # x row tile
                pl.BlockSpec((dpi, dpo), lambda i: (0, 0)),      # W (resident)
                pl.BlockSpec((1, dpo), lambda i: (0, 0)),        # b
            ],
            out_specs=pl.BlockSpec((tm_eff, dpo), lambda i: (i, 0))),
        compiler_params=_compiler_params(block_bytes),
        cost_estimate=cost,
    )(xp, wp, bp)
    return out[:m, :d_out].reshape(orig[:-1] + (d_out,))


def ln_mlp_pallas(x, gamma, beta, w1, b1, w2, b2, *, eps=_LN_EPS, tm=512):
    """Fused LayerNorm -> fc1 -> GELU -> dropout(0) -> fc2 -> dropout(0)."""
    orig = x.shape
    d_in = orig[-1]
    h = w1.shape[1]
    d_out = w2.shape[1]
    x2 = x.reshape(-1, d_in)
    m = x2.shape[0]
    dpi, hp, dpo = _round_up(d_in, 128), _round_up(h, 128), _round_up(d_out, 128)
    tm_eff, mp = _row_tile(m, tm)
    itemsize = x.dtype.itemsize

    xp = _pad2(x2, mp, dpi)
    gp = _pad2(gamma.astype(jnp.float32).reshape(1, d_in), 1, dpi)
    bep = _pad2(beta.astype(jnp.float32).reshape(1, d_in), 1, dpi)
    w1p = _pad2(w1, dpi, hp)
    b1p = _pad2(b1.astype(jnp.float32).reshape(1, h), 1, hp)
    w2p = _pad2(w2, hp, dpo)
    b2p = _pad2(b2.astype(jnp.float32).reshape(1, d_out), 1, dpo)

    # TODO(synk): at transformer scale on v7x (64 MiB VMEM/TC), tile the hidden
    # dim over an extra 'arbitrary' grid axis with an f32 VMEM accumulator (or
    # single-buffer the weight BlockSpecs) instead of keeping W1+W2 fully
    # resident with default double-buffering.
    block_bytes = 4 * (tm_eff * dpi + 2 * dpi + dpi * hp + hp
                       + hp * dpo + dpo + tm_eff * dpo)
    cost = pl.CostEstimate(
        flops=int(2 * mp * (dpi * hp + hp * dpo) + 12 * mp * dpi),
        transcendentals=int(mp * hp + mp),
        bytes_accessed=int(itemsize * (mp * dpi + mp * dpo)
                           + 4 * (dpi * hp + hp * dpo + 2 * dpi + hp + dpo)))

    out = pl.pallas_call(
        functools.partial(_ln_mlp_kernel, d_true=float(d_in), eps=float(eps)),
        out_shape=jax.ShapeDtypeStruct((mp, dpo), x.dtype),
        grid_spec=pltpu.PrefetchScalarGridSpec(
            num_scalar_prefetch=0,
            grid=(mp // tm_eff,),
            in_specs=[
                pl.BlockSpec((tm_eff, dpi), lambda i: (i, 0)),   # x row tile
                pl.BlockSpec((1, dpi), lambda i: (0, 0)),        # gamma
                pl.BlockSpec((1, dpi), lambda i: (0, 0)),        # beta
                pl.BlockSpec((dpi, hp), lambda i: (0, 0)),       # W1 (resident)
                pl.BlockSpec((1, hp), lambda i: (0, 0)),         # b1
                pl.BlockSpec((hp, dpo), lambda i: (0, 0)),       # W2 (resident)
                pl.BlockSpec((1, dpo), lambda i: (0, 0)),        # b2
            ],
            out_specs=pl.BlockSpec((tm_eff, dpo), lambda i: (i, 0))),
        compiler_params=_compiler_params(block_bytes),
        cost_estimate=cost,
    )(xp, gp, bep, w1p, b1p, w2p, b2p)
    return out[:m, :d_out].reshape(orig[:-1] + (d_out,))


# ---------------------------------------------------------------------------
# Block parameters + forward
# ---------------------------------------------------------------------------
def init_block_params(key, dim, num_heads, qkv_bias=False, dtype=jnp.float32):
    ks = jax.random.split(key, 10)

    def linear(k, fin, fout, bias=True):
        kw, kb = jax.random.split(k)
        lim = 1.0 / (fin ** 0.5)
        w = jax.random.uniform(kw, (fin, fout), dtype, -lim, lim)
        b = jax.random.uniform(kb, (fout,), dtype, -lim, lim) if bias else None
        return w, b

    w_jqkv, b_jqkv = linear(ks[0], dim, 3 * dim, qkv_bias)
    w_rconv, b_rconv = linear(ks[1], dim, num_heads, qkv_bias)
    w_rqk, b_rqk = linear(ks[2], dim, 2 * dim, qkv_bias)
    w_proj, b_proj = linear(ks[3], dim, dim, True)
    mj_w1, mj_b1 = linear(ks[4], dim, dim, True)
    mj_w2, mj_b2 = linear(ks[5], dim, dim, True)
    r1_w1, r1_b1 = linear(ks[6], 4 * dim, 4 * dim, True)
    r1_w2, r1_b2 = linear(ks[7], 4 * dim, dim, True)
    r2_w1, r2_b1 = linear(ks[8], dim, dim, True)
    r2_w2, r2_b2 = linear(ks[9], dim, dim, True)

    def ln(d):
        return jnp.ones((d,), dtype), jnp.zeros((d,), dtype)

    ln_a1_g, ln_a1_b = ln(dim)
    ln_a2_g, ln_a2_b = ln(dim)
    ln_j_g, ln_j_b = ln(dim)
    ln_r1_g, ln_r1_b = ln(4 * dim)
    ln_r2_g, ln_r2_b = ln(dim)

    return {
        "attn": {"w_jqkv": w_jqkv, "b_jqkv": b_jqkv,
                 "w_rconv": w_rconv, "b_rconv": b_rconv,
                 "w_rqk": w_rqk, "b_rqk": b_rqk,
                 "w_proj": w_proj, "b_proj": b_proj},
        "ln_attn1_g": ln_a1_g, "ln_attn1_b": ln_a1_b,
        "ln_attn2_g": ln_a2_g, "ln_attn2_b": ln_a2_b,
        "ln_joint_g": ln_j_g, "ln_joint_b": ln_j_b,
        "ln_rel1_g": ln_r1_g, "ln_rel1_b": ln_r1_b,
        "ln_rel2_g": ln_r2_g, "ln_rel2_b": ln_r2_b,
        "mlp_joint": {"w1": mj_w1, "b1": mj_b1, "w2": mj_w2, "b2": mj_b2},
        "mlp_rel1": {"w1": r1_w1, "b1": r1_b1, "w2": r1_w2, "b2": r1_b2},
        "mlp_rel2": {"w1": r2_w1, "b1": r2_b1, "w2": r2_w2, "b2": r2_b2},
    }


def block_forward(params, joint_feature, relation_feature, mask=None):
    """Pallas-backed forward matching Block.forward (all drop probs = 0)."""
    p = params
    a = p["attn"]
    B, N, C = joint_feature.shape
    num_heads = a["w_rconv"].shape[1]
    head_size = C // num_heads
    scale = head_size ** -0.5

    # ---- attention branch: joint = joint + Attn(LN(joint), LN(relation)) ----
    jf = layernorm_pallas(joint_feature, p["ln_attn1_g"], p["ln_attn1_b"])
    rf = layernorm_pallas(relation_feature, p["ln_attn2_g"], p["ln_attn2_b"])

    jqkv = linear_pallas(jf, a["w_jqkv"], a["b_jqkv"])                 # (B,N,3C)
    jqkv = jqkv.reshape(B, N, 3, num_heads, head_size).transpose(2, 0, 3, 1, 4)
    j_q, j_k, j_v = jqkv[0], jqkv[1], jqkv[2]                          # (B,H,N,hs)

    rqk = linear_pallas(rf, a["w_rqk"], a["b_rqk"])                    # (B,N,N,2C)
    rqk = rqk.reshape(B, N, N, 2, num_heads, head_size).transpose(3, 0, 4, 1, 2, 5)
    r_q, r_k = rqk[0], rqk[1]                                          # (B,H,N,N,hs)

    attn_r_linear = linear_pallas(rf, a["w_rconv"], a["b_rconv"])      # (B,N,N,H)
    attn_r_linear = attn_r_linear.transpose(0, 3, 1, 2)                # (B,H,N,N)

    # TODO(synk): fuse the score/softmax/context ops below into a flash-style
    # Pallas attention kernel; N is tiny here, so they stay in plain JAX.
    attn_j = jnp.einsum("bhqd,bhkd->bhqk", j_q, j_k, precision="highest")
    attn_r_qurt = jnp.sum(r_q * r_k, axis=-1)                          # (B,H,N,N)
    attn = (attn_j + attn_r_linear + attn_r_qurt) * scale
    if mask is not None:
        attn = jnp.where(mask == 0, -1e9, attn)
    attn = jax.nn.softmax(attn, axis=-1)
    ctx = jnp.einsum("bhqk,bhkd->bhqd", attn, j_v, precision="highest")
    ctx = ctx.transpose(0, 2, 1, 3).reshape(B, N, C)
    attn_out = linear_pallas(ctx, a["w_proj"], a["b_proj"])

    joint_feature = joint_feature + attn_out

    # ---- joint MLP branch: joint = joint + MLP(LN(joint)) ----
    mj = p["mlp_joint"]
    joint_feature = joint_feature + ln_mlp_pallas(
        joint_feature, p["ln_joint_g"], p["ln_joint_b"],
        mj["w1"], mj["b1"], mj["w2"], mj["b2"])

    # ---- relation branch 1: relation = relation + MLP1(LN(cat(...))) ----
    joint_i = jnp.broadcast_to(joint_feature[:, None, :, :], (B, N, N, C))
    joint_j = jnp.broadcast_to(joint_feature[:, :, None, :], (B, N, N, C))
    relation_rev = jnp.swapaxes(relation_feature, -2, -3)
    relation_input = jnp.concatenate(
        [relation_feature, relation_rev, joint_i, joint_j], axis=-1)   # (B,N,N,4C)

    m1 = p["mlp_rel1"]
    relation_feature = relation_feature + ln_mlp_pallas(
        relation_input, p["ln_rel1_g"], p["ln_rel1_b"],
        m1["w1"], m1["b1"], m1["w2"], m1["b2"])

    # ---- relation branch 2: relation = relation + MLP2(LN(relation)) ----
    m2 = p["mlp_rel2"]
    relation_feature = relation_feature + ln_mlp_pallas(
        relation_feature, p["ln_rel2_g"], p["ln_rel2_b"],
        m2["w1"], m2["b1"], m2["w2"], m2["b2"])

    return joint_feature, relation_feature


# ---------------------------------------------------------------------------
# pure-JAX reference (for correctness checking only)
# ---------------------------------------------------------------------------
def _layernorm_ref(x, gamma, beta, eps=_LN_EPS):
    mean = jnp.mean(x, axis=-1, keepdims=True)
    var = jnp.mean((x - mean) ** 2, axis=-1, keepdims=True)
    return (x - mean) * lax.rsqrt(var + eps) * gamma + beta


def _linear_ref(x, w, b=None):
    y = jnp.matmul(x, w, precision="highest")
    return y if b is None else y + b


def _mlp_ref(x, w1, b1, w2, b2):
    h = _linear_ref(x, w1, b1)
    h = 0.5 * h * (1.0 + lax.erf(h * _INV_SQRT2))
    return _linear_ref(h, w2, b2)


def block_ref(params, joint_feature, relation_feature, mask=None):
    p = params
    a = p["attn"]
    B, N, C = joint_feature.shape
    num_heads = a["w_rconv"].shape[1]
    head_size = C // num_heads
    scale = head_size ** -0.5

    jf = _layernorm_ref(joint_feature, p["ln_attn1_g"], p["ln_attn1_b"])
    rf = _layernorm_ref(relation_feature, p["ln_attn2_g"], p["ln_attn2_b"])
    jqkv = _linear_ref(jf, a["w_jqkv"], a["b_jqkv"])
    jqkv = jqkv.reshape(B, N, 3, num_heads, head_size).transpose(2, 0, 3, 1, 4)
    j_q, j_k, j_v = jqkv[0], jqkv[1], jqkv[2]
    rqk = _linear_ref(rf, a["w_rqk"], a["b_rqk"])
    rqk = rqk.reshape(B, N, N, 2, num_heads, head_size).transpose(3, 0, 4, 1, 2, 5)
    r_q, r_k = rqk[0], rqk[1]
    attn_r_linear = _linear_ref(rf, a["w_rconv"], a["b_rconv"]).transpose(0, 3, 1, 2)
    attn_j = jnp.einsum("bhqd,bhkd->bhqk", j_q, j_k, precision="highest")
    attn = (attn_j + attn_r_linear + jnp.sum(r_q * r_k, axis=-1)) * scale
    if mask is not None:
        attn = jnp.where(mask == 0, -1e9, attn)
    attn = jax.nn.softmax(attn, axis=-1)
    ctx = jnp.einsum("bhqk,bhkd->bhqd", attn, j_v, precision="highest")
    ctx = ctx.transpose(0, 2, 1, 3).reshape(B, N, C)
    joint_feature = joint_feature + _linear_ref(ctx, a["w_proj"], a["b_proj"])

    mj = p["mlp_joint"]
    joint_feature = joint_feature + _mlp_ref(
        _layernorm_ref(joint_feature, p["ln_joint_g"], p["ln_joint_b"]),
        mj["w1"], mj["b1"], mj["w2"], mj["b2"])

    joint_i = jnp.broadcast_to(joint_feature[:, None, :, :], (B, N, N, C))
    joint_j = jnp.broadcast_to(joint_feature[:, :, None, :], (B, N, N, C))
    relation_input = jnp.concatenate(
        [relation_feature, jnp.swapaxes(relation_feature, -2, -3), joint_i, joint_j],
        axis=-1)

    m1 = p["mlp_rel1"]
    relation_feature = relation_feature + _mlp_ref(
        _layernorm_ref(relation_input, p["ln_rel1_g"], p["ln_rel1_b"]),
        m1["w1"], m1["b1"], m1["w2"], m1["b2"])
    m2 = p["mlp_rel2"]
    relation_feature = relation_feature + _mlp_ref(
        _layernorm_ref(relation_feature, p["ln_rel2_g"], p["ln_rel2_b"]),
        m2["w1"], m2["b1"], m2["w2"], m2["b2"])
    return joint_feature, relation_feature


# ---------------------------------------------------------------------------
# demo / self-test
# ---------------------------------------------------------------------------
if __name__ == "__main__":
    B, N, C, NUM_HEADS = 2, 8, 32, 4    # small shapes: batch=2, seq=8, dim=32
    key = jax.random.PRNGKey(0)
    kj, kr, kp = jax.random.split(key, 3)
    joint = jax.random.normal(kj, (B, N, C), jnp.float32)
    relation = jax.random.normal(kr, (B, N, N, C), jnp.float32)
    params = init_block_params(kp, C, NUM_HEADS)

    fwd = jax.jit(block_forward)
    joint_out, relation_out = fwd(params, joint, relation)
    joint_out.block_until_ready()
    relation_out.block_until_ready()

    assert joint_out.shape == (B, N, C)
    assert relation_out.shape == (B, N, N, C)

    joint_ref, relation_ref = block_ref(params, joint, relation)
    assert jnp.allclose(joint_out, joint_ref, atol=1e-3, rtol=1e-3), "joint mismatch"
    assert jnp.allclose(relation_out, relation_ref, atol=1e-3, rtol=1e-3), "relation mismatch"

    # Extra sanity check: ragged row count + multi-block row tiling + lane padding.
    kt = jax.random.PRNGKey(1)
    k1, k2, k3, k4, k5 = jax.random.split(kt, 5)
    xt = jax.random.normal(k1, (300, 40), jnp.float32)
    gt, bt = jnp.ones((40,), jnp.float32), jnp.zeros((40,), jnp.float32)
    w1t = 0.1 * jax.random.normal(k2, (40, 72), jnp.float32)
    b1t = 0.1 * jax.random.normal(k3, (72,), jnp.float32)
    w2t = 0.1 * jax.random.normal(k4, (72, 24), jnp.float32)
    b2t = 0.1 * jax.random.normal(k5, (24,), jnp.float32)
    yt = ln_mlp_pallas(xt, gt, bt, w1t, b1t, w2t, b2t, tm=128)
    yt.block_until_ready()
    yt_ref = _mlp_ref(_layernorm_ref(xt, gt, bt), w1t, b1t, w2t, b2t)
    assert jnp.allclose(yt, yt_ref, atol=1e-3, rtol=1e-3), "ragged LN+MLP mismatch"

    print("KERNEL_OK")
</pallas_src>

<mosaic_0001>
module attributes {stable_mosaic.version = 11 : i64} {
  func.func @_ln_kernel(%arg0: i32, %arg1: memref<128x128xf32, #tpu.memory_space<vmem>>, %arg2: memref<1x128xf32, #tpu.memory_space<vmem>>, %arg3: memref<1x128xf32, #tpu.memory_space<vmem>>, %arg4: memref<128x128xf32, #tpu.memory_space<vmem>>) attributes {dimension_semantics = [#tpu.dimension_semantics<parallel>], iteration_bounds = array<i64: 1>, scalar_prefetch = 0 : i64, scratch_operands = 0 : i64, tpu.core_type = #tpu.core_type<tc>, window_params = [{transform_indices = @transform_0, window_bounds = array<i64: 128, 128>}, {pipeline_mode = #tpu.pipeline_mode<synchronous>, transform_indices = @transform_1, window_bounds = array<i64: 1, 128>}, {pipeline_mode = #tpu.pipeline_mode<synchronous>, transform_indices = @transform_2, window_bounds = array<i64: 1, 128>}, {transform_indices = @transform_3, window_bounds = array<i64: 128, 128>}]} {
    %c0 = arith.constant 0 : index
    %c0_0 = arith.constant 0 : index
    %0 = vector.load %arg1[%c0, %c0_0] : memref<128x128xf32, #tpu.memory_space<vmem>>, vector<128x128xf32>
    %c0_1 = arith.constant 0 : index
    %c0_2 = arith.constant 0 : index
    %1 = vector.load %arg2[%c0_1, %c0_2] : memref<1x128xf32, #tpu.memory_space<vmem>>, vector<1x128xf32>
    %c0_3 = arith.constant 0 : index
    %c0_4 = arith.constant 0 : index
    %2 = vector.load %arg3[%c0_3, %c0_4] : memref<1x128xf32, #tpu.memory_space<vmem>>, vector<1x128xf32>
    %cst = arith.constant dense<0.000000e+00> : vector<128xf32>
    %3 = vector.multi_reduction <add>, %0, %cst [1] : vector<128x128xf32> to vector<128xf32>
    %4 = vector.shape_cast %3 : vector<128xf32> to vector<128x1xf32>
    %5 = arith.mulf %0, %0 : vector<128x128xf32>
    %cst_5 = arith.constant dense<0.000000e+00> : vector<128xf32>
    %6 = vector.multi_reduction <add>, %5, %cst_5 [1] : vector<128x128xf32> to vector<128xf32>
    %7 = vector.shape_cast %6 : vector<128xf32> to vector<128x1xf32>
    %cst_6 = arith.constant 3.200000e+01 : f32
    %8 = vector.broadcast %cst_6 : f32 to vector<128x1xf32>
    %9 = arith.divf %4, %8 : vector<128x1xf32>
    %cst_7 = arith.constant 3.200000e+01 : f32
    %10 = vector.broadcast %cst_7 : f32 to vector<128x1xf32>
    %11 = arith.divf %7, %10 : vector<128x1xf32>
    %12 = arith.mulf %9, %9 : vector<128x1xf32>
    %13 = arith.subf %11, %12 : vector<128x1xf32>
    %14 = vector.broadcast %9 : vector<128x1xf32> to vector<128x128xf32>
    %15 = arith.subf %0, %14 : vector<128x128xf32>
    %cst_8 = arith.constant 9.99999974E-6 : f32
    %16 = vector.broadcast %cst_8 : f32 to vector<128x1xf32>
    %17 = arith.addf %13, %16 : vector<128x1xf32>
    %18 = math.rsqrt %17 : vector<128x1xf32>
    %19 = vector.broadcast %18 : vector<128x1xf32> to vector<128x128xf32>
    %20 = arith.mulf %15, %19 : vector<128x128xf32>
    %21 = vector.broadcast %1 : vector<1x128xf32> to vector<128x128xf32>
    %22 = arith.mulf %20, %21 : vector<128x128xf32>
    %23 = vector.broadcast %2 : vector<1x128xf32> to vector<128x128xf32>
    %24 = arith.addf %22, %23 : vector<128x128xf32>
    %c0_9 = arith.constant 0 : index
    %c0_10 = arith.constant 0 : index
    %25 = vector.load %arg4[%c0_9, %c0_10] : memref<128x128xf32, #tpu.memory_space<vmem>>, vector<128x128xf32>
    tpu.vector_store %arg4[%c0_9, %c0_10], %24 {strides = array<i32>} : memref<128x128xf32, #tpu.memory_space<vmem>>, vector<128x128xf32>,
    return
  }
  func.func @transform_0(%arg0: i32) -> (i32, i32) {
    %c0_i32 = arith.constant 0 : i32
    %c0_i32_0 = arith.constant 0 : i32
    return %arg0, %c0_i32 : i32, i32
  }
  func.func @transform_1(%arg0: i32) -> (i32, i32) {
    %c0_i32 = arith.constant 0 : i32
    %c0_i32_0 = arith.constant 0 : i32
    %c0_i32_1 = arith.constant 0 : i32
    return %c0_i32, %c0_i32_0 : i32, i32
  }
  func.func @transform_2(%arg0: i32) -> (i32, i32) {
    %c0_i32 = arith.constant 0 : i32
    %c0_i32_0 = arith.constant 0 : i32
    %c0_i32_1 = arith.constant 0 : i32
    return %c0_i32, %c0_i32_0 : i32, i32
  }
  func.func @transform_3(%arg0: i32) -> (i32, i32) {
    %c0_i32 = arith.constant 0 : i32
    %c0_i32_0 = arith.constant 0 : i32
    return %arg0, %c0_i32 : i32, i32
  }
}

module attributes {stable_mosaic.version = 11 : i64} {
  func.func @_linear_kernel(%arg0: i32, %arg1: memref<128x128xf32, #tpu.memory_space<vmem>>, %arg2: memref<128x128xf32, #tpu.memory_space<vmem>>, %arg3: memref<1x128xf32, #tpu.memory_space<vmem>>, %arg4: memref<128x128xf32, #tpu.memory_space<vmem>>) attributes {dimension_semantics = [#tpu.dimension_semantics<parallel>], iteration_bounds = array<i64: 1>, scalar_prefetch = 0 : i64, scratch_operands = 0 : i64, tpu.core_type = #tpu.core_type<tc>, window_params = [{transform_indices = @transform_0, window_bounds = array<i64: 128, 128>}, {pipeline_mode = #tpu.pipeline_mode<synchronous>, transform_indices = @transform_1, window_bounds = array<i64: 128, 128>}, {pipeline_mode = #tpu.pipeline_mode<synchronous>, transform_indices = @transform_2, window_bounds = array<i64: 1, 128>}, {transform_indices = @transform_3, window_bounds = array<i64: 128, 128>}]} {
    %c0 = arith.constant 0 : index
    %c0_0 = arith.constant 0 : index
    %0 = vector.load %arg1[%c0, %c0_0] : memref<128x128xf32, #tpu.memory_space<vmem>>, vector<128x128xf32>
    %c0_1 = arith.constant 0 : index
    %c0_2 = arith.constant 0 : index
    %1 = vector.load %arg2[%c0_1, %c0_2] : memref<128x128xf32, #tpu.memory_space<vmem>>, vector<128x128xf32>
    %cst = arith.constant dense<0.000000e+00> : vector<128x128xf32>
    %2 = tpu.matmul %0, %1, %cst {dimension_numbers = #tpu.dot_dimension_numbers<[1], [0], [0], [1], [0, 0, 1, 1], [], []>} : vector<128x128xf32>, vector<128x128xf32>, vector<128x128xf32> -> vector<128x128xf32>
    %c0_3 = arith.constant 0 : index
    %c0_4 = arith.constant 0 : index
    %3 = vector.load %arg3[%c0_3, %c0_4] : memref<1x128xf32, #tpu.memory_space<vmem>>, vector<1x128xf32>
    %4 = vector.broadcast %3 : vector<1x128xf32> to vector<128x128xf32>
    %5 = arith.addf %2, %4 : vector<128x128xf32>
    %c0_5 = arith.constant 0 : index
    %c0_6 = arith.constant 0 : index
    %6 = vector.load %arg4[%c0_5, %c0_6] : memref<128x128xf32, #tpu.memory_space<vmem>>, vector<128x128xf32>
    tpu.vector_store %arg4[%c0_5, %c0_6], %5 {strides = array<i32>} : memref<128x128xf32, #tpu.memory_space<vmem>>, vector<128x128xf32>,
    return
  }
  func.func @transform_0(%arg0: i32) -> (i32, i32) {
    %c0_i32 = arith.constant 0 : i32
    %c0_i32_0 = arith.constant 0 : i32
    return %arg0, %c0_i32 : i32, i32
  }
  func.func @transform_1(%arg0: i32) -> (i32, i32) {
    %c0_i32 = arith.constant 0 : i32
    %c0_i32_0 = arith.constant 0 : i32
    %c0_i32_1 = arith.constant 0 : i32
    return %c0_i32, %c0_i32_0 : i32, i32
  }
  func.func @transform_2(%arg0: i32) -> (i32, i32) {
    %c0_i32 = arith.constant 0 : i32
    %c0_i32_0 = arith.constant 0 : i32
    %c0_i32_1 = arith.constant 0 : i32
    return %c0_i32, %c0_i32_0 : i32, i32
  }
  func.func @transform_3(%arg0: i32) -> (i32, i32) {
    %c0_i32 = arith.constant 0 : i32
    %c0_i32_0 = arith.constant 0 : i32
    return %arg0, %c0_i32 : i32, i32
  }
}

module attributes {stable_mosaic.version = 11 : i64} {
  func.func @_ln_kernel(%arg0: i32, %arg1: memref<16x128xf32, #tpu.memory_space<vmem>>, %arg2: memref<1x128xf32, #tpu.memory_space<vmem>>, %arg3: memref<1x128xf32, #tpu.memory_space<vmem>>, %arg4: memref<16x128xf32, #tpu.memory_space<vmem>>) attributes {dimension_semantics = [#tpu.dimension_semantics<parallel>], iteration_bounds = array<i64: 1>, scalar_prefetch = 0 : i64, scratch_operands = 0 : i64, tpu.core_type = #tpu.core_type<tc>, window_params = [{transform_indices = @transform_0, window_bounds = array<i64: 16, 128>}, {pipeline_mode = #tpu.pipeline_mode<synchronous>, transform_indices = @transform_1, window_bounds = array<i64: 1, 128>}, {pipeline_mode = #tpu.pipeline_mode<synchronous>, transform_indices = @transform_2, window_bounds = array<i64: 1, 128>}, {transform_indices = @transform_3, window_bounds = array<i64: 16, 128>}]} {
    %c0 = arith.constant 0 : index
    %c0_0 = arith.constant 0 : index
    %0 = vector.load %arg1[%c0, %c0_0] : memref<16x128xf32, #tpu.memory_space<vmem>>, vector<16x128xf32>
    %c0_1 = arith.constant 0 : index
    %c0_2 = arith.constant 0 : index
    %1 = vector.load %arg2[%c0_1, %c0_2] : memref<1x128xf32, #tpu.memory_space<vmem>>, vector<1x128xf32>
    %c0_3 = arith.constant 0 : index
    %c0_4 = arith.constant 0 : index
    %2 = vector.load %arg3[%c0_3, %c0_4] : memref<1x128xf32, #tpu.memory_space<vmem>>, vector<1x128xf32>
    %cst = arith.constant dense<0.000000e+00> : vector<16xf32>
    %3 = vector.multi_reduction <add>, %0, %cst [1] : vector<16x128xf32> to vector<16xf32>
    %4 = vector.shape_cast %3 : vector<16xf32> to vector<16x1xf32>
    %5 = arith.mulf %0, %0 : vector<16x128xf32>
    %cst_5 = arith.constant dense<0.000000e+00> : vector<16xf32>
    %6 = vector.multi_reduction <add>, %5, %cst_5 [1] : vector<16x128xf32> to vector<16xf32>
    %7 = vector.shape_cast %6 : vector<16xf32> to vector<16x1xf32>
    %cst_6 = arith.constant 3.200000e+01 : f32
    %8 = vector.broadcast %cst_6 : f32 to vector<16x1xf32>
    %9 = arith.divf %4, %8 : vector<16x1xf32>
    %cst_7 = arith.constant 3.200000e+01 : f32
    %10 = vector.broadcast %cst_7 : f32 to vector<16x1xf32>
    %11 = arith.divf %7, %10 : vector<16x1xf32>
    %12 = arith.mulf %9, %9 : vector<16x1xf32>
    %13 = arith.subf %11, %12 : vector<16x1xf32>
    %14 = vector.broadcast %9 : vector<16x1xf32> to vector<16x128xf32>
    %15 = arith.subf %0, %14 : vector<16x128xf32>
    %cst_8 = arith.constant 9.99999974E-6 : f32
    %16 = vector.broadcast %cst_8 : f32 to vector<16x1xf32>
    %17 = arith.addf %13, %16 : vector<16x1xf32>
    %18 = math.rsqrt %17 : vector<16x1xf32>
    %19 = vector.broadcast %18 : vector<16x1xf32> to vector<16x128xf32>
    %20 = arith.mulf %15, %19 : vector<16x128xf32>
    %21 = vector.broadcast %1 : vector<1x128xf32> to vector<16x128xf32>
    %22 = arith.mulf %20, %21 : vector<16x128xf32>
    %23 = vector.broadcast %2 : vector<1x128xf32> to vector<16x128xf32>
    %24 = arith.addf %22, %23 : vector<16x128xf32>
    %c0_9 = arith.constant 0 : index
    %c0_10 = arith.constant 0 : index
    %25 = vector.load %arg4[%c0_9, %c0_10] : memref<16x128xf32, #tpu.memory_space<vmem>>, vector<16x128xf32>
    tpu.vector_store %arg4[%c0_9, %c0_10], %24 {strides = array<i32>} : memref<16x128xf32, #tpu.memory_space<vmem>>, vector<16x128xf32>,
    return
  }
  func.func @transform_0(%arg0: i32) -> (i32, i32) {
    %c0_i32 = arith.constant 0 : i32
    %c0_i32_0 = arith.constant 0 : i32
    return %arg0, %c0_i32 : i32, i32
  }
  func.func @transform_1(%arg0: i32) -> (i32, i32) {
    %c0_i32 = arith.constant 0 : i32
    %c0_i32_0 = arith.constant 0 : i32
    %c0_i32_1 = arith.constant 0 : i32
    return %c0_i32, %c0_i32_0 : i32, i32
  }
  func.func @transform_2(%arg0: i32) -> (i32, i32) {
    %c0_i32 = arith.constant 0 : i32
    %c0_i32_0 = arith.constant 0 : i32
    %c0_i32_1 = arith.constant 0 : i32
    return %c0_i32, %c0_i32_0 : i32, i32
  }
  func.func @transform_3(%arg0: i32) -> (i32, i32) {
    %c0_i32 = arith.constant 0 : i32
    %c0_i32_0 = arith.constant 0 : i32
    return %arg0, %c0_i32 : i32, i32
  }
}

module attributes {stable_mosaic.version = 11 : i64} {
  func.func @_linear_kernel(%arg0: i32, %arg1: memref<16x128xf32, #tpu.memory_space<vmem>>, %arg2: memref<128x128xf32, #tpu.memory_space<vmem>>, %arg3: memref<1x128xf32, #tpu.memory_space<vmem>>, %arg4: memref<16x128xf32, #tpu.memory_space<vmem>>) attributes {dimension_semantics = [#tpu.dimension_semantics<parallel>], iteration_bounds = array<i64: 1>, scalar_prefetch = 0 : i64, scratch_operands = 0 : i64, tpu.core_type = #tpu.core_type<tc>, window_params = [{transform_indices = @transform_0, window_bounds = array<i64: 16, 128>}, {pipeline_mode = #tpu.pipeline_mode<synchronous>, transform_indices = @transform_1, window_bounds = array<i64: 128, 128>}, {pipeline_mode = #tpu.pipeline_mode<synchronous>, transform_indices = @transform_2, window_bounds = array<i64: 1, 128>}, {transform_indices = @transform_3, window_bounds = array<i64: 16, 128>}]} {
    %c0 = arith.constant 0 : index
    %c0_0 = arith.constant 0 : index
    %0 = vector.load %arg1[%c0, %c0_0] : memref<16x128xf32, #tpu.memory_space<vmem>>, vector<16x128xf32>
    %c0_1 = arith.constant 0 : index
    %c0_2 = arith.constant 0 : index
    %1 = vector.load %arg2[%c0_1, %c0_2] : memref<128x128xf32, #tpu.memory_space<vmem>>, vector<128x128xf32>
    %cst = arith.constant dense<0.000000e+00> : vector<16x128xf32>
    %2 = tpu.matmul %0, %1, %cst {dimension_numbers = #tpu.dot_dimension_numbers<[1], [0], [0], [1], [0, 0, 1, 1], [], []>} : vector<16x128xf32>, vector<128x128xf32>, vector<16x128xf32> -> vector<16x128xf32>
    %c0_3 = arith.constant 0 : index
    %c0_4 = arith.constant 0 : index
    %3 = vector.load %arg3[%c0_3, %c0_4] : memref<1x128xf32, #tpu.memory_space<vmem>>, vector<1x128xf32>
    %4 = vector.broadcast %3 : vector<1x128xf32> to vector<16x128xf32>
    %5 = arith.addf %2, %4 : vector<16x128xf32>
    %c0_5 = arith.constant 0 : index
    %c0_6 = arith.constant 0 : index
    %6 = vector.load %arg4[%c0_5, %c0_6] : memref<16x128xf32, #tpu.memory_space<vmem>>, vector<16x128xf32>
    tpu.vector_store %arg4[%c0_5, %c0_6], %5 {strides = array<i32>} : memref<16x128xf32, #tpu.memory_space<vmem>>, vector<16x128xf32>,
    return
  }
  func.func @transform_0(%arg0: i32) -> (i32, i32) {
    %c0_i32 = arith.constant 0 : i32
    %c0_i32_0 = arith.constant 0 : i32
    return %arg0, %c0_i32 : i32, i32
  }
  func.func @transform_1(%arg0: i32) -> (i32, i32) {
    %c0_i32 = arith.constant 0 : i32
    %c0_i32_0 = arith.constant 0 : i32
    %c0_i32_1 = arith.constant 0 : i32
    return %c0_i32, %c0_i32_0 : i32, i32
  }
  func.func @transform_2(%arg0: i32) -> (i32, i32) {
    %c0_i32 = arith.constant 0 : i32
    %c0_i32_0 = arith.constant 0 : i32
    %c0_i32_1 = arith.constant 0 : i32
    return %c0_i32, %c0_i32_0 : i32, i32
  }
  func.func @transform_3(%arg0: i32) -> (i32, i32) {
    %c0_i32 = arith.constant 0 : i32
    %c0_i32_0 = arith.constant 0 : i32
    return %arg0, %c0_i32 : i32, i32
  }
}

module attributes {stable_mosaic.version = 11 : i64} {
  func.func @_ln_mlp_kernel(%arg0: i32, %arg1: memref<16x128xf32, #tpu.memory_space<vmem>>, %arg2: memref<1x128xf32, #tpu.memory_space<vmem>>, %arg3: memref<1x128xf32, #tpu.memory_space<vmem>>, %arg4: memref<128x128xf32, #tpu.memory_space<vmem>>, %arg5: memref<1x128xf32, #tpu.memory_space<vmem>>, %arg6: memref<128x128xf32, #tpu.memory_space<vmem>>, %arg7: memref<1x128xf32, #tpu.memory_space<vmem>>, %arg8: memref<16x128xf32, #tpu.memory_space<vmem>>) attributes {dimension_semantics = [#tpu.dimension_semantics<parallel>], iteration_bounds = array<i64: 1>, scalar_prefetch = 0 : i64, scratch_operands = 0 : i64, tpu.core_type = #tpu.core_type<tc>, window_params = [{transform_indices = @transform_0, window_bounds = array<i64: 16, 128>}, {pipeline_mode = #tpu.pipeline_mode<synchronous>, transform_indices = @transform_1, window_bounds = array<i64: 1, 128>}, {pipeline_mode = #tpu.pipeline_mode<synchronous>, transform_indices = @transform_2, window_bounds = array<i64: 1, 128>}, {pipeline_mode = #tpu.pipeline_mode<synchronous>, transform_indices = @transform_3, window_bounds = array<i64: 128, 128>}, {pipeline_mode = #tpu.pipeline_mode<synchronous>, transform_indices = @transform_4, window_bounds = array<i64: 1, 128>}, {pipeline_mode = #tpu.pipeline_mode<synchronous>, transform_indices = @transform_5, window_bounds = array<i64: 128, 128>}, {pipeline_mode = #tpu.pipeline_mode<synchronous>, transform_indices = @transform_6, window_bounds = array<i64: 1, 128>}, {transform_indices = @transform_7, window_bounds = array<i64: 16, 128>}]} {
    %c0 = arith.constant 0 : index
    %c0_0 = arith.constant 0 : index
    %0 = vector.load %arg1[%c0, %c0_0] : memref<16x128xf32, #tpu.memory_space<vmem>>, vector<16x128xf32>
    %c0_1 = arith.constant 0 : index
    %c0_2 = arith.constant 0 : index
    %1 = vector.load %arg2[%c0_1, %c0_2] : memref<1x128xf32, #tpu.memory_space<vmem>>, vector<1x128xf32>
    %c0_3 = arith.constant 0 : index
    %c0_4 = arith.constant 0 : index
    %2 = vector.load %arg3[%c0_3, %c0_4] : memref<1x128xf32, #tpu.memory_space<vmem>>, vector<1x128xf32>
    %cst = arith.constant dense<0.000000e+00> : vector<16xf32>
    %3 = vector.multi_reduction <add>, %0, %cst [1] : vector<16x128xf32> to vector<16xf32>
    %4 = vector.shape_cast %3 : vector<16xf32> to vector<16x1xf32>
    %5 = arith.mulf %0, %0 : vector<16x128xf32>
    %cst_5 = arith.constant dense<0.000000e+00> : vector<16xf32>
    %6 = vector.multi_reduction <add>, %5, %cst_5 [1] : vector<16x128xf32> to vector<16xf32>
    %7 = vector.shape_cast %6 : vector<16xf32> to vector<16x1xf32>
    %cst_6 = arith.constant 3.200000e+01 : f32
    %8 = vector.broadcast %cst_6 : f32 to vector<16x1xf32>
    %9 = arith.divf %4, %8 : vector<16x1xf32>
    %cst_7 = arith.constant 3.200000e+01 : f32
    %10 = vector.broadcast %cst_7 : f32 to vector<16x1xf32>
    %11 = arith.divf %7, %10 : vector<16x1xf32>
    %12 = arith.mulf %9, %9 : vector<16x1xf32>
    %13 = arith.subf %11, %12 : vector<16x1xf32>
    %14 = vector.broadcast %9 : vector<16x1xf32> to vector<16x128xf32>
    %15 = arith.subf %0, %14 : vector<16x128xf32>
    %cst_8 = arith.constant 9.99999974E-6 : f32
    %16 = vector.broadcast %cst_8 : f32 to vector<16x1xf32>
    %17 = arith.addf %13, %16 : vector<16x1xf32>
    %18 = math.rsqrt %17 : vector<16x1xf32>
    %19 = vector.broadcast %18 : vector<16x1xf32> to vector<16x128xf32>
    %20 = arith.mulf %15, %19 : vector<16x128xf32>
    %21 = vector.broadcast %1 : vector<1x128xf32> to vector<16x128xf32>
    %22 = arith.mulf %20, %21 : vector<16x128xf32>
    %23 = vector.broadcast %2 : vector<1x128xf32> to vector<16x128xf32>
    %24 = arith.addf %22, %23 : vector<16x128xf32>
    %c0_9 = arith.constant 0 : index
    %c0_10 = arith.constant 0 : index
    %25 = vector.load %arg4[%c0_9, %c0_10] : memref<128x128xf32, #tpu.memory_space<vmem>>, vector<128x128xf32>
    %cst_11 = arith.constant dense<0.000000e+00> : vector<16x128xf32>
    %26 = tpu.matmul %24, %25, %cst_11 {dimension_numbers = #tpu.dot_dimension_numbers<[1], [0], [0], [1], [0, 0, 1, 1], [], []>} : vector<16x128xf32>, vector<128x128xf32>, vector<16x128xf32> -> vector<16x128xf32>
    %c0_12 = arith.constant 0 : index
    %c0_13 = arith.constant 0 : index
    %27 = vector.load %arg5[%c0_12, %c0_13] : memref<1x128xf32, #tpu.memory_space<vmem>>, vector<1x128xf32>
    %28 = vector.broadcast %27 : vector<1x128xf32> to vector<16x128xf32>
    %29 = arith.addf %26, %28 : vector<16x128xf32>
    %cst_14 = arith.constant 5.000000e-01 : f32
    %30 = vector.broadcast %cst_14 : f32 to vector<16x128xf32>
    %31 = arith.mulf %30, %29 : vector<16x128xf32>
    %cst_15 = arith.constant 0.707106769 : f32
    %32 = vector.broadcast %cst_15 : f32 to vector<16x128xf32>
    %33 = arith.mulf %29, %32 : vector<16x128xf32>
    %34 = math.erf %33 : vector<16x128xf32>
    %cst_16 = arith.constant 1.000000e+00 : f32
    %35 = vector.broadcast %cst_16 : f32 to vector<16x128xf32>
    %36 = arith.addf %35, %34 : vector<16x128xf32>
    %37 = arith.mulf %31, %36 : vector<16x128xf32>
    %c0_17 = arith.constant 0 : index
    %c0_18 = arith.constant 0 : index
    %38 = vector.load %arg6[%c0_17, %c0_18] : memref<128x128xf32, #tpu.memory_space<vmem>>, vector<128x128xf32>
    %cst_19 = arith.constant dense<0.000000e+00> : vector<16x128xf32>
    %39 = tpu.matmul %37, %38, %cst_19 {dimension_numbers = #tpu.dot_dimension_numbers<[1], [0], [0], [1], [0, 0, 1, 1], [], []>} : vector<16x128xf32>, vector<128x128xf32>, vector<16x128xf32> -> vector<16x128xf32>
    %c0_20 = arith.constant 0 : index
    %c0_21 = arith.constant 0 : index
    %40 = vector.load %arg7[%c0_20, %c0_21] : memref<1x128xf32, #tpu.memory_space<vmem>>, vector<1x128xf32>
    %41 = vector.broadcast %40 : vector<1x128xf32> to vector<16x128xf32>
    %42 = arith.addf %39, %41 : vector<16x128xf32>
    %c0_22 = arith.constant 0 : index
    %c0_23 = arith.constant 0 : index
    %43 = vector.load %arg8[%c0_22, %c0_23] : memref<16x128xf32, #tpu.memory_space<vmem>>, vector<16x128xf32>
    tpu.vector_store %arg8[%c0_22, %c0_23], %42 {strides = array<i32>} : memref<16x128xf32, #tpu.memory_space<vmem>>, vector<16x128xf32>,
    return
  }
  func.func @transform_0(%arg0: i32) -> (i32, i32) {
    %c0_i32 = arith.constant 0 : i32
    %c0_i32_0 = arith.constant 0 : i32
    return %arg0, %c0_i32 : i32, i32
  }
  func.func @transform_1(%arg0: i32) -> (i32, i32) {
    %c0_i32 = arith.constant 0 : i32
    %c0_i32_0 = arith.constant 0 : i32
    %c0_i32_1 = arith.constant 0 : i32
    return %c0_i32, %c0_i32_0 : i32, i32
  }
  func.func @transform_2(%arg0: i32) -> (i32, i32) {
    %c0_i32 = arith.constant 0 : i32
    %c0_i32_0 = arith.constant 0 : i32
    %c0_i32_1 = arith.constant 0 : i32
    return %c0_i32, %c0_i32_0 : i32, i32
  }
  func.func @transform_3(%arg0: i32) -> (i32, i32) {
    %c0_i32 = arith.constant 0 : i32
    %c0_i32_0 = arith.constant 0 : i32
    %c0_i32_1 = arith.constant 0 : i32
    return %c0_i32, %c0_i32_0 : i32, i32
  }
  func.func @transform_4(%arg0: i32) -> (i32, i32) {
    %c0_i32 = arith.constant 0 : i32
    %c0_i32_0 = arith.constant 0 : i32
    %c0_i32_1 = arith.constant 0 : i32
    return %c0_i32, %c0_i32_0 : i32, i32
  }
  func.func @transform_5(%arg0: i32) -> (i32, i32) {
    %c0_i32 = arith.constant 0 : i32
    %c0_i32_0 = arith.constant 0 : i32
    %c0_i32_1 = arith.constant 0 : i32
    return %c0_i32, %c0_i32_0 : i32, i32
  }
  func.func @transform_6(%arg0: i32) -> (i32, i32) {
    %c0_i32 = arith.constant 0 : i32
    %c0_i32_0 = arith.constant 0 : i32
    %c0_i32_1 = arith.constant 0 : i32
    return %c0_i32, %c0_i32_0 : i32, i32
  }
  func.func @transform_7(%arg0: i32) -> (i32, i32) {
    %c0_i32 = arith.constant 0 : i32
    %c0_i32_0 = arith.constant 0 : i32
    return %arg0, %c0_i32 : i32, i32
  }
}

module attributes {stable_mosaic.version = 11 : i64} {
  func.func @_ln_mlp_kernel(%arg0: i32, %arg1: memref<128x128xf32, #tpu.memory_space<vmem>>, %arg2: memref<1x128xf32, #tpu.memory_space<vmem>>, %arg3: memref<1x128xf32, #tpu.memory_space<vmem>>, %arg4: memref<128x128xf32, #tpu.memory_space<vmem>>, %arg5: memref<1x128xf32, #tpu.memory_space<vmem>>, %arg6: memref<128x128xf32, #tpu.memory_space<vmem>>, %arg7: memref<1x128xf32, #tpu.memory_space<vmem>>, %arg8: memref<128x128xf32, #tpu.memory_space<vmem>>) attributes {dimension_semantics = [#tpu.dimension_semantics<parallel>], iteration_bounds = array<i64: 1>, scalar_prefetch = 0 : i64, scratch_operands = 0 : i64, tpu.core_type = #tpu.core_type<tc>, window_params = [{transform_indices = @transform_0, window_bounds = array<i64: 128, 128>}, {pipeline_mode = #tpu.pipeline_mode<synchronous>, transform_indices = @transform_1, window_bounds = array<i64: 1, 128>}, {pipeline_mode = #tpu.pipeline_mode<synchronous>, transform_indices = @transform_2, window_bounds = array<i64: 1, 128>}, {pipeline_mode = #tpu.pipeline_mode<synchronous>, transform_indices = @transform_3, window_bounds = array<i64: 128, 128>}, {pipeline_mode = #tpu.pipeline_mode<synchronous>, transform_indices = @transform_4, window_bounds = array<i64: 1, 128>}, {pipeline_mode = #tpu.pipeline_mode<synchronous>, transform_indices = @transform_5, window_bounds = array<i64: 128, 128>}, {pipeline_mode = #tpu.pipeline_mode<synchronous>, transform_indices = @transform_6, window_bounds = array<i64: 1, 128>}, {transform_indices = @transform_7, window_bounds = array<i64: 128, 128>}]} {
    %c0 = arith.constant 0 : index
    %c0_0 = arith.constant 0 : index
    %0 = vector.load %arg1[%c0, %c0_0] : memref<128x128xf32, #tpu.memory_space<vmem>>, vector<128x128xf32>
    %c0_1 = arith.constant 0 : index
    %c0_2 = arith.constant 0 : index
    %1 = vector.load %arg2[%c0_1, %c0_2] : memref<1x128xf32, #tpu.memory_space<vmem>>, vector<1x128xf32>
    %c0_3 = arith.constant 0 : index
    %c0_4 = arith.constant 0 : index
    %2 = vector.load %arg3[%c0_3, %c0_4] : memref<1x128xf32, #tpu.memory_space<vmem>>, vector<1x128xf32>
    %cst = arith.constant dense<0.000000e+00> : vector<128xf32>
    %3 = vector.multi_reduction <add>, %0, %cst [1] : vector<128x128xf32> to vector<128xf32>
    %4 = vector.shape_cast %3 : vector<128xf32> to vector<128x1xf32>
    %5 = arith.mulf %0, %0 : vector<128x128xf32>
    %cst_5 = arith.constant dense<0.000000e+00> : vector<128xf32>
    %6 = vector.multi_reduction <add>, %5, %cst_5 [1] : vector<128x128xf32> to vector<128xf32>
    %7 = vector.shape_cast %6 : vector<128xf32> to vector<128x1xf32>
    %cst_6 = arith.constant 1.280000e+02 : f32
    %8 = vector.broadcast %cst_6 : f32 to vector<128x1xf32>
    %9 = arith.divf %4, %8 : vector<128x1xf32>
    %cst_7 = arith.constant 1.280000e+02 : f32
    %10 = vector.broadcast %cst_7 : f32 to vector<128x1xf32>
    %11 = arith.divf %7, %10 : vector<128x1xf32>
    %12 = arith.mulf %9, %9 : vector<128x1xf32>
    %13 = arith.subf %11, %12 : vector<128x1xf32>
    %14 = vector.broadcast %9 : vector<128x1xf32> to vector<128x128xf32>
    %15 = arith.subf %0, %14 : vector<128x128xf32>
    %cst_8 = arith.constant 9.99999974E-6 : f32
    %16 = vector.broadcast %cst_8 : f32 to vector<128x1xf32>
    %17 = arith.addf %13, %16 : vector<128x1xf32>
    %18 = math.rsqrt %17 : vector<128x1xf32>
    %19 = vector.broadcast %18 : vector<128x1xf32> to vector<128x128xf32>
    %20 = arith.mulf %15, %19 : vector<128x128xf32>
    %21 = vector.broadcast %1 : vector<1x128xf32> to vector<128x128xf32>
    %22 = arith.mulf %20, %21 : vector<128x128xf32>
    %23 = vector.broadcast %2 : vector<1x128xf32> to vector<128x128xf32>
    %24 = arith.addf %22, %23 : vector<128x128xf32>
    %c0_9 = arith.constant 0 : index
    %c0_10 = arith.constant 0 : index
    %25 = vector.load %arg4[%c0_9, %c0_10] : memref<128x128xf32, #tpu.memory_space<vmem>>, vector<128x128xf32>
    %cst_11 = arith.constant dense<0.000000e+00> : vector<128x128xf32>
    %26 = tpu.matmul %24, %25, %cst_11 {dimension_numbers = #tpu.dot_dimension_numbers<[1], [0], [0], [1], [0, 0, 1, 1], [], []>} : vector<128x128xf32>, vector<128x128xf32>, vector<128x128xf32> -> vector<128x128xf32>
    %c0_12 = arith.constant 0 : index
    %c0_13 = arith.constant 0 : index
    %27 = vector.load %arg5[%c0_12, %c0_13] : memref<1x128xf32, #tpu.memory_space<vmem>>, vector<1x128xf32>
    %28 = vector.broadcast %27 : vector<1x128xf32> to vector<128x128xf32>
    %29 = arith.addf %26, %28 : vector<128x128xf32>
    %cst_14 = arith.constant 5.000000e-01 : f32
    %30 = vector.broadcast %cst_14 : f32 to vector<128x128xf32>
    %31 = arith.mulf %30, %29 : vector<128x128xf32>
    %cst_15 = arith.constant 0.707106769 : f32
    %32 = vector.broadcast %cst_15 : f32 to vector<128x128xf32>
    %33 = arith.mulf %29, %32 : vector<128x128xf32>
    %34 = math.erf %33 : vector<128x128xf32>
    %cst_16 = arith.constant 1.000000e+00 : f32
    %35 = vector.broadcast %cst_16 : f32 to vector<128x128xf32>
    %36 = arith.addf %35, %34 : vector<128x128xf32>
    %37 = arith.mulf %31, %36 : vector<128x128xf32>
    %c0_17 = arith.constant 0 : index
    %c0_18 = arith.constant 0 : index
    %38 = vector.load %arg6[%c0_17, %c0_18] : memref<128x128xf32, #tpu.memory_space<vmem>>, vector<128x128xf32>
    %cst_19 = arith.constant dense<0.000000e+00> : vector<128x128xf32>
    %39 = tpu.matmul %37, %38, %cst_19 {dimension_numbers = #tpu.dot_dimension_numbers<[1], [0], [0], [1], [0, 0, 1, 1], [], []>} : vector<128x128xf32>, vector<128x128xf32>, vector<128x128xf32> -> vector<128x128xf32>
    %c0_20 = arith.constant 0 : index
    %c0_21 = arith.constant 0 : index
    %40 = vector.load %arg7[%c0_20, %c0_21] : memref<1x128xf32, #tpu.memory_space<vmem>>, vector<1x128xf32>
    %41 = vector.broadcast %40 : vector<1x128xf32> to vector<128x128xf32>
    %42 = arith.addf %39, %41 : vector<128x128xf32>
    %c0_22 = arith.constant 0 : index
    %c0_23 = arith.constant 0 : index
    %43 = vector.load %arg8[%c0_22, %c0_23] : memref<128x128xf32, #tpu.memory_space<vmem>>, vector<128x128xf32>
    tpu.vector_store %arg8[%c0_22, %c0_23], %42 {strides = array<i32>} : memref<128x128xf32, #tpu.memory_space<vmem>>, vector<128x128xf32>,
    return
  }
  func.func @transform_0(%arg0: i32) -> (i32, i32) {
    %c0_i32 = arith.constant 0 : i32
    %c0_i32_0 = arith.constant 0 : i32
    return %arg0, %c0_i32 : i32, i32
  }
  func.func @transform_1(%arg0: i32) -> (i32, i32) {
    %c0_i32 = arith.constant 0 : i32
    %c0_i32_0 = arith.constant 0 : i32
    %c0_i32_1 = arith.constant 0 : i32
    return %c0_i32, %c0_i32_0 : i32, i32
  }
  func.func @transform_2(%arg0: i32) -> (i32, i32) {
    %c0_i32 = arith.constant 0 : i32
    %c0_i32_0 = arith.constant 0 : i32
    %c0_i32_1 = arith.constant 0 : i32
    return %c0_i32, %c0_i32_0 : i32, i32
  }
  func.func @transform_3(%arg0: i32) -> (i32, i32) {
    %c0_i32 = arith.constant 0 : i32
    %c0_i32_0 = arith.constant 0 : i32
    %c0_i32_1 = arith.constant 0 : i32
    return %c0_i32, %c0_i32_0 : i32, i32
  }
  func.func @transform_4(%arg0: i32) -> (i32, i32) {
    %c0_i32 = arith.constant 0 : i32
    %c0_i32_0 = arith.constant 0 : i32
    %c0_i32_1 = arith.constant 0 : i32
    return %c0_i32, %c0_i32_0 : i32, i32
  }
  func.func @transform_5(%arg0: i32) -> (i32, i32) {
    %c0_i32 = arith.constant 0 : i32
    %c0_i32_0 = arith.constant 0 : i32
    %c0_i32_1 = arith.constant 0 : i32
    return %c0_i32, %c0_i32_0 : i32, i32
  }
  func.func @transform_6(%arg0: i32) -> (i32, i32) {
    %c0_i32 = arith.constant 0 : i32
    %c0_i32_0 = arith.constant 0 : i32
    %c0_i32_1 = arith.constant 0 : i32
    return %c0_i32, %c0_i32_0 : i32, i32
  }
  func.func @transform_7(%arg0: i32) -> (i32, i32) {
    %c0_i32 = arith.constant 0 : i32
    %c0_i32_0 = arith.constant 0 : i32
    return %arg0, %c0_i32 : i32, i32
  }
}

module attributes {stable_mosaic.version = 11 : i64} {
  func.func @_ln_mlp_kernel(%arg0: i32, %arg1: memref<128x128xf32, #tpu.memory_space<vmem>>, %arg2: memref<1x128xf32, #tpu.memory_space<vmem>>, %arg3: memref<1x128xf32, #tpu.memory_space<vmem>>, %arg4: memref<128x128xf32, #tpu.memory_space<vmem>>, %arg5: memref<1x128xf32, #tpu.memory_space<vmem>>, %arg6: memref<128x128xf32, #tpu.memory_space<vmem>>, %arg7: memref<1x128xf32, #tpu.memory_space<vmem>>, %arg8: memref<128x128xf32, #tpu.memory_space<vmem>>) attributes {dimension_semantics = [#tpu.dimension_semantics<parallel>], iteration_bounds = array<i64: 1>, scalar_prefetch = 0 : i64, scratch_operands = 0 : i64, tpu.core_type = #tpu.core_type<tc>, window_params = [{transform_indices = @transform_0, window_bounds = array<i64: 128, 128>}, {pipeline_mode = #tpu.pipeline_mode<synchronous>, transform_indices = @transform_1, window_bounds = array<i64: 1, 128>}, {pipeline_mode = #tpu.pipeline_mode<synchronous>, transform_indices = @transform_2, window_bounds = array<i64: 1, 128>}, {pipeline_mode = #tpu.pipeline_mode<synchronous>, transform_indices = @transform_3, window_bounds = array<i64: 128, 128>}, {pipeline_mode = #tpu.pipeline_mode<synchronous>, transform_indices = @transform_4, window_bounds = array<i64: 1, 128>}, {pipeline_mode = #tpu.pipeline_mode<synchronous>, transform_indices = @transform_5, window_bounds = array<i64: 128, 128>}, {pipeline_mode = #tpu.pipeline_mode<synchronous>, transform_indices = @transform_6, window_bounds = array<i64: 1, 128>}, {transform_indices = @transform_7, window_bounds = array<i64: 128, 128>}]} {
    %c0 = arith.constant 0 : index
    %c0_0 = arith.constant 0 : index
    %0 = vector.load %arg1[%c0, %c0_0] : memref<128x128xf32, #tpu.memory_space<vmem>>, vector<128x128xf32>
    %c0_1 = arith.constant 0 : index
    %c0_2 = arith.constant 0 : index
    %1 = vector.load %arg2[%c0_1, %c0_2] : memref<1x128xf32, #tpu.memory_space<vmem>>, vector<1x128xf32>
    %c0_3 = arith.constant 0 : index
    %c0_4 = arith.constant 0 : index
    %2 = vector.load %arg3[%c0_3, %c0_4] : memref<1x128xf32, #tpu.memory_space<vmem>>, vector<1x128xf32>
    %cst = arith.constant dense<0.000000e+00> : vector<128xf32>
    %3 = vector.multi_reduction <add>, %0, %cst [1] : vector<128x128xf32> to vector<128xf32>
    %4 = vector.shape_cast %3 : vector<128xf32> to vector<128x1xf32>
    %5 = arith.mulf %0, %0 : vector<128x128xf32>
    %cst_5 = arith.constant dense<0.000000e+00> : vector<128xf32>
    %6 = vector.multi_reduction <add>, %5, %cst_5 [1] : vector<128x128xf32> to vector<128xf32>
    %7 = vector.shape_cast %6 : vector<128xf32> to vector<128x1xf32>
    %cst_6 = arith.constant 3.200000e+01 : f32
    %8 = vector.broadcast %cst_6 : f32 to vector<128x1xf32>
    %9 = arith.divf %4, %8 : vector<128x1xf32>
    %cst_7 = arith.constant 3.200000e+01 : f32
    %10 = vector.broadcast %cst_7 : f32 to vector<128x1xf32>
    %11 = arith.divf %7, %10 : vector<128x1xf32>
    %12 = arith.mulf %9, %9 : vector<128x1xf32>
    %13 = arith.subf %11, %12 : vector<128x1xf32>
    %14 = vector.broadcast %9 : vector<128x1xf32> to vector<128x128xf32>
    %15 = arith.subf %0, %14 : vector<128x128xf32>
    %cst_8 = arith.constant 9.99999974E-6 : f32
    %16 = vector.broadcast %cst_8 : f32 to vector<128x1xf32>
    %17 = arith.addf %13, %16 : vector<128x1xf32>
    %18 = math.rsqrt %17 : vector<128x1xf32>
    %19 = vector.broadcast %18 : vector<128x1xf32> to vector<128x128xf32>
    %20 = arith.mulf %15, %19 : vector<128x128xf32>
    %21 = vector.broadcast %1 : vector<1x128xf32> to vector<128x128xf32>
    %22 = arith.mulf %20, %21 : vector<128x128xf32>
    %23 = vector.broadcast %2 : vector<1x128xf32> to vector<128x128xf32>
    %24 = arith.addf %22, %23 : vector<128x128xf32>
    %c0_9 = arith.constant 0 : index
    %c0_10 = arith.constant 0 : index
    %25 = vector.load %arg4[%c0_9, %c0_10] : memref<128x128xf32, #tpu.memory_space<vmem>>, vector<128x128xf32>
    %cst_11 = arith.constant dense<0.000000e+00> : vector<128x128xf32>
    %26 = tpu.matmul %24, %25, %cst_11 {dimension_numbers = #tpu.dot_dimension_numbers<[1], [0], [0], [1], [0, 0, 1, 1], [], []>} : vector<128x128xf32>, vector<128x128xf32>, vector<128x128xf32> -> vector<128x128xf32>
    %c0_12 = arith.constant 0 : index
    %c0_13 = arith.constant 0 : index
    %27 = vector.load %arg5[%c0_12, %c0_13] : memref<1x128xf32, #tpu.memory_space<vmem>>, vector<1x128xf32>
    %28 = vector.broadcast %27 : vector<1x128xf32> to vector<128x128xf32>
    %29 = arith.addf %26, %28 : vector<128x128xf32>
    %cst_14 = arith.constant 5.000000e-01 : f32
    %30 = vector.broadcast %cst_14 : f32 to vector<128x128xf32>
    %31 = arith.mulf %30, %29 : vector<128x128xf32>
    %cst_15 = arith.constant 0.707106769 : f32
    %32 = vector.broadcast %cst_15 : f32 to vector<128x128xf32>
    %33 = arith.mulf %29, %32 : vector<128x128xf32>
    %34 = math.erf %33 : vector<128x128xf32>
    %cst_16 = arith.constant 1.000000e+00 : f32
    %35 = vector.broadcast %cst_16 : f32 to vector<128x128xf32>
    %36 = arith.addf %35, %34 : vector<128x128xf32>
    %37 = arith.mulf %31, %36 : vector<128x128xf32>
    %c0_17 = arith.constant 0 : index
    %c0_18 = arith.constant 0 : index
    %38 = vector.load %arg6[%c0_17, %c0_18] : memref<128x128xf32, #tpu.memory_space<vmem>>, vector<128x128xf32>
    %cst_19 = arith.constant dense<0.000000e+00> : vector<128x128xf32>
    %39 = tpu.matmul %37, %38, %cst_19 {dimension_numbers = #tpu.dot_dimension_numbers<[1], [0], [0], [1], [0, 0, 1, 1], [], []>} : vector<128x128xf32>, vector<128x128xf32>, vector<128x128xf32> -> vector<128x128xf32>
    %c0_20 = arith.constant 0 : index
    %c0_21 = arith.constant 0 : index
    %40 = vector.load %arg7[%c0_20, %c0_21] : memref<1x128xf32, #tpu.memory_space<vmem>>, vector<1x128xf32>
    %41 = vector.broadcast %40 : vector<1x128xf32> to vector<128x128xf32>
    %42 = arith.addf %39, %41 : vector<128x128xf32>
    %c0_22 = arith.constant 0 : index
    %c0_23 = arith.constant 0 : index
    %43 = vector.load %arg8[%c0_22, %c0_23] : memref<128x128xf32, #tpu.memory_space<vmem>>, vector<128x128xf32>
    tpu.vector_store %arg8[%c0_22, %c0_23], %42 {strides = array<i32>} : memref<128x128xf32, #tpu.memory_space<vmem>>, vector<128x128xf32>,
    return
  }
  func.func @transform_0(%arg0: i32) -> (i32, i32) {
    %c0_i32 = arith.constant 0 : i32
    %c0_i32_0 = arith.constant 0 : i32
    return %arg0, %c0_i32 : i32, i32
  }
  func.func @transform_1(%arg0: i32) -> (i32, i32) {
    %c0_i32 = arith.constant 0 : i32
    %c0_i32_0 = arith.constant 0 : i32
    %c0_i32_1 = arith.constant 0 : i32
    return %c0_i32, %c0_i32_0 : i32, i32
  }
  func.func @transform_2(%arg0: i32) -> (i32, i32) {
    %c0_i32 = arith.constant 0 : i32
    %c0_i32_0 = arith.constant 0 : i32
    %c0_i32_1 = arith.constant 0 : i32
    return %c0_i32, %c0_i32_0 : i32, i32
  }
  func.func @transform_3(%arg0: i32) -> (i32, i32) {
    %c0_i32 = arith.constant 0 : i32
    %c0_i32_0 = arith.constant 0 : i32
    %c0_i32_1 = arith.constant 0 : i32
    return %c0_i32, %c0_i32_0 : i32, i32
  }
  func.func @transform_4(%arg0: i32) -> (i32, i32) {
    %c0_i32 = arith.constant 0 : i32
    %c0_i32_0 = arith.constant 0 : i32
    %c0_i32_1 = arith.constant 0 : i32
    return %c0_i32, %c0_i32_0 : i32, i32
  }
  func.func @transform_5(%arg0: i32) -> (i32, i32) {
    %c0_i32 = arith.constant 0 : i32
    %c0_i32_0 = arith.constant 0 : i32
    %c0_i32_1 = arith.constant 0 : i32
    return %c0_i32, %c0_i32_0 : i32, i32
  }
  func.func @transform_6(%arg0: i32) -> (i32, i32) {
    %c0_i32 = arith.constant 0 : i32
    %c0_i32_0 = arith.constant 0 : i32
    %c0_i32_1 = arith.constant 0 : i32
    return %c0_i32, %c0_i32_0 : i32, i32
  }
  func.func @transform_7(%arg0: i32) -> (i32, i32) {
    %c0_i32 = arith.constant 0 : i32
    %c0_i32_0 = arith.constant 0 : i32
    return %arg0, %c0_i32 : i32, i32
  }
}

</mosaic_0001>

<bundles_post_ra>
// kernel: block_forward.10
= control target key start
LH: loop header
LB: loop body
LE: loop exit
PB: predicated region body
PF: predicated region fallthrough
CT: control target
= control target key end

     0   :  { %v486_v37 = vmov 32.0   ;;  %s1052_s0 = inlined_call_operand.vmem [shape: f32[128,128], index: 0, kind: input, shape index: {}]   ;;  %s1053_s1 = inlined_call_operand.vmem [shape: f32[1,128], index: 1, kind: input, shape index: {}]   ;;  %s1054_s2 = inlined_call_operand.vmem [shape: f32[1,128], index: 2, kind: input, shape index: {}]   ;;  %s1055_s3 = inlined_call_operand.vmem [shape: f32[128,128], index: 3, kind: output, shape index: {}]  }
   0x1   :  { %v510_v0 = vld [vmem:[%s1052_s0 + $0x20] sm:$0xff]  ;;  %v515_v1 = vld [vmem:[%s1052_s0 + $0x10] sm:$0xff]  ;;  %v528_v3 = vld [vmem:[%s1052_s0 + $0x28] sm:$0xff]  ;;  %452 = vrcp.f32 %v486_v37 }
   0x2   :  { %v520_v2 = vld [vmem:[%s1052_s0] sm:$0xff]  ;;  %40 = vadd.xlane.f32.xlu2 %v510_v0  ;;  %36 = vadd.xlane.f32.xlu1 %v515_v1  ;;  %v533_v4 = vld [vmem:[%s1052_s0 + $0x18] sm:$0xff]  ;;  %v538_v5 = vld [vmem:[%s1052_s0 + $0x8] sm:$0xff]  ;;  %v68_v18 = vmul.f32 %v510_v0, %v510_v0  ;;  %v66_v20 = vmul.f32 %v515_v1, %v515_v1  ;;  %v69_v23 = vmul.f32 %v528_v3, %v528_v3 }
   0x3   :  { %32 = vadd.xlane.f32.xlu0 %v520_v2  ;;  %v546_v6 = vld [vmem:[%s1052_s0 + $0x40] sm:$0xff]  ;;  %v551_v7 = vld [vmem:[%s1052_s0 + $0x38] sm:$0xff]  ;;  %v556_v8 = vld [vmem:[%s1052_s0 + $0x30] sm:$0xff]  ;;  %v65_v15 = vmul.f32 %v538_v5, %v538_v5  ;;  %v64_v16 = vmul.f32 %v520_v2, %v520_v2  ;;  %v67_v19 = vmul.f32 %v533_v4, %v533_v4 }
   0x4   :  { %v564_v9 = vld [vmem:[%s1052_s0 + $0x58] sm:$0xff]  ;;  %v569_v10 = vld [vmem:[%s1052_s0 + $0x50] sm:$0xff]  ;;  %v574_v11 = vld [vmem:[%s1052_s0 + $0x48] sm:$0xff]  ;;  %v71_v21 = vmul.f32 %v551_v7, %v551_v7  ;;  %v70_v22 = vmul.f32 %v556_v8, %v556_v8  ;;  %v72_v26 = vmul.f32 %v546_v6, %v546_v6 }
   0x5   :  { %v582_v12 = vld [vmem:[%s1052_s0 + $0x70] sm:$0xff]  ;;  %v587_v13 = vld [vmem:[%s1052_s0 + $0x68] sm:$0xff]  ;;  %v592_v14 = vld [vmem:[%s1052_s0 + $0x60] sm:$0xff]  ;;  %v74_v24 = vmul.f32 %v569_v10, %v569_v10  ;;  %v73_v25 = vmul.f32 %v574_v11, %v574_v11  ;;  %v75_v29 = vmul.f32 %v564_v9, %v564_v9 }
   0x6   :  { %1058 = vst [vmem:[#allocation2_spill] sm:$0xff] %v582_v12  ;;  %v604_v17 = vld [vmem:[%s1052_s0 + $0x78] sm:$0xff]  ;;  %v77_v27 = vmul.f32 %v587_v13, %v587_v13  ;;  %v76_v28 = vmul.f32 %v592_v14, %v592_v14  ;;  %v78_v31 = vmul.f32 %v582_v12, %v582_v12 }
   0x7   :  { %1059 = vst [vmem:[#allocation3_spill] sm:$0xff] %v604_v17  ;;  %v79_v30 = vmul.f32 %v604_v17, %v604_v17  ;;  %v453_v39 = vpop.eup %452 }
   0x8   :  { %v113_v43 = vmul.f32 32.0, %v453_v39  ;;  %vm117_vm0 = vweird.f32 %v453_v39 }
   0xa   :  { %42 = vadd.xlane.f32.xlu2 %v528_v3  ;;  %38 = vadd.xlane.f32.xlu1 %v533_v4  ;;  %v114_v44 = vsub.f32 1.0, %v113_v43 }
   0xb   :  { %34 = vadd.xlane.f32.xlu0 %v538_v5 }
   0xc   :  { %v115_v48 = vmul.f32 %v453_v39, %v114_v44 }
   0xe   :  { %v116_v49 = vadd.f32 %v453_v39, %v115_v48 }
  0x10   :  { %v639_v53 = vsel %vm117_vm0, %v453_v39, %v116_v49 }
  0x12   :  { %48 = vadd.xlane.f32.xlu2 %v546_v6  ;;  %46 = vadd.xlane.f32.xlu1 %v551_v7 }
  0x13   :  { %44 = vadd.xlane.f32.xlu0 %v556_v8 }
  0x1a   :  { %54 = vadd.xlane.f32.xlu2 %v564_v9  ;;  %52 = vadd.xlane.f32.xlu1 %v569_v10 }
  0x1b   :  { %50 = vadd.xlane.f32.xlu0 %v574_v11 }
  0x22   :  { %60 = vadd.xlane.f32.xlu2 %v582_v12  ;;  %58 = vadd.xlane.f32.xlu1 %v587_v13 }
  0x23   :  { %56 = vadd.xlane.f32.xlu0 %v592_v14 }
  0x2a   :  { %82 = vadd.xlane.f32.xlu2 %v65_v15  ;;  %80 = vadd.xlane.f32.xlu1 %v64_v16 }
  0x2b   :  { %62 = vadd.xlane.f32.xlu0 %v604_v17 }
  0x32   :  { %88 = vadd.xlane.f32.xlu2 %v68_v18  ;;  %86 = vadd.xlane.f32.xlu1 %v67_v19 }
  0x33   :  { %84 = vadd.xlane.f32.xlu0 %v66_v20 }
  0x3a   :  { %94 = vadd.xlane.f32.xlu2 %v71_v21  ;;  %92 = vadd.xlane.f32.xlu1 %v70_v22 }
  0x3b   :  { %90 = vadd.xlane.f32.xlu0 %v69_v23 }
  0x42   :  { %100 = vadd.xlane.f32.xlu2 %v74_v24  ;;  %98 = vadd.xlane.f32.xlu1 %v73_v25 }
  0x43   :  { %96 = vadd.xlane.f32.xlu0 %v72_v26 }
  0x4a   :  { %106 = vadd.xlane.f32.xlu2 %v77_v27  ;;  %104 = vadd.xlane.f32.xlu1 %v76_v28 }
  0x4b   :  { %102 = vadd.xlane.f32.xlu0 %v75_v29 }
  0x52   :  { %110 = vadd.xlane.f32.xlu1 %v79_v30 }
  0x53   :  { %108 = vadd.xlane.f32.xlu0 %v78_v31 }
  0x75   :  { %v41_v32 = vpop.xlane.xlu2 %40  ;;  %v37_v33 = vpop.xlane.xlu1 %36 }
  0x76   :  { %v33_v34 = vpop.xlane.xlu0 %32  ;;  %v656_v63 = vmul.f32 %v639_v53, %v41_v32  ;;  %v659_v15 = vmul.f32 %v639_v53, %v37_v33 }
  0x77   :  { %v642_v54 = vmul.f32 %v639_v53, %v33_v34 }
  0x78   :  { %v155_v23 = vmul.f32 %v656_v63, %v656_v63  ;;  %v153_v25 = vmul.f32 %v659_v15, %v659_v15 }
  0x79   :  { %v151_v58 = vmul.f32 %v642_v54, %v642_v54 }
  0x7d   :  { %v43_v35 = vpop.xlane.xlu2 %42  ;;  %v39_v36 = vpop.xlane.xlu1 %38 }
  0x7e   :  { %v35_v38 = vpop.xlane.xlu0 %34  ;;  %v662_v19 = vmul.f32 %v639_v53, %v43_v35  ;;  %v665_v20 = vmul.f32 %v639_v53, %v39_v36 }
  0x7f   :  { %v645_v55 = vmul.f32 %v639_v53, %v35_v38 }
  0x80   :  { %v684_v28 = vmul.f32 %v662_v19, %v662_v19  ;;  %v154_v32 = vmul.f32 %v665_v20, %v665_v20 }
  0x81   :  { %v152_v59 = vmul.f32 %v645_v55, %v645_v55 }
  0x85   :  { %v49_v40 = vpop.xlane.xlu2 %48  ;;  %v47_v41 = vpop.xlane.xlu1 %46 }
  0x86   :  { %v45_v42 = vpop.xlane.xlu0 %44  ;;  %v687_v29 = vmul.f32 %v639_v53, %v49_v40  ;;  %v693_v33 = vmul.f32 %v639_v53, %v47_v41  ;;  %v184_v41 = vsub.f32 %v538_v5, %v645_v55 }
  0x87   :  { %v702_v39 = vmul.f32 %v639_v53, %v45_v42 }
  0x88   :  { %v712_v49 = vmul.f32 %v687_v29, %v687_v29 }
  0x8d   :  { %v55_v45 = vpop.xlane.xlu2 %54  ;;  %v53_v46 = vpop.xlane.xlu1 %52 }
  0x8e   :  { %v51_v47 = vpop.xlane.xlu0 %50  ;;  %v708_v43 = vmul.f32 %v639_v53, %v55_v45 }
  0x8f   :  { %v718_v42 = vmul.f32 %v639_v53, %v51_v47 }
  0x95   :  { %v635_v50 = vpop.xlane.xlu2 %60  ;;  %v59_v51 = vpop.xlane.xlu1 %58 }
  0x96   :  { %v637_v52 = vpop.xlane.xlu0 %56  ;;  %v758_v47 = vmul.f32 %v639_v53, %v635_v50 }
  0x97   :  { %v762_v37 = vmul.f32 %v639_v53, %v637_v52 }
  0x9d   :  { %v83_v56 = vpop.xlane.xlu2 %82  ;;  %v81_v57 = vpop.xlane.xlu1 %80 }
  0x9e   :  { %v136_v60 = vmul.f32 %v639_v53, %v83_v56  ;;  %v652_v61 = vpop.xlane.xlu0 %62  ;;  %v135_v62 = vmul.f32 %v639_v53, %v81_v57  ;;  %v715_v56 = vmul.f32 %v639_v53, %v53_v46  ;;  %v157_v46 = vmul.f32 %v702_v39, %v702_v39 }
  0xa0   :  { %v168_v16 = vsub.f32 %v136_v60, %v152_v59  ;;  %v167_v18 = vsub.f32 %v135_v62, %v151_v58  ;;  %v158_v59 = vmul.f32 %v693_v33, %v693_v33 }
  0xa2   :  { %v667_v21 = vadd.f32 1e-05, %v168_v16  ;;  %v669_v22 = vadd.f32 1e-05, %v167_v18 }
  0xa4   :  { %454 = vrsqrt.f32 %v667_v21  ;;  %vm231_vm1 = vweird.f32 %v667_v21  ;;  %vm221_vm3 = vweird.f32 %v669_v22 }
  0xa5   :  { %456 = vrsqrt.f32 %v669_v22  ;;  %v89_v30 = vpop.xlane.xlu2 %88  ;;  %v87_v31 = vpop.xlane.xlu1 %86 }
  0xa6   :  { %v139_v34 = vmul.f32 %v639_v53, %v89_v30  ;;  %v85_v35 = vpop.xlane.xlu0 %84  ;;  %v138_v36 = vmul.f32 %v639_v53, %v87_v31  ;;  %v740_v30 = vmul.f32 %v639_v53, %v59_v51 }
  0xa7   :  { %v137_v40 = vmul.f32 %v639_v53, %v85_v35 }
  0xa8   :  { %v171_v44 = vsub.f32 %v139_v34, %v155_v23  ;;  %v170_v48 = vsub.f32 %v138_v36, %v154_v32  ;;  %v746_v32 = vmul.f32 %v715_v56, %v715_v56  ;;  %v750_v34 = vmul.f32 %v718_v42, %v718_v42 }
  0xa9   :  { %v169_v57 = vsub.f32 %v137_v40, %v153_v25  ;;  %v737_v25 = vmul.f32 %v708_v43, %v708_v43 }
  0xaa   :  { %v455_v58 = vpop.eup %454  ;;  %v724_v60 = vadd.f32 1e-05, %v171_v44  ;;  %v726_v62 = vadd.f32 1e-05, %v170_v48 }
  0xab   :  { %v457_v16 = vpop.eup %456  ;;  %v226_v18 = vmul.f32 %v455_v58, %v667_v21  ;;  %v733_v23 = vadd.f32 1e-05, %v169_v57  ;;  %vm232_vm2 = vweird.f32 %v455_v58 }
  0xac   :  { %v216_v31 = vmul.f32 %v457_v16, %v669_v22  ;;  %458 = vrsqrt.f32 %v724_v60  ;;  %vm222_vm4 = vweird.f32 %v457_v16  ;;  %vm261_vm5 = vweird.f32 %v724_v60  ;;  %vm233_vm6 = vmor %vm231_vm1, %vm232_vm2 }
  0xad   :  { %v227_v35 = vmul.f32 %v455_v58, %v226_v18  ;;  %460 = vrsqrt.f32 %v733_v23  ;;  %v95_v36 = vpop.xlane.xlu2 %94  ;;  %v93_v40 = vpop.xlane.xlu1 %92  ;;  %vm223_vm7 = vmor %vm221_vm3, %vm222_vm4  ;;  %vm241_vm8 = vweird.f32 %v733_v23  ;;  %vm251_vm13 = vweird.f32 %v726_v62 }
  0xae   :  { %v217_v44 = vmul.f32 %v457_v16, %v216_v31  ;;  %462 = vrsqrt.f32 %v726_v62  ;;  %v142_v51 = vmul.f32 %v639_v53, %v95_v36  ;;  %v91_v48 = vpop.xlane.xlu0 %90  ;;  %v141_v57 = vmul.f32 %v639_v53, %v93_v40 }
  0xaf   :  { %v228_v18 = vmul.f32 0.5, %v227_v35  ;;  %v140_v45 = vmul.f32 %v639_v53, %v91_v48  ;;  %v767_v31 = vmul.f32 %v740_v30, %v740_v30 }
  0xb0   :  { %v218_v38 = vmul.f32 0.5, %v217_v44  ;;  %v174_v36 = vsub.f32 %v142_v51, %v158_v59  ;;  %v173_v26 = vsub.f32 %v141_v57, %v157_v46 }
  0xb1   :  { %v229_v24 = vsub.f32 1.5, %v228_v18  ;;  %v172_v50 = vsub.f32 %v140_v45, %v684_v28  ;;  %v788_v28 = vld [vmem:[%s1053_s1] ss:$0 sm:$0xff] }
  0xb2   :  { %v771_v40 = vpop.eup %458  ;;  %v219_v52 = vsub.f32 1.5, %v218_v38  ;;  %v774_v35 = vadd.f32 1e-05, %v174_v36  ;;  %v795_v45 = vadd.f32 1e-05, %v173_v26  ;;  %v1060_v36 = vsub.f32 %v520_v2, %v642_v54 }
  0xb3   :  { %v776_v48 = vpop.eup %460  ;;  %v230_v27 = vmul.f32 %v455_v58, %v229_v24  ;;  %v256_v59 = vmul.f32 %v771_v40, %v724_v60  ;;  %v781_v46 = vadd.f32 1e-05, %v172_v50  ;;  %v807_v18 = vld [vmem:[%s1054_s2] ss:$0 sm:$0xff]  ;;  %vm262_vm9 = vweird.f32 %v771_v40 }
  0xb4   :  { %v783_v44 = vpop.eup %462  ;;  %v220_v38 = vmul.f32 %v457_v16, %v219_v52  ;;  %v236_v24 = vmul.f32 %v776_v48, %v733_v23  ;;  %464 = vrsqrt.f32 %v774_v35  ;;  %vm242_vm10 = vweird.f32 %v776_v48  ;;  %vm263_vm12 = vmor %vm261_vm5, %vm262_vm9 }
  0xb5   :  { %v234_v51 = vsel %vm233_vm6, %v455_v58, %v230_v27  ;;  %v257_v57 = vmul.f32 %v771_v40, %v256_v59  ;;  %v246_v21 = vmul.f32 %v783_v44, %v726_v62  ;;  %466 = vrsqrt.f32 %v781_v46  ;;  %v101_v17 = vpop.xlane.xlu2 %100  ;;  %v99_v55 = vpop.xlane.xlu1 %98  ;;  %vm243_vm0 = vmor %vm241_vm8, %vm242_vm10 }
  0xb6   :  { %v376_v26 = vmul.f32 %v234_v51, %v184_v41  ;;  %v224_v27 = vsel %vm223_vm7, %v457_v16, %v220_v38  ;;  %v237_v22 = vmul.f32 %v776_v48, %v236_v24  ;;  %v97_v58 = vpop.xlane.xlu0 %96  ;;  %468 = vrsqrt.f32 %v795_v45 }
  0xb7   :  { %v375_v50 = vmul.f32 %v224_v27, %v1060_v36  ;;  %v258_v52 = vmul.f32 0.5, %v257_v57  ;;  %v247_v59 = vmul.f32 %v783_v44, %v246_v21  ;;  %vm252_vm11 = vweird.f32 %v783_v44 }
  0xb8   :  { %v395_v12 = vmul.f32 %v788_v28, %v376_v26  ;;  %v238_v5 = vmul.f32 0.5, %v237_v22  ;;  %v145_v51 = vmul.f32 %v639_v53, %v101_v17  ;;  %v143_v57 = vmul.f32 %v639_v53, %v97_v58  ;;  %vm253_vm1 = vmor %vm251_vm13, %vm252_vm11 }
  0xb9   :  { %v394_v41 = vmul.f32 %v788_v28, %v375_v50  ;;  %v259_v16 = vsub.f32 1.5, %v258_v52  ;;  %v248_v38 = vmul.f32 0.5, %v247_v59  ;;  %vm291_vm14 = vweird.f32 %v774_v35 }
  0xba   :  { %v824_v2 = vpop.eup %464  ;;  %v414_v54 = vadd.f32 %v807_v18, %v395_v12  ;;  %v239_v24 = vsub.f32 1.5, %v238_v5  ;;  %v177_v36 = vsub.f32 %v145_v51, %v746_v32  ;;  %v1061_v52 = vsub.f32 %v510_v0, %v656_v63 }
  0xbb   :  { %v413_v21 = vadd.f32 %v807_v18, %v394_v41  ;;  %v260_v26 = vmul.f32 %v771_v40, %v259_v16  ;;  %v249_v27 = vsub.f32 1.5, %v248_v38  ;;  %v286_v22 = vmul.f32 %v824_v2, %v774_v35  ;;  %v844_v17 = vpop.eup %466 }
  0xbc   :  { %430 = vst [vmem:[%s1055_s3 + $0x8] sm:$0xff] %v414_v54  ;;  %v240_v12 = vmul.f32 %v776_v48, %v239_v24  ;;  %vm292_vm15 = vweird.f32 %v824_v2  ;;  %v857_v50 = vpop.eup %468  ;;  %v266_v23 = vmul.f32 %v844_v17, %v781_v46  ;;  %vm271_vm2 = vweird.f32 %v781_v46 }
  0xbd   :  { %429 = vst [vmem:[%s1055_s3] sm:$0xff] %v413_v21  ;;  %v264_v58 = vsel %vm263_vm12, %v771_v40, %v260_v26  ;;  %v250_v60 = vmul.f32 %v783_v44, %v249_v27  ;;  %v287_v62 = vmul.f32 %v824_v2, %v286_v22  ;;  %v175_v40 = vsub.f32 %v143_v57, %v712_v49  ;;  %vm293_vm3 = vmor %vm291_vm14, %vm292_vm15 }
  0xbe   :  { %v379_v59 = vmul.f32 %v264_v58, %v1061_v52  ;;  %v244_v5 = vsel %vm243_vm0, %v776_v48, %v240_v12  ;;  %v103_v41 = vpop.xlane.xlu0 %102  ;;  %v1062_v32 = vsub.f32 %v515_v1, %v659_v15  ;;  %v276_v48 = vmul.f32 %v857_v50, %v795_v45  ;;  %v107_v58 = vpop.xlane.xlu2 %106 }
  0xbf   :  { %v254_v0 = vsel %vm253_vm1, %v783_v44, %v250_v60  ;;  %v288_v63 = vmul.f32 0.5, %v287_v62  ;;  %v1063_v54 = vsub.f32 %v533_v4, %v665_v20  ;;  %v267_v51 = vmul.f32 %v844_v17, %v266_v23  ;;  %v105_v4 = vpop.xlane.xlu1 %104 }
  0xc0   :  { %v377_v16 = vmul.f32 %v244_v5, %v1062_v32  ;;  %v398_v38 = vmul.f32 %v788_v28, %v379_v59  ;;  %v144_v49 = vmul.f32 %v639_v53, %v99_v55  ;;  %v277_v15 = vmul.f32 %v857_v50, %v276_v48 }
  0xc1   :  { %v378_v24 = vmul.f32 %v254_v0, %v1063_v54  ;;  %v289_v1 = vsub.f32 1.5, %v288_v63  ;;  %v883_v44 = vadd.f32 1e-05, %v177_v36  ;;  %v268_v27 = vmul.f32 0.5, %v267_v51 }
  0xc2   :  { %v396_v57 = vmul.f32 %v788_v28, %v377_v16  ;;  %v417_v21 = vadd.f32 %v807_v18, %v398_v38  ;;  %v887_v22 = vadd.f32 1e-05, %v175_v40  ;;  %v278_v55 = vmul.f32 0.5, %v277_v15 }
  0xc3   :  { %v397_v26 = vmul.f32 %v788_v28, %v378_v24  ;;  %v290_v12 = vmul.f32 %v824_v2, %v289_v1  ;;  %470 = vrsqrt.f32 %v883_v44  ;;  %v269_v62 = vsub.f32 1.5, %v268_v27 }
  0xc4   :  { %v415_v20 = vadd.f32 %v807_v18, %v396_v57  ;;  %433 = vst [vmem:[%s1055_s3 + $0x20] sm:$0xff] %v417_v21  ;;  %vm272_vm4 = vweird.f32 %v844_v17  ;;  %472 = vrsqrt.f32 %v887_v22  ;;  %v279_v52 = vsub.f32 1.5, %v278_v55 }
  0xc5   :  { %v416_v60 = vadd.f32 %v807_v18, %v397_v26  ;;  %v294_v36 = vsel %vm293_vm3, %v824_v2, %v290_v12  ;;  %vm282_vm5 = vweird.f32 %v857_v50  ;;  %v176_v59 = vsub.f32 %v144_v49, %v750_v34  ;;  %vm273_vm6 = vmor %vm271_vm2, %vm272_vm4 }
  0xc6   :  { %431 = vst [vmem:[%s1055_s3 + $0x10] sm:$0xff] %v415_v20  ;;  %v1064_v35 = vsub.f32 %v551_v7, %v693_v33  ;;  %v270_v23 = vmul.f32 %v844_v17, %v269_v62  ;;  %v148_v40 = vmul.f32 %v639_v53, %v107_v58  ;;  %v146_v32 = vmul.f32 %v639_v53, %v103_v41  ;;  %v109_v63 = vpop.xlane.xlu0 %108 }
  0xc7   :  { %432 = vst [vmem:[%s1055_s3 + $0x18] sm:$0xff] %v416_v60  ;;  %v280_v2 = vmul.f32 %v857_v50, %v279_v52  ;;  %vm281_vm7 = vweird.f32 %v795_v45  ;;  %v921_v34 = vadd.f32 1e-05, %v176_v59  ;;  %v147_v16 = vmul.f32 %v639_v53, %v105_v4 }
  0xc8   :  { %v382_v5 = vmul.f32 %v294_v36, %v1064_v35  ;;  %v274_v33 = vsel %vm273_vm6, %v844_v17, %v270_v23  ;;  %vm283_vm8 = vmor %vm281_vm7, %vm282_vm5  ;;  %v180_v0 = vsub.f32 %v148_v40, %v767_v31  ;;  %v178_v41 = vsub.f32 %v146_v32, %v737_v25 }
  0xc9   :  { %v471_v46 = vpop.eup %470  ;;  %v163_v48 = vmul.f32 %v762_v37, %v762_v37  ;;  %v1065_v45 = vsub.f32 %v528_v3, %v662_v19  ;;  %v284_v54 = vsel %vm283_vm8, %v857_v50, %v280_v2  ;;  %474 = vrsqrt.f32 %v921_v34 }
  0xca   :  { %v401_v7 = vmul.f32 %v788_v28, %v382_v5  ;;  %v473_v24 = vpop.eup %472  ;;  %v937_v17 = vmul.f32 %v639_v53, %v652_v61  ;;  %v1066_v31 = vsub.f32 %v556_v8, %v702_v39  ;;  %v316_v49 = vmul.f32 %v471_v46, %v883_v44  ;;  %v111_v39 = vpop.xlane.xlu1 %110 }
  0xcb   :  { %v380_v38 = vmul.f32 %v274_v33, %v1065_v45  ;;  %v296_v19 = vmul.f32 %v473_v24, %v887_v22  ;;  %v946_v50 = vadd.f32 1e-05, %v180_v0  ;;  %v149_v57 = vmul.f32 %v639_v53, %v109_v63 }
  0xcc   :  { %v420_v25 = vadd.f32 %v807_v18, %v401_v7  ;;  %v381_v51 = vmul.f32 %v284_v54, %v1066_v31  ;;  %v317_v1 = vmul.f32 %v471_v46, %v316_v49  ;;  %v953_v15 = vadd.f32 1e-05, %v178_v41 }
  0xcd   :  { %v399_v3 = vmul.f32 %v788_v28, %v380_v38  ;;  %v179_v8 = vsub.f32 %v147_v16, %v163_v48  ;;  %v165_v21 = vmul.f32 %v758_v47, %v758_v47  ;;  %v297_v27 = vmul.f32 %v473_v24, %v296_v19 }
  0xce   :  { %436 = vst [vmem:[%s1055_s3 + $0x38] sm:$0xff] %v420_v25  ;;  %v400_v61 = vmul.f32 %v788_v28, %v381_v51  ;;  %476 = vrsqrt.f32 %v946_v50  ;;  %v318_v20 = vmul.f32 0.5, %v317_v1  ;;  %v150_v62 = vmul.f32 %v639_v53, %v111_v39 }
  0xcf   :  { %v418_v26 = vadd.f32 %v807_v18, %v399_v3  ;;  %478 = vrsqrt.f32 %v953_v15  ;;  %v475_v12 = vpop.eup %474  ;;  %v298_v55 = vmul.f32 0.5, %v297_v27  ;;  %v964_v58 = vadd.f32 1e-05, %v179_v8 }
  0xd0   :  { %v419_v4 = vadd.f32 %v807_v18, %v400_v61  ;;  %v181_v60 = vsub.f32 %v149_v57, %v165_v21  ;;  %v166_v36 = vmul.f32 %v937_v17, %v937_v17  ;;  %v319_v52 = vsub.f32 1.5, %v318_v20 }
  0xd1   :  { %434 = vst [vmem:[%s1055_s3 + $0x28] sm:$0xff] %v418_v26  ;;  %vm322_vm9 = vweird.f32 %v471_v46  ;;  %v306_v59 = vmul.f32 %v475_v12, %v921_v34  ;;  %v299_v35 = vsub.f32 1.5, %v298_v55  ;;  %vm302_vm10 = vweird.f32 %v473_v24 }
  0xd2   :  { %435 = vst [vmem:[%s1055_s3 + $0x30] sm:$0xff] %v419_v4  ;;  %480 = vrsqrt.f32 %v964_v58  ;;  %v974_v5 = vadd.f32 1e-05, %v181_v60  ;;  %v320_v23 = vmul.f32 %v471_v46, %v319_v52  ;;  %vm321_vm11 = vweird.f32 %v883_v44 }
  0xd3   :  { %v307_v53 = vmul.f32 %v475_v12, %v306_v59  ;;  %v182_v40 = vsub.f32 %v150_v62, %v166_v36  ;;  %v193_v2 = vsub.f32 %v569_v10, %v715_v56  ;;  %vm323_vm12 = vmor %vm321_vm11, %vm322_vm9  ;;  %v300_v16 = vmul.f32 %v473_v24, %v299_v35 }
  0xd4   :  { %v477_v32 = vpop.eup %476  ;;  %vm301_vm13 = vweird.f32 %v887_v22  ;;  %482 = vrsqrt.f32 %v974_v5  ;;  %v191_v33 = vsub.f32 %v546_v6, %v687_v29  ;;  %v324_v0 = vsel %vm323_vm12, %v471_v46, %v320_v23 }
  0xd5   :  { %v479_v7 = vpop.eup %478  ;;  %vm303_vm14 = vmor %vm301_vm13, %vm302_vm10  ;;  %v308_v44 = vmul.f32 0.5, %v307_v53  ;;  %v346_v41 = vmul.f32 %v477_v32, %v946_v50  ;;  %v385_v63 = vmul.f32 %v324_v0, %v193_v2  ;;  %vm312_vm15 = vweird.f32 %v475_v12 }
  0xd6   :  { %v304_v48 = vsel %vm303_vm14, %v473_v24, %v300_v16  ;;  %v326_v10 = vmul.f32 %v479_v7, %v953_v15  ;;  %v986_v38 = vadd.f32 1e-05, %v182_v40  ;;  %v192_v6 = vsub.f32 %v574_v11, %v718_v42 }
  0xd7   :  { %v383_v56 = vmul.f32 %v304_v48, %v191_v33  ;;  %v309_v45 = vsub.f32 1.5, %v308_v44  ;;  %v347_v22 = vmul.f32 %v477_v32, %v346_v41  ;;  %v404_v29 = vmul.f32 %v788_v28, %v385_v63  ;;  %v1068_v48 = vld [vmem:[#allocation3_spill] sm:$0xff] }
  0xd8   :  { %v481_v54 = vpop.eup %480  ;;  %vm311_vm0 = vweird.f32 %v921_v34  ;;  %v327_v46 = vmul.f32 %v479_v7, %v326_v10  ;;  %vm352_vm2 = vweird.f32 %v477_v32  ;;  %484 = vrsqrt.f32 %v986_v38 }
  0xd9   :  { %v402_v25 = vmul.f32 %v788_v28, %v383_v56  ;;  %v310_v24 = vmul.f32 %v475_v12, %v309_v45  ;;  %v348_v31 = vmul.f32 0.5, %v347_v22  ;;  %v336_v51 = vmul.f32 %v481_v54, %v964_v58  ;;  %vm313_vm1 = vmor %vm311_vm0, %vm312_vm15 }
  0xda   :  { %v483_v49 = vpop.eup %482  ;;  %v423_v3 = vadd.f32 %v807_v18, %v404_v29  ;;  %v328_v19 = vmul.f32 0.5, %v327_v46  ;;  %vm332_vm3 = vweird.f32 %v479_v7  ;;  %v196_v39 = vsub.f32 %v587_v13, %v740_v30 }
  0xdb   :  { %v421_v11 = vadd.f32 %v807_v18, %v402_v25  ;;  %v314_v42 = vsel %vm313_vm1, %v475_v12, %v310_v24  ;;  %v349_v34 = vsub.f32 1.5, %v348_v31  ;;  %v337_v57 = vmul.f32 %v481_v54, %v336_v51 }
  0xdc   :  { %439 = vst [vmem:[%s1055_s3 + $0x50] sm:$0xff] %v423_v3  ;;  %v384_v61 = vmul.f32 %v314_v42, %v192_v6  ;;  %v329_v1 = vsub.f32 1.5, %v328_v19  ;;  %v356_v8 = vmul.f32 %v483_v49, %v974_v5  ;;  %vm351_vm4 = vweird.f32 %v946_v50 }
  0xdd   :  { %437 = vst [vmem:[%s1055_s3 + $0x40] sm:$0xff] %v421_v11  ;;  %v350_v21 = vmul.f32 %v477_v32, %v349_v34  ;;  %v338_v26 = vmul.f32 0.5, %v337_v57  ;;  %vm353_vm5 = vmor %vm351_vm4, %vm352_vm2  ;;  %vm331_vm6 = vweird.f32 %v953_v15  ;;  %v194_v12 = vsub.f32 %v564_v9, %v708_v43 }
  0xde   :  { %v403_v27 = vmul.f32 %v788_v28, %v384_v61  ;;  %v330_v4 = vmul.f32 %v479_v7, %v329_v1  ;;  %v357_v20 = vmul.f32 %v483_v49, %v356_v8  ;;  %vm333_vm7 = vmor %vm331_vm6, %vm332_vm3  ;;  %vm342_vm8 = vweird.f32 %v481_v54  ;;  %v485_v55 = vpop.eup %484 }
  0xdf   :  { %v354_v13 = vsel %vm353_vm5, %v477_v32, %v350_v21  ;;  %v339_v30 = vsub.f32 1.5, %v338_v26  ;;  %vm341_vm9 = vweird.f32 %v964_v58  ;;  %v366_v15 = vmul.f32 %v485_v55, %v986_v38 }
  0xe0   :  { %v422_v60 = vadd.f32 %v807_v18, %v403_v27  ;;  %v388_v50 = vmul.f32 %v354_v13, %v196_v39  ;;  %v334_v62 = vsel %vm333_vm7, %v479_v7, %v330_v4  ;;  %v358_v36 = vmul.f32 0.5, %v357_v20  ;;  %vm343_vm10 = vmor %vm341_vm9, %vm342_vm8 }
  0xe1   :  { %v386_v52 = vmul.f32 %v334_v62, %v194_v12  ;;  %v340_v59 = vmul.f32 %v481_v54, %v339_v30  ;;  %v195_v35 = vsub.f32 %v592_v14, %v762_v37  ;;  %vm362_vm11 = vweird.f32 %v483_v49  ;;  %v1067_v14 = vld [vmem:[#allocation2_spill] sm:$0xff] }
  0xe2   :  { %438 = vst [vmem:[%s1055_s3 + $0x48] sm:$0xff] %v422_v60  ;;  %v407_v9 = vmul.f32 %v788_v28, %v388_v50  ;;  %v359_v43 = vsub.f32 1.5, %v358_v36  ;;  %v367_v40 = vmul.f32 %v485_v55, %v366_v15  ;;  %vm361_vm12 = vweird.f32 %v974_v5 }
  0xe3   :  { %v405_v23 = vmul.f32 %v788_v28, %v386_v52  ;;  %v344_v53 = vsel %vm343_vm10, %v481_v54, %v340_v59  ;;  %v197_v37 = vsub.f32 %v1067_v14, %v758_v47  ;;  %vm363_vm13 = vmor %vm361_vm12, %vm362_vm11  ;;  %vm372_vm14 = vweird.f32 %v485_v55 }
  0xe4   :  { %v426_v58 = vadd.f32 %v807_v18, %v407_v9  ;;  %v387_v32 = vmul.f32 %v344_v53, %v195_v35  ;;  %v360_v2 = vmul.f32 %v483_v49, %v359_v43  ;;  %v368_v7 = vmul.f32 0.5, %v367_v40 }
  0xe5   :  { %v424_v16 = vadd.f32 %v807_v18, %v405_v23  ;;  %vm371_vm15 = vweird.f32 %v986_v38  ;;  %v198_v10 = vsub.f32 %v1068_v48, %v937_v17 }
  0xe6   :  { %442 = vst [vmem:[%s1055_s3 + $0x68] sm:$0xff] %v426_v58  ;;  %v406_v33 = vmul.f32 %v788_v28, %v387_v32  ;;  %v364_v0 = vsel %vm363_vm13, %v483_v49, %v360_v2  ;;  %v369_v5 = vsub.f32 1.5, %v368_v7  ;;  %vm373_vm0 = vmor %vm371_vm15, %vm372_vm14 }
  0xe7   :  { %440 = vst [vmem:[%s1055_s3 + $0x58] sm:$0xff] %v424_v16  ;;  %v389_v44 = vmul.f32 %v364_v0, %v197_v37 }
  0xe8   :  { %v425_v47 = vadd.f32 %v807_v18, %v406_v33  ;;  %v370_v63 = vmul.f32 %v485_v55, %v369_v5 }
  0xe9   :  { %v408_v41 = vmul.f32 %v788_v28, %v389_v44 }
  0xea   :  { %441 = vst [vmem:[%s1055_s3 + $0x60] sm:$0xff] %v425_v47  ;;  %v374_v45 = vsel %vm373_vm0, %v485_v55, %v370_v63 }
  0xeb   :  { %v427_v56 = vadd.f32 %v807_v18, %v408_v41  ;;  %v390_v22 = vmul.f32 %v374_v45, %v198_v10 }
  0xed   :  { %443 = vst [vmem:[%s1055_s3 + $0x70] sm:$0xff] %v427_v56  ;;  %v409_v54 = vmul.f32 %v788_v28, %v390_v22 }
  0xef   :  { %v428_v38 = vadd.f32 %v807_v18, %v409_v54 }
  0xf1   :  { %444 = vst [vmem:[%s1055_s3 + $0x78] sm:$0xff] %v428_v38 }

// kernel: block_forward.12
= control target key start
LH: loop header
LB: loop body
LE: loop exit
PB: predicated region body
PF: predicated region fallthrough
CT: control target
= control target key end

     0   :  { %s351_s1 = inlined_call_operand.vmem [shape: f32[128,128], index: 1, kind: input, shape index: {}]   ;;  %s352_s2 = inlined_call_operand.vmem [shape: f32[1,128], index: 2, kind: input, shape index: {}]   ;;  %s353_s0 = inlined_call_operand.vmem [shape: f32[128,128], index: 0, kind: input, shape index: {}]   ;;  %s354_s3 = inlined_call_operand.vmem [shape: f32[128,128], index: 3, kind: output, shape index: {}]  }
   0x1   :  { %v45_v0 = vld [vmem:[%s351_s1 + $0x78] sm:$0xff]  ;;  %v44_v1 = vld [vmem:[%s351_s1 + $0x70] sm:$0xff]  ;;  %v43_v2 = vld [vmem:[%s351_s1 + $0x68] sm:$0xff] }
   0x2   :  { %136 = vmatpush.msra.mxu2 %v45_v0  ;;  %137 = vmatpush.msra.mxu3 %v45_v0  ;;  %v42_v3 = vld [vmem:[%s351_s1 + $0x60] sm:$0xff]  ;;  %v41_v4 = vld [vmem:[%s351_s1 + $0x58] sm:$0xff]  ;;  %v40_v5 = vld [vmem:[%s351_s1 + $0x50] sm:$0xff] }
   0x3   :  { %50 = vmatpush.msra.mxu0 %v45_v0  ;;  %135 = vmatpush.msra.mxu1 %v45_v0  ;;  %v39_v6 = vld [vmem:[%s351_s1 + $0x48] sm:$0xff]  ;;  %v38_v7 = vld [vmem:[%s351_s1 + $0x40] sm:$0xff]  ;;  %v37_v8 = vld [vmem:[%s351_s1 + $0x38] sm:$0xff] }
   0x4   :  { %139 = vmatpush.msra.mxu2 %v44_v1  ;;  %140 = vmatpush.msra.mxu3 %v44_v1  ;;  %v36_v9 = vld [vmem:[%s351_s1 + $0x30] sm:$0xff]  ;;  %v35_v10 = vld [vmem:[%s351_s1 + $0x28] sm:$0xff]  ;;  %v34_v11 = vld [vmem:[%s351_s1 + $0x20] sm:$0xff] }
   0x5   :  { %51 = vmatpush.msra.mxu0 %v44_v1  ;;  %138 = vmatpush.msra.mxu1 %v44_v1  ;;  %v33_v12 = vld [vmem:[%s351_s1 + $0x18] sm:$0xff]  ;;  %v32_v13 = vld [vmem:[%s351_s1 + $0x10] sm:$0xff]  ;;  %v31_v14 = vld [vmem:[%s351_s1 + $0x8] sm:$0xff] }
   0x6   :  { %142 = vmatpush.msra.mxu2 %v43_v2  ;;  %143 = vmatpush.msra.mxu3 %v43_v2  ;;  %v30_v15 = vld [vmem:[%s351_s1] sm:$0xff]  ;;  %v23_v20 = vld [vmem:[%s353_s0 + $0x48] sm:$0xff]  ;;  %v24_v24 = vld [vmem:[%s353_s0 + $0x50] sm:$0xff] }
   0x7   :  { %52 = vmatpush.msra.mxu0 %v43_v2  ;;  %141 = vmatpush.msra.mxu1 %v43_v2  ;;  %v22_v16 = vld [vmem:[%s353_s0 + $0x40] sm:$0xff]  ;;  %v27_v21 = vld [vmem:[%s353_s0 + $0x68] sm:$0xff]  ;;  %v28_v25 = vld [vmem:[%s353_s0 + $0x70] sm:$0xff] }
   0x8   :  { %145 = vmatpush.msra.mxu2 %v42_v3  ;;  %146 = vmatpush.msra.mxu3 %v42_v3  ;;  %v26_v17 = vld [vmem:[%s353_s0 + $0x60] sm:$0xff]  ;;  %v15_v22 = vld [vmem:[%s353_s0 + $0x8] sm:$0xff]  ;;  %v16_v26 = vld [vmem:[%s353_s0 + $0x10] sm:$0xff] }
   0x9   :  { %53 = vmatpush.msra.mxu0 %v42_v3  ;;  %144 = vmatpush.msra.mxu1 %v42_v3  ;;  %v14_v18 = vld [vmem:[%s353_s0] sm:$0xff]  ;;  %v19_v23 = vld [vmem:[%s353_s0 + $0x28] sm:$0xff]  ;;  %v20_v27 = vld [vmem:[%s353_s0 + $0x30] sm:$0xff] }
   0xa   :  { %148 = vmatpush.msra.mxu2 %v41_v4  ;;  %149 = vmatpush.msra.mxu3 %v41_v4  ;;  %v18_v19 = vld [vmem:[%s353_s0 + $0x20] sm:$0xff]  ;;  %v25_v28 = vld [vmem:[%s353_s0 + $0x58] sm:$0xff] }
   0xb   :  { %54 = vmatpush.msra.mxu0 %v41_v4  ;;  %147 = vmatpush.msra.mxu1 %v41_v4  ;;  %v29_v29 = vld [vmem:[%s353_s0 + $0x78] sm:$0xff]  ;;  %v183_v32 = vld [vmem:[%s352_s2] ss:$0 sm:$0xff] }
   0xc   :  { %151 = vmatpush.msra.mxu2 %v40_v5  ;;  %152 = vmatpush.msra.mxu3 %v40_v5  ;;  %v17_v30 = vld [vmem:[%s353_s0 + $0x18] sm:$0xff] }
   0xd   :  { %55 = vmatpush.msra.mxu0 %v40_v5  ;;  %150 = vmatpush.msra.mxu1 %v40_v5  ;;  %v21_v31 = vld [vmem:[%s353_s0 + $0x38] sm:$0xff] }
   0xe   :  { %154 = vmatpush.msra.mxu2 %v39_v6  ;;  %155 = vmatpush.msra.mxu3 %v39_v6 }
   0xf   :  { %56 = vmatpush.msra.mxu0 %v39_v6  ;;  %153 = vmatpush.msra.mxu1 %v39_v6 }
  0x10   :  { %157 = vmatpush.msra.mxu2 %v38_v7  ;;  %158 = vmatpush.msra.mxu3 %v38_v7 }
  0x11   :  { %57 = vmatpush.msra.mxu0 %v38_v7  ;;  %156 = vmatpush.msra.mxu1 %v38_v7 }
  0x12   :  { %160 = vmatpush.msra.mxu2 %v37_v8  ;;  %161 = vmatpush.msra.mxu3 %v37_v8 }
  0x13   :  { %58 = vmatpush.msra.mxu0 %v37_v8  ;;  %159 = vmatpush.msra.mxu1 %v37_v8 }
  0x14   :  { %163 = vmatpush.msra.mxu2 %v36_v9  ;;  %164 = vmatpush.msra.mxu3 %v36_v9 }
  0x15   :  { %59 = vmatpush.msra.mxu0 %v36_v9  ;;  %162 = vmatpush.msra.mxu1 %v36_v9 }
  0x16   :  { %166 = vmatpush.msra.mxu2 %v35_v10  ;;  %167 = vmatpush.msra.mxu3 %v35_v10 }
  0x17   :  { %60 = vmatpush.msra.mxu0 %v35_v10  ;;  %165 = vmatpush.msra.mxu1 %v35_v10 }
  0x18   :  { %169 = vmatpush.msra.mxu2 %v34_v11  ;;  %170 = vmatpush.msra.mxu3 %v34_v11 }
  0x19   :  { %61 = vmatpush.msra.mxu0 %v34_v11  ;;  %168 = vmatpush.msra.mxu1 %v34_v11 }
  0x1a   :  { %172 = vmatpush.msra.mxu2 %v33_v12  ;;  %173 = vmatpush.msra.mxu3 %v33_v12 }
  0x1b   :  { %62 = vmatpush.msra.mxu0 %v33_v12  ;;  %171 = vmatpush.msra.mxu1 %v33_v12 }
  0x1c   :  { %175 = vmatpush.msra.mxu2 %v32_v13  ;;  %176 = vmatpush.msra.mxu3 %v32_v13 }
  0x1d   :  { %63 = vmatpush.msra.mxu0 %v32_v13  ;;  %174 = vmatpush.msra.mxu1 %v32_v13 }
  0x1e   :  { %178 = vmatpush.msra.mxu2 %v31_v14  ;;  %179 = vmatpush.msra.mxu3 %v31_v14 }
  0x1f   :  { %64 = vmatpush.msra.mxu0 %v31_v14  ;;  %177 = vmatpush.msra.mxu1 %v31_v14 }
  0x20   :  { %181 = vmatpush.msra.mxu2 %v30_v15  ;;  %182 = vmatpush.msra.mxu3 %v30_v15 }
  0x21   :  { %90 = vmatmul.f32.vlgmr.msra.gmra.mxu2 %v22_v16  ;;  %102 = vmatmul.f32.vlgmr.msra.gmra.mxu3 %v26_v17 }
  0x22   :  { %65 = vmatpush.msra.mxu0 %v30_v15  ;;  %180 = vmatpush.msra.mxu1 %v30_v15 }
  0x23   :  { %66 = vmatmul.f32.vlgmr.msra.gmra.mxu0 %v14_v18  ;;  %78 = vmatmul.f32.vlgmr.msra.gmra.mxu1 %v18_v19 }
  0x29   :  { %93 = vmatmul.f32.gmra.mxu2 %v23_v20  ;;  %105 = vmatmul.f32.gmra.mxu3 %v27_v21 }
  0x2b   :  { %69 = vmatmul.f32.gmra.mxu0 %v15_v22  ;;  %81 = vmatmul.f32.gmra.mxu1 %v19_v23 }
  0x31   :  { %96 = vmatmul.f32.gmra.mxu2 %v24_v24  ;;  %108 = vmatmul.f32.gmra.mxu3 %v28_v25 }
  0x33   :  { %72 = vmatmul.f32.gmra.mxu0 %v16_v26  ;;  %84 = vmatmul.f32.gmra.mxu1 %v20_v27 }
  0x39   :  { %99 = vmatmul.f32.gmra.mxu2 %v25_v28  ;;  %111 = vmatmul.f32.gmra.mxu3 %v29_v29 }
  0x3b   :  { %75 = vmatmul.f32.gmra.mxu0 %v17_v30  ;;  %87 = vmatmul.f32.gmra.mxu1 %v21_v31 }
  0xa0   :  { %v67_v33 = vpop.f32.mrf.mxu0  ;;  %v79_v34 = vpop.f32.mrf.mxu1 }
  0xa1   :  { %v68_v35 = vadd.f32 %v183_v32, %v67_v33  ;;  %v80_v36 = vadd.f32 %v183_v32, %v79_v34 }
  0xa3   :  { %115 = vst [vmem:[%s354_s3] sm:$0xff] %v68_v35 }
  0xa4   :  { %119 = vst [vmem:[%s354_s3 + $0x20] sm:$0xff] %v80_v36  ;;  %v91_v37 = vpop.f32.mrf.mxu2  ;;  %v103_v38 = vpop.f32.mrf.mxu3 }
  0xa5   :  { %v92_v39 = vadd.f32 %v183_v32, %v91_v37  ;;  %v104_v40 = vadd.f32 %v183_v32, %v103_v38 }
  0xa7   :  { %123 = vst [vmem:[%s354_s3 + $0x40] sm:$0xff] %v92_v39 }
  0xa8   :  { %127 = vst [vmem:[%s354_s3 + $0x60] sm:$0xff] %v104_v40  ;;  %v70_v41 = vpop.f32.mrf.mxu0  ;;  %v82_v42 = vpop.f32.mrf.mxu1 }
  0xa9   :  { %v71_v43 = vadd.f32 %v183_v32, %v70_v41  ;;  %v83_v44 = vadd.f32 %v183_v32, %v82_v42 }
  0xab   :  { %116 = vst [vmem:[%s354_s3 + $0x8] sm:$0xff] %v71_v43 }
  0xac   :  { %120 = vst [vmem:[%s354_s3 + $0x28] sm:$0xff] %v83_v44  ;;  %v94_v45 = vpop.f32.mrf.mxu2  ;;  %v106_v46 = vpop.f32.mrf.mxu3 }
  0xad   :  { %v95_v47 = vadd.f32 %v183_v32, %v94_v45  ;;  %v107_v48 = vadd.f32 %v183_v32, %v106_v46 }
  0xaf   :  { %124 = vst [vmem:[%s354_s3 + $0x48] sm:$0xff] %v95_v47 }
  0xb0   :  { %128 = vst [vmem:[%s354_s3 + $0x68] sm:$0xff] %v107_v48  ;;  %v73_v49 = vpop.f32.mrf.mxu0  ;;  %v85_v50 = vpop.f32.mrf.mxu1 }
  0xb1   :  { %v74_v51 = vadd.f32 %v183_v32, %v73_v49  ;;  %v86_v52 = vadd.f32 %v183_v32, %v85_v50 }
  0xb3   :  { %117 = vst [vmem:[%s354_s3 + $0x10] sm:$0xff] %v74_v51 }
  0xb4   :  { %121 = vst [vmem:[%s354_s3 + $0x30] sm:$0xff] %v86_v52  ;;  %v97_v53 = vpop.f32.mrf.mxu2  ;;  %v109_v54 = vpop.f32.mrf.mxu3 }
  0xb5   :  { %v98_v55 = vadd.f32 %v183_v32, %v97_v53  ;;  %v110_v56 = vadd.f32 %v183_v32, %v109_v54 }
  0xb7   :  { %125 = vst [vmem:[%s354_s3 + $0x50] sm:$0xff] %v98_v55 }
  0xb8   :  { %129 = vst [vmem:[%s354_s3 + $0x70] sm:$0xff] %v110_v56  ;;  %v76_v57 = vpop.f32.mrf.mxu0  ;;  %v88_v58 = vpop.f32.mrf.mxu1 }
  0xb9   :  { %v77_v59 = vadd.f32 %v183_v32, %v76_v57  ;;  %v89_v60 = vadd.f32 %v183_v32, %v88_v58 }
  0xbb   :  { %118 = vst [vmem:[%s354_s3 + $0x18] sm:$0xff] %v77_v59 }
  0xbc   :  { %122 = vst [vmem:[%s354_s3 + $0x38] sm:$0xff] %v89_v60  ;;  %v100_v61 = vpop.f32.mrf.mxu2  ;;  %v112_v62 = vpop.f32.mrf.mxu3 }
  0xbd   :  { %v101_v63 = vadd.f32 %v183_v32, %v100_v61  ;;  %v113_v0 = vadd.f32 %v183_v32, %v112_v62 }
  0xbf   :  { %126 = vst [vmem:[%s354_s3 + $0x58] sm:$0xff] %v101_v63 }
  0xc0   :  { %130 = vst [vmem:[%s354_s3 + $0x78] sm:$0xff] %v113_v0 }

// kernel: block_forward.11
= control target key start
LH: loop header
LB: loop body
LE: loop exit
PB: predicated region body
PF: predicated region fallthrough
CT: control target
= control target key end

     0   :  { %s165_s1 = inlined_call_operand.vmem [shape: f32[128,128], index: 1, kind: input, shape index: {}]   ;;  %s166_s2 = inlined_call_operand.vmem [shape: f32[1,128], index: 2, kind: input, shape index: {}]   ;;  %s167_s0 = inlined_call_operand.vmem [shape: f32[16,128], index: 0, kind: input, shape index: {}]   ;;  %s168_s3 = inlined_call_operand.vmem [shape: f32[16,128], index: 3, kind: output, shape index: {}]  }
   0x1   :  { %v31_v0 = vld [vmem:[%s165_s1 + $0x78] sm:$0xff]  ;;  %v30_v1 = vld [vmem:[%s165_s1 + $0x70] sm:$0xff]  ;;  %v29_v2 = vld [vmem:[%s165_s1 + $0x68] sm:$0xff] }
   0x2   :  { %36 = vmatpush.msra.mxu0 %v31_v0  ;;  %65 = vmatpush.msra.mxu1 %v31_v0  ;;  %v28_v3 = vld [vmem:[%s165_s1 + $0x60] sm:$0xff]  ;;  %v27_v4 = vld [vmem:[%s165_s1 + $0x58] sm:$0xff]  ;;  %v26_v5 = vld [vmem:[%s165_s1 + $0x50] sm:$0xff] }
   0x3   :  { %v25_v6 = vld [vmem:[%s165_s1 + $0x48] sm:$0xff]  ;;  %v24_v7 = vld [vmem:[%s165_s1 + $0x40] sm:$0xff]  ;;  %v23_v8 = vld [vmem:[%s165_s1 + $0x38] sm:$0xff] }
   0x4   :  { %37 = vmatpush.msra.mxu0 %v30_v1  ;;  %66 = vmatpush.msra.mxu1 %v30_v1  ;;  %v22_v9 = vld [vmem:[%s165_s1 + $0x30] sm:$0xff]  ;;  %v21_v10 = vld [vmem:[%s165_s1 + $0x28] sm:$0xff]  ;;  %v20_v11 = vld [vmem:[%s165_s1 + $0x20] sm:$0xff] }
   0x5   :  { %v19_v12 = vld [vmem:[%s165_s1 + $0x18] sm:$0xff]  ;;  %v18_v13 = vld [vmem:[%s165_s1 + $0x10] sm:$0xff]  ;;  %v17_v14 = vld [vmem:[%s165_s1 + $0x8] sm:$0xff] }
   0x6   :  { %38 = vmatpush.msra.mxu0 %v29_v2  ;;  %67 = vmatpush.msra.mxu1 %v29_v2  ;;  %v16_v15 = vld [vmem:[%s165_s1] sm:$0xff]  ;;  %v15_v17 = vld [vmem:[%s167_s0 + $0x8] sm:$0xff] }
   0x7   :  { %v14_v16 = vld [vmem:[%s167_s0] sm:$0xff] }
   0x8   :  { %39 = vmatpush.msra.mxu0 %v28_v3  ;;  %68 = vmatpush.msra.mxu1 %v28_v3  ;;  %v81_v18 = vld [vmem:[%s166_s2] ss:$0 sm:$0xff] }
   0xa   :  { %40 = vmatpush.msra.mxu0 %v27_v4  ;;  %69 = vmatpush.msra.mxu1 %v27_v4 }
   0xc   :  { %41 = vmatpush.msra.mxu0 %v26_v5  ;;  %70 = vmatpush.msra.mxu1 %v26_v5 }
   0xe   :  { %42 = vmatpush.msra.mxu0 %v25_v6  ;;  %71 = vmatpush.msra.mxu1 %v25_v6 }
  0x10   :  { %43 = vmatpush.msra.mxu0 %v24_v7  ;;  %72 = vmatpush.msra.mxu1 %v24_v7 }
  0x12   :  { %44 = vmatpush.msra.mxu0 %v23_v8  ;;  %73 = vmatpush.msra.mxu1 %v23_v8 }
  0x14   :  { %45 = vmatpush.msra.mxu0 %v22_v9  ;;  %74 = vmatpush.msra.mxu1 %v22_v9 }
  0x16   :  { %46 = vmatpush.msra.mxu0 %v21_v10  ;;  %75 = vmatpush.msra.mxu1 %v21_v10 }
  0x18   :  { %47 = vmatpush.msra.mxu0 %v20_v11  ;;  %76 = vmatpush.msra.mxu1 %v20_v11 }
  0x1a   :  { %48 = vmatpush.msra.mxu0 %v19_v12  ;;  %77 = vmatpush.msra.mxu1 %v19_v12 }
  0x1c   :  { %49 = vmatpush.msra.mxu0 %v18_v13  ;;  %78 = vmatpush.msra.mxu1 %v18_v13 }
  0x1e   :  { %50 = vmatpush.msra.mxu0 %v17_v14  ;;  %79 = vmatpush.msra.mxu1 %v17_v14 }
  0x20   :  { %51 = vmatpush.msra.mxu0 %v16_v15  ;;  %80 = vmatpush.msra.mxu1 %v16_v15 }
  0x21   :  { %52 = vmatmul.f32.vlgmr.msra.gmra.mxu0 %v14_v16  ;;  %55 = vmatmul.f32.vlgmr.msra.gmra.mxu1 %v15_v17 }
  0x9e   :  { %v53_v19 = vpop.f32.mrf.mxu0  ;;  %v56_v20 = vpop.f32.mrf.mxu1 }
  0x9f   :  { %v54_v21 = vadd.f32 %v81_v18, %v53_v19  ;;  %v57_v22 = vadd.f32 %v81_v18, %v56_v20 }
  0xa1   :  { %59 = vst [vmem:[%s168_s3] sm:$0xff] %v54_v21 }
  0xa2   :  { %60 = vst [vmem:[%s168_s3 + $0x8] sm:$0xff] %v57_v22 }

// kernel: block_forward.9
= control target key start
LH: loop header
LB: loop body
LE: loop exit
PB: predicated region body
PF: predicated region fallthrough
CT: control target
= control target key end

     0   :  { %v94_v4 = vmov 32.0   ;;  %s133_s0 = inlined_call_operand.vmem [shape: f32[16,128], index: 0, kind: input, shape index: {}]   ;;  %s134_s1 = inlined_call_operand.vmem [shape: f32[1,128], index: 1, kind: input, shape index: {}]   ;;  %s135_s2 = inlined_call_operand.vmem [shape: f32[1,128], index: 2, kind: input, shape index: {}]   ;;  %s136_s3 = inlined_call_operand.vmem [shape: f32[16,128], index: 3, kind: output, shape index: {}]  }
   0x1   :  { %v14_v0 = vld [vmem:[%s133_s0] sm:$0xff]  ;;  %v15_v2 = vld [vmem:[%s133_s0 + $0x8] sm:$0xff]  ;;  %88 = vrcp.f32 %v94_v4 }
   0x2   :  { %18 = vadd.xlane.f32.xlu0 %v14_v0  ;;  %v22_v1 = vmul.f32 %v14_v0, %v14_v0  ;;  %v23_v3 = vmul.f32 %v15_v2, %v15_v2  ;;  %v86_v34 = vld [vmem:[%s134_s1] ss:$0 sm:$0xff] }
   0x3   :  { %v87_v37 = vld [vmem:[%s135_s2] ss:$0 sm:$0xff] }
   0x4   :  { %24 = vadd.xlane.f32.xlu1 %v22_v1 }
   0x7   :  { %v89_v5 = vpop.eup %88 }
   0x8   :  { %v29_v6 = vmul.f32 32.0, %v89_v5  ;;  %vm33_vm0 = vweird.f32 %v89_v5 }
   0xa   :  { %20 = vadd.xlane.f32.xlu0 %v15_v2  ;;  %v30_v7 = vsub.f32 1.0, %v29_v6 }
   0xc   :  { %26 = vadd.xlane.f32.xlu1 %v23_v3  ;;  %v31_v8 = vmul.f32 %v89_v5, %v30_v7 }
   0xe   :  { %v32_v9 = vadd.f32 %v89_v5, %v31_v8 }
  0x10   :  { %v34_v10 = vsel %vm33_vm0, %v89_v5, %v32_v9 }
  0x75   :  { %v19_v11 = vpop.xlane.xlu0 %18 }
  0x76   :  { %v35_v12 = vmul.f32 %v34_v10, %v19_v11 }
  0x77   :  { %v25_v13 = vpop.xlane.xlu1 %24 }
  0x78   :  { %v39_v14 = vmul.f32 %v35_v12, %v35_v12  ;;  %v37_v15 = vmul.f32 %v34_v10, %v25_v13  ;;  %v43_v33 = vsub.f32 %v14_v0, %v35_v12 }
  0x7a   :  { %v41_v16 = vsub.f32 %v37_v15, %v39_v14 }
  0x7c   :  { %v45_v17 = vadd.f32 1e-05, %v41_v16 }
  0x7d   :  { %v21_v18 = vpop.xlane.xlu0 %20 }
  0x7e   :  { %90 = vrsqrt.f32 %v45_v17  ;;  %v36_v19 = vmul.f32 %v34_v10, %v21_v18  ;;  %vm53_vm2 = vweird.f32 %v45_v17 }
  0x7f   :  { %v27_v20 = vpop.xlane.xlu1 %26 }
  0x80   :  { %v40_v21 = vmul.f32 %v36_v19, %v36_v19  ;;  %v38_v22 = vmul.f32 %v34_v10, %v27_v20  ;;  %v44_v44 = vsub.f32 %v15_v2, %v36_v19 }
  0x82   :  { %v42_v23 = vsub.f32 %v38_v22, %v40_v21 }
  0x84   :  { %v91_v24 = vpop.eup %90  ;;  %v46_v25 = vadd.f32 1e-05, %v42_v23 }
  0x85   :  { %v48_v26 = vmul.f32 %v91_v24, %v45_v17  ;;  %vm54_vm1 = vweird.f32 %v91_v24 }
  0x86   :  { %92 = vrsqrt.f32 %v46_v25  ;;  %vm55_vm3 = vmor %vm53_vm2, %vm54_vm1  ;;  %vm63_vm5 = vweird.f32 %v46_v25 }
  0x87   :  { %v49_v27 = vmul.f32 %v91_v24, %v48_v26 }
  0x89   :  { %v50_v28 = vmul.f32 0.5, %v49_v27 }
  0x8b   :  { %v51_v29 = vsub.f32 1.5, %v50_v28 }
  0x8c   :  { %v93_v30 = vpop.eup %92 }
  0x8d   :  { %v52_v31 = vmul.f32 %v91_v24, %v51_v29  ;;  %v58_v32 = vmul.f32 %v93_v30, %v46_v25  ;;  %vm64_vm4 = vweird.f32 %v93_v30 }
  0x8e   :  { %vm65_vm6 = vmor %vm63_vm5, %vm64_vm4 }
  0x8f   :  { %v56_v35 = vsel %vm55_vm3, %v91_v24, %v52_v31  ;;  %v59_v36 = vmul.f32 %v93_v30, %v58_v32 }
  0x90   :  { %v67_v38 = vmul.f32 %v56_v35, %v43_v33 }
  0x91   :  { %v60_v39 = vmul.f32 0.5, %v59_v36 }
  0x92   :  { %v72_v40 = vmul.f32 %v86_v34, %v67_v38 }
  0x93   :  { %v61_v41 = vsub.f32 1.5, %v60_v39 }
  0x94   :  { %v77_v42 = vadd.f32 %v87_v37, %v72_v40 }
  0x95   :  { %v62_v43 = vmul.f32 %v93_v30, %v61_v41 }
  0x96   :  { %79 = vst [vmem:[%s136_s3] sm:$0xff] %v77_v42 }
  0x97   :  { %v66_v45 = vsel %vm65_vm6, %v93_v30, %v62_v43 }
  0x98   :  { %v68_v46 = vmul.f32 %v66_v45, %v44_v44 }
  0x9a   :  { %v73_v47 = vmul.f32 %v86_v34, %v68_v46 }
  0x9c   :  { %v78_v48 = vadd.f32 %v87_v37, %v73_v47 }
  0x9e   :  { %80 = vst [vmem:[%s136_s3 + $0x8] sm:$0xff] %v78_v48 }

// kernel: block_forward.15
= control target key start
LH: loop header
LB: loop body
LE: loop exit
PB: predicated region body
PF: predicated region fallthrough
CT: control target
= control target key end

     0   :  { %v320_v5 = vmov 32.0   ;;  %s523_s0 = inlined_call_operand.vmem [shape: f32[16,128], index: 0, kind: input, shape index: {}]   ;;  %s524_s1 = inlined_call_operand.vmem [shape: f32[1,128], index: 1, kind: input, shape index: {}]   ;;  %s525_s2 = inlined_call_operand.vmem [shape: f32[1,128], index: 2, kind: input, shape index: {}]   ;;  %s526_s4 = inlined_call_operand.vmem [shape: f32[1,128], index: 4, kind: input, shape index: {}]   ;;  %s527_s3 = inlined_call_operand.vmem [shape: f32[128,128], index: 3, kind: input, shape index: {}]   ;;  %s528_s6 = inlined_call_operand.vmem [shape: f32[1,128], index: 6, kind: input, shape index: {}]   ;;  %s529_s5 = inlined_call_operand.vmem [shape: f32[128,128], index: 5, kind: input, shape index: {}]   ;;  %s530_s7 = inlined_call_operand.vmem [shape: f32[16,128], index: 7, kind: output, shape index: {}]  }
   0x1   :  { %v364_v0 = vld [vmem:[%s523_s0 + $0x8] sm:$0xff]  ;;  %v369_v1 = vld [vmem:[%s523_s0] sm:$0xff]  ;;  %v106_v4 = vld [vmem:[%s527_s3 + $0x78] sm:$0xff]  ;;  %310 = vrcp.f32 %v320_v5 }
   0x2   :  { %32 = vadd.xlane.f32.xlu0 %v364_v0  ;;  %30 = vadd.xlane.f32.xlu1 %v369_v1  ;;  %v35_v2 = vmul.f32 %v364_v0, %v364_v0  ;;  %v34_v3 = vmul.f32 %v369_v1, %v369_v1  ;;  %v105_v6 = vld [vmem:[%s527_s3 + $0x70] sm:$0xff]  ;;  %v104_v7 = vld [vmem:[%s527_s3 + $0x68] sm:$0xff]  ;;  %v103_v8 = vld [vmem:[%s527_s3 + $0x60] sm:$0xff] }
   0x3   :  { %111 = vmatpush.msra.mxu0 %v106_v4  ;;  %273 = vmatpush.msra.mxu2 %v106_v4  ;;  %v102_v10 = vld [vmem:[%s527_s3 + $0x58] sm:$0xff]  ;;  %v101_v12 = vld [vmem:[%s527_s3 + $0x50] sm:$0xff]  ;;  %v100_v13 = vld [vmem:[%s527_s3 + $0x48] sm:$0xff] }
   0x4   :  { %v99_v15 = vld [vmem:[%s527_s3 + $0x40] sm:$0xff]  ;;  %v98_v16 = vld [vmem:[%s527_s3 + $0x38] sm:$0xff]  ;;  %v97_v18 = vld [vmem:[%s527_s3 + $0x30] sm:$0xff] }
   0x5   :  { %112 = vmatpush.msra.mxu0 %v105_v6  ;;  %274 = vmatpush.msra.mxu2 %v105_v6  ;;  %v96_v19 = vld [vmem:[%s527_s3 + $0x28] sm:$0xff]  ;;  %v95_v20 = vld [vmem:[%s527_s3 + $0x20] sm:$0xff]  ;;  %v94_v22 = vld [vmem:[%s527_s3 + $0x18] sm:$0xff] }
   0x6   :  { %v93_v25 = vld [vmem:[%s527_s3 + $0x10] sm:$0xff]  ;;  %v92_v27 = vld [vmem:[%s527_s3 + $0x8] sm:$0xff]  ;;  %v91_v29 = vld [vmem:[%s527_s3] sm:$0xff] }
   0x7   :  { %113 = vmatpush.msra.mxu0 %v104_v7  ;;  %275 = vmatpush.msra.mxu2 %v104_v7  ;;  %v311_v9 = vpop.eup %310  ;;  %v306_v54 = vld [vmem:[%s524_s1] ss:$0 sm:$0xff]  ;;  %v233_v6 = vld [vmem:[%s529_s5 + $0x58] sm:$0xff] }
   0x8   :  { %v41_v11 = vmul.f32 32.0, %v311_v9  ;;  %vm45_vm0 = vweird.f32 %v311_v9  ;;  %v307_v58 = vld [vmem:[%s525_s2] ss:$0 sm:$0xff] }
   0x9   :  { %114 = vmatpush.msra.mxu0 %v103_v8  ;;  %276 = vmatpush.msra.mxu2 %v103_v8  ;;  %v234_v4 = vld [vmem:[%s529_s5 + $0x60] sm:$0xff]  ;;  %v232_v8 = vld [vmem:[%s529_s5 + $0x50] sm:$0xff] }
   0xa   :  { %38 = vadd.xlane.f32.xlu0 %v35_v2  ;;  %36 = vadd.xlane.f32.xlu1 %v34_v3  ;;  %v42_v14 = vsub.f32 1.0, %v41_v11  ;;  %v237_v2 = vld [vmem:[%s529_s5 + $0x78] sm:$0xff]  ;;  %v235_v3 = vld [vmem:[%s529_s5 + $0x68] sm:$0xff]  ;;  %v308_v5 = vld [vmem:[%s526_s4] ss:$0 sm:$0xff] }
   0xb   :  { %115 = vmatpush.msra.mxu0 %v102_v10  ;;  %277 = vmatpush.msra.mxu2 %v102_v10  ;;  %v231_v10 = vld [vmem:[%s529_s5 + $0x48] sm:$0xff]  ;;  %v230_v11 = vld [vmem:[%s529_s5 + $0x40] sm:$0xff] }
   0xc   :  { %v43_v17 = vmul.f32 %v311_v9, %v42_v14  ;;  %242 = vmatpush.msra.mxu1 %v237_v2  ;;  %289 = vmatpush.msra.mxu3 %v237_v2 }
   0xd   :  { %116 = vmatpush.msra.mxu0 %v101_v12  ;;  %278 = vmatpush.msra.mxu2 %v101_v12 }
   0xe   :  { %v44_v21 = vadd.f32 %v311_v9, %v43_v17  ;;  %v228_v17 = vld [vmem:[%s529_s5 + $0x30] sm:$0xff] }
   0xf   :  { %117 = vmatpush.msra.mxu0 %v100_v13  ;;  %279 = vmatpush.msra.mxu2 %v100_v13  ;;  %v229_v13 = vld [vmem:[%s529_s5 + $0x38] sm:$0xff] }
  0x10   :  { %v46_v26 = vsel %vm45_vm0, %v311_v9, %v44_v21 }
  0x11   :  { %118 = vmatpush.msra.mxu0 %v99_v15  ;;  %280 = vmatpush.msra.mxu2 %v99_v15 }
  0x13   :  { %119 = vmatpush.msra.mxu0 %v98_v16  ;;  %281 = vmatpush.msra.mxu2 %v98_v16 }
  0x15   :  { %120 = vmatpush.msra.mxu0 %v97_v18  ;;  %282 = vmatpush.msra.mxu2 %v97_v18 }
  0x17   :  { %121 = vmatpush.msra.mxu0 %v96_v19  ;;  %283 = vmatpush.msra.mxu2 %v96_v19 }
  0x19   :  { %122 = vmatpush.msra.mxu0 %v95_v20  ;;  %284 = vmatpush.msra.mxu2 %v95_v20  ;;  %v227_v20 = vld [vmem:[%s529_s5 + $0x28] sm:$0xff] }
  0x1b   :  { %123 = vmatpush.msra.mxu0 %v94_v22  ;;  %285 = vmatpush.msra.mxu2 %v94_v22 }
  0x1d   :  { %124 = vmatpush.msra.mxu0 %v93_v25  ;;  %286 = vmatpush.msra.mxu2 %v93_v25 }
  0x1f   :  { %125 = vmatpush.msra.mxu0 %v92_v27  ;;  %287 = vmatpush.msra.mxu2 %v92_v27 }
  0x21   :  { %126 = vmatpush.msra.mxu0 %v91_v29  ;;  %288 = vmatpush.msra.mxu2 %v91_v29 }
  0x75   :  { %v33_v23 = vpop.xlane.xlu0 %32  ;;  %v31_v24 = vpop.xlane.xlu1 %30 }
  0x76   :  { %v47_v28 = vmul.f32 %v46_v26, %v31_v24  ;;  %v48_v30 = vmul.f32 %v46_v26, %v33_v23  ;;  %v226_v24 = vld [vmem:[%s529_s5 + $0x20] sm:$0xff] }
  0x78   :  { %v51_v31 = vmul.f32 %v47_v28, %v47_v28  ;;  %v52_v34 = vmul.f32 %v48_v30, %v48_v30  ;;  %v56_v52 = vsub.f32 %v364_v0, %v48_v30  ;;  %v55_v55 = vsub.f32 %v369_v1, %v47_v28  ;;  %v236_v1 = vld [vmem:[%s529_s5 + $0x70] sm:$0xff]  ;;  %v225_v28 = vld [vmem:[%s529_s5 + $0x18] sm:$0xff] }
  0x79   :  { %243 = vmatpush.msra.mxu1 %v236_v1  ;;  %290 = vmatpush.msra.mxu3 %v236_v1 }
  0x7b   :  { %244 = vmatpush.msra.mxu1 %v235_v3  ;;  %291 = vmatpush.msra.mxu3 %v235_v3 }
  0x7d   :  { %v39_v32 = vpop.xlane.xlu0 %38  ;;  %v37_v33 = vpop.xlane.xlu1 %36  ;;  %245 = vmatpush.msra.mxu1 %v234_v4  ;;  %292 = vmatpush.msra.mxu3 %v234_v4 }
  0x7e   :  { %v50_v35 = vmul.f32 %v46_v26, %v39_v32  ;;  %v49_v36 = vmul.f32 %v46_v26, %v37_v33  ;;  %v224_v32 = vld [vmem:[%s529_s5 + $0x10] sm:$0xff] }
  0x7f   :  { %246 = vmatpush.msra.mxu1 %v233_v6  ;;  %293 = vmatpush.msra.mxu3 %v233_v6 }
  0x80   :  { %v54_v37 = vsub.f32 %v50_v35, %v52_v34  ;;  %v53_v38 = vsub.f32 %v49_v36, %v51_v31 }
  0x81   :  { %247 = vmatpush.msra.mxu1 %v232_v8  ;;  %294 = vmatpush.msra.mxu3 %v232_v8 }
  0x82   :  { %v58_v39 = vadd.f32 1e-05, %v54_v37  ;;  %v57_v40 = vadd.f32 1e-05, %v53_v38  ;;  %v223_v37 = vld [vmem:[%s529_s5 + $0x8] sm:$0xff] }
  0x83   :  { %248 = vmatpush.msra.mxu1 %v231_v10  ;;  %295 = vmatpush.msra.mxu3 %v231_v10 }
  0x84   :  { %312 = vrsqrt.f32 %v58_v39  ;;  %vm65_vm2 = vweird.f32 %v57_v40  ;;  %vm75_vm4 = vweird.f32 %v58_v39 }
  0x85   :  { %314 = vrsqrt.f32 %v57_v40  ;;  %249 = vmatpush.msra.mxu1 %v230_v11  ;;  %296 = vmatpush.msra.mxu3 %v230_v11 }
  0x87   :  { %250 = vmatpush.msra.mxu1 %v229_v13  ;;  %297 = vmatpush.msra.mxu3 %v229_v13 }
  0x89   :  { %251 = vmatpush.msra.mxu1 %v228_v17  ;;  %298 = vmatpush.msra.mxu3 %v228_v17 }
  0x8a   :  { %v313_v41 = vpop.eup %312 }
  0x8b   :  { %v315_v42 = vpop.eup %314  ;;  %v70_v43 = vmul.f32 %v313_v41, %v58_v39  ;;  %vm76_vm1 = vweird.f32 %v313_v41  ;;  %252 = vmatpush.msra.mxu1 %v227_v20  ;;  %299 = vmatpush.msra.mxu3 %v227_v20 }
  0x8c   :  { %v60_v44 = vmul.f32 %v315_v42, %v57_v40  ;;  %vm66_vm3 = vweird.f32 %v315_v42  ;;  %vm77_vm5 = vmor %vm75_vm4, %vm76_vm1 }
  0x8d   :  { %v71_v45 = vmul.f32 %v313_v41, %v70_v43  ;;  %vm67_vm6 = vmor %vm65_vm2, %vm66_vm3  ;;  %253 = vmatpush.msra.mxu1 %v226_v24  ;;  %300 = vmatpush.msra.mxu3 %v226_v24 }
  0x8e   :  { %v61_v46 = vmul.f32 %v315_v42, %v60_v44 }
  0x8f   :  { %v72_v47 = vmul.f32 0.5, %v71_v45  ;;  %254 = vmatpush.msra.mxu1 %v225_v28  ;;  %301 = vmatpush.msra.mxu3 %v225_v28 }
  0x90   :  { %v62_v48 = vmul.f32 0.5, %v61_v46 }
  0x91   :  { %v73_v49 = vsub.f32 1.5, %v72_v47  ;;  %255 = vmatpush.msra.mxu1 %v224_v32  ;;  %302 = vmatpush.msra.mxu3 %v224_v32 }
  0x92   :  { %v63_v50 = vsub.f32 1.5, %v62_v48 }
  0x93   :  { %v74_v51 = vmul.f32 %v313_v41, %v73_v49  ;;  %256 = vmatpush.msra.mxu1 %v223_v37  ;;  %303 = vmatpush.msra.mxu3 %v223_v37 }
  0x94   :  { %v64_v53 = vmul.f32 %v315_v42, %v63_v50 }
  0x95   :  { %v78_v56 = vsel %vm77_vm5, %v313_v41, %v74_v51  ;;  %v222_v41 = vld [vmem:[%s529_s5] sm:$0xff] }
  0x96   :  { %v68_v57 = vsel %vm67_vm6, %v315_v42, %v64_v53  ;;  %v80_v59 = vmul.f32 %v78_v56, %v56_v52  ;;  %257 = vmatpush.msra.mxu1 %v222_v41  ;;  %304 = vmatpush.msra.mxu3 %v222_v41 }
  0x97   :  { %v79_v60 = vmul.f32 %v68_v57, %v55_v55 }
  0x98   :  { %v85_v61 = vmul.f32 %v306_v54, %v80_v59 }
  0x99   :  { %v84_v62 = vmul.f32 %v306_v54, %v79_v60 }
  0x9a   :  { %v90_v63 = vadd.f32 %v307_v58, %v85_v61 }
  0x9b   :  { %v89_v0 = vadd.f32 %v307_v58, %v84_v62 }
  0x9c   :  { %130 = vmatmul.f32.vlgmr.msra.gmra.mxu2 %v90_v63 }
  0x9d   :  { %127 = vmatmul.f32.vlgmr.msra.gmra.mxu0 %v89_v0 }
 0x11a   :  { %v128_v7 = vpop.f32.mrf.mxu0 }
 0x11b   :  { %v454_v9 = vadd.f32 %v308_v5, %v128_v7 }
 0x11d   :  { %v463_v12 = vmul.f32 0.70710677, %v454_v9 }
 0x11f   :  { %v138_v14 = vmul.f32 %v463_v12, %v463_v12  ;;  %v131_v15 = vpop.f32.mrf.mxu2 }
 0x120   :  { %v470_v16 = vadd.f32 %v308_v5, %v131_v15 }
 0x121   :  { %v475_v18 = vmin.f32 %v138_v14, 16.0 }
 0x122   :  { %v478_v19 = vmul.f32 0.70710677, %v470_v16 }
 0x123   :  { %v140_v21 = vmul.f32 2.1237322e-06, %v475_v18  ;;  %v151_v22 = vmul.f32 3.8918573e-05, %v475_v18 }
 0x124   :  { %v178_v23 = vmul.f32 %v478_v19, %v478_v19 }
 0x125   :  { %v141_v25 = vadd.f32 0.00028619796, %v140_v21  ;;  %v152_v26 = vadd.f32 0.001143296, %v151_v22 }
 0x126   :  { %v179_v27 = vmin.f32 %v178_v23, 16.0 }
 0x127   :  { %v142_v29 = vmul.f32 %v141_v25, %v475_v18  ;;  %v153_v30 = vmul.f32 %v152_v26, %v475_v18 }
 0x128   :  { %v180_v31 = vmul.f32 2.1237322e-06, %v179_v27  ;;  %v191_v33 = vmul.f32 3.8918573e-05, %v179_v27 }
 0x129   :  { %v143_v34 = vadd.f32 0.0036580483, %v142_v29  ;;  %v154_v35 = vadd.f32 0.014752088, %v153_v30  ;;  %v134_v30 = vmul.f32 0.5, %v454_v9 }
 0x12a   :  { %v181_v36 = vadd.f32 0.00028619796, %v180_v31  ;;  %v192_v38 = vadd.f32 0.001143296, %v191_v33 }
 0x12b   :  { %v155_v39 = vmul.f32 %v154_v35, %v475_v18  ;;  %v144_v43 = vmul.f32 %v143_v34, %v475_v18 }
 0x12c   :  { %v182_v40 = vmul.f32 %v181_v36, %v179_v27  ;;  %v193_v42 = vmul.f32 %v192_v38, %v179_v27  ;;  %v135_v36 = vmul.f32 0.5, %v470_v16 }
 0x12d   :  { %v156_v44 = vadd.f32 0.112945676, %v155_v39  ;;  %v145_v49 = vadd.f32 0.05243302, %v144_v43  ;;  %v309_v39 = vld [vmem:[%s528_s6] ss:$0 sm:$0xff] }
 0x12e   :  { %v183_v45 = vadd.f32 0.0036580483, %v182_v40  ;;  %v194_v46 = vadd.f32 0.014752088, %v193_v42 }
 0x12f   :  { %v157_v47 = vmul.f32 %v156_v44, %v475_v18  ;;  %v146_v55 = vmul.f32 %v145_v49, %v475_v18 }
 0x130   :  { %v195_v48 = vmul.f32 %v194_v46, %v179_v27  ;;  %v184_v51 = vmul.f32 %v183_v45, %v179_v27 }
 0x131   :  { %v158_v50 = vadd.f32 0.4994258, %v157_v47  ;;  %v147_v60 = vadd.f32 0.18741608, %v146_v55 }
 0x132   :  { %v196_v52 = vadd.f32 0.112945676, %v195_v48  ;;  %v185_v57 = vadd.f32 0.05243302, %v184_v51 }
 0x133   :  { %v159_v53 = vmul.f32 %v158_v50, %v475_v18  ;;  %v148_v0 = vmul.f32 %v147_v60, %v475_v18 }
 0x134   :  { %v197_v54 = vmul.f32 %v196_v52, %v179_v27  ;;  %v186_v61 = vmul.f32 %v185_v57, %v179_v27 }
 0x135   :  { %v160_v56 = vadd.f32 1.0, %v159_v53  ;;  %v149_v4 = vadd.f32 1.1283791, %v148_v0 }
 0x136   :  { %v198_v58 = vadd.f32 0.4994258, %v197_v54  ;;  %v187_v2 = vadd.f32 0.18741608, %v186_v61 }
 0x137   :  { %316 = vrcp.f32 %v160_v56  ;;  %v172_v5 = vand.u32 2147483648, %v160_v56  ;;  %v170_v10 = vand.u32 2147483647, %v160_v56  ;;  %vm166_vm8 = vweird.f32 %v160_v56 }
 0x138   :  { %v199_v59 = vmul.f32 %v198_v58, %v179_v27  ;;  %v188_v7 = vmul.f32 %v187_v2, %v179_v27  ;;  %v150_v14 = vmul.f32 %v149_v4, %v463_v12 }
 0x139   :  { %v173_v15 = vor.u32 1.1754944e-38, %v172_v5  ;;  %vm171_vm10 = vcmp.eq.f32.partialorder %v170_v10, 8.507059e+37 }
 0x13a   :  { %v200_v62 = vadd.f32 1.0, %v199_v59  ;;  %v189_v20 = vadd.f32 1.1283791, %v188_v7 }
 0x13c   :  { %318 = vrcp.f32 %v200_v62  ;;  %v212_v21 = vand.u32 2147483648, %v200_v62  ;;  %v210_v24 = vand.u32 2147483647, %v200_v62  ;;  %vm206_vm12 = vweird.f32 %v200_v62 }
 0x13d   :  { %v317_v63 = vpop.eup %316  ;;  %v190_v29 = vmul.f32 %v189_v20, %v478_v19 }
 0x13e   :  { %v162_v1 = vmul.f32 %v317_v63, %v160_v56  ;;  %vm167_vm7 = vweird.f32 %v317_v63  ;;  %v213_v28 = vor.u32 1.1754944e-38, %v212_v21  ;;  %vm211_vm14 = vcmp.eq.f32.partialorder %v210_v24, 8.507059e+37 }
 0x13f   :  { %vm168_vm9 = vmor %vm166_vm8, %vm167_vm7 }
 0x140   :  { %v163_v3 = vsub.f32 1.0, %v162_v1 }
 0x142   :  { %v319_v6 = vpop.eup %318  ;;  %v164_v8 = vmul.f32 %v317_v63, %v163_v3 }
 0x143   :  { %v202_v11 = vmul.f32 %v319_v6, %v200_v62  ;;  %vm207_vm11 = vweird.f32 %v319_v6 }
 0x144   :  { %v165_v13 = vadd.f32 %v317_v63, %v164_v8  ;;  %vm208_vm13 = vmor %vm206_vm12, %vm207_vm11 }
 0x145   :  { %v203_v17 = vsub.f32 1.0, %v202_v11 }
 0x146   :  { %v169_v18 = vsel %vm168_vm9, %v317_v63, %v165_v13 }
 0x147   :  { %v174_v22 = vsel %vm171_vm10, %v173_v15, %v169_v18  ;;  %v204_v23 = vmul.f32 %v319_v6, %v203_v17 }
 0x148   :  { %v175_v25 = vmul.f32 %v174_v22, %v150_v14 }
 0x149   :  { %v205_v26 = vadd.f32 %v319_v6, %v204_v23 }
 0x14a   :  { %v271_v27 = vclamps-f32 %v175_v25, 1.0 }
 0x14b   :  { %v209_v12 = vsel %vm208_vm13, %v319_v6, %v205_v26 }
 0x14c   :  { %v218_v31 = vadd.f32 1.0, %v271_v27  ;;  %v214_v32 = vsel %vm211_vm14, %v213_v28, %v209_v12 }
 0x14d   :  { %v215_v33 = vmul.f32 %v214_v32, %v190_v29 }
 0x14e   :  { %v220_v34 = vmul.f32 %v218_v31, %v134_v30 }
 0x14f   :  { %v272_v35 = vclamps-f32 %v215_v33, 1.0 }
 0x150   :  { %258 = vmatmul.f32.vlgmr.msra.gmra.mxu1 %v220_v34 }
 0x151   :  { %v219_v37 = vadd.f32 1.0, %v272_v35 }
 0x153   :  { %v221_v38 = vmul.f32 %v219_v37, %v135_v36 }
 0x155   :  { %261 = vmatmul.f32.vlgmr.msra.gmra.mxu3 %v221_v38 }
 0x1cd   :  { %v259_v19 = vpop.f32.mrf.mxu1 }
 0x1ce   :  { %v260_v40 = vadd.f32 %v309_v39, %v259_v19 }
 0x1d0   :  { %265 = vst [vmem:[%s530_s7] sm:$0xff] %v260_v40 }
 0x1d8   :  { %v262_v9 = vpop.f32.mrf.mxu3 }
 0x1d9   :  { %v263_v41 = vadd.f32 %v309_v39, %v262_v9 }
 0x1db   :  { %266 = vst [vmem:[%s530_s7 + $0x8] sm:$0xff] %v263_v41 }

// kernel: block_forward.16
= control target key start
LH: loop header
LB: loop body
LE: loop exit
PB: predicated region body
PF: predicated region fallthrough
CT: control target
= control target key end

     0   :  { %v1454_v33 = vmov 128.0   ;;  %s2706_s0 = inlined_call_operand.vmem [shape: f32[128,128], index: 0, kind: input, shape index: {}]   ;;  %s2707_s1 = inlined_call_operand.vmem [shape: f32[1,128], index: 1, kind: input, shape index: {}]   ;;  %s2708_s2 = inlined_call_operand.vmem [shape: f32[1,128], index: 2, kind: input, shape index: {}]   ;;  %s2709_s3 = inlined_call_operand.vmem [shape: f32[128,128], index: 3, kind: input, shape index: {}]   ;;  %s2710_s4 = inlined_call_operand.vmem [shape: f32[1,128], index: 4, kind: input, shape index: {}]   ;;  %s2711_s5 = inlined_call_operand.vmem [shape: f32[128,128], index: 5, kind: input, shape index: {}]   ;;  %s2712_s6 = inlined_call_operand.vmem [shape: f32[1,128], index: 6, kind: input, shape index: {}]   ;;  %s2713_s7 = inlined_call_operand.vmem [shape: f32[128,128], index: 7, kind: output, shape index: {}]  }
   0x1   :  { %v1498_v0 = vld [vmem:[%s2706_s0 + $0x48] sm:$0xff]  ;;  %v1503_v1 = vld [vmem:[%s2706_s0 + $0x40] sm:$0xff]  ;;  %v1522_v6 = vld [vmem:[%s2706_s0 + $0x50] sm:$0xff]  ;;  %1388 = vrcp.f32 %v1454_v33 }
   0x2   :  { %v1508_v2 = vld [vmem:[%s2706_s0] sm:$0xff]  ;;  %62 = vadd.xlane.f32.xlu1 %v1498_v0  ;;  %60 = vadd.xlane.f32.xlu0 %v1503_v1  ;;  %v85_v3 = vmul.f32 %v1498_v0, %v1498_v0  ;;  %v84_v4 = vmul.f32 %v1503_v1, %v1503_v1  ;;  %v86_v7 = vmul.f32 %v1522_v6, %v1522_v6  ;;  %v1529_v8 = vld [vmem:[%s2706_s0 + $0x8] sm:$0xff]  ;;  %v1536_v9 = vld [vmem:[%s2706_s0 + $0x58] sm:$0xff] }
   0x3   :  { %44 = vadd.xlane.f32.xlu2 %v1508_v2  ;;  %v76_v5 = vmul.f32 %v1508_v2, %v1508_v2  ;;  %v77_v10 = vmul.f32 %v1529_v8, %v1529_v8  ;;  %v87_v11 = vmul.f32 %v1536_v9, %v1536_v9  ;;  %v1546_v12 = vld [vmem:[%s2706_s0 + $0x10] sm:$0xff]  ;;  %v1553_v14 = vld [vmem:[%s2706_s0 + $0x60] sm:$0xff]  ;;  %v1560_v15 = vld [vmem:[%s2706_s0 + $0x18] sm:$0xff] }
   0x4   :  { %v78_v13 = vmul.f32 %v1546_v12, %v1546_v12  ;;  %v88_v16 = vmul.f32 %v1553_v14, %v1553_v14  ;;  %v79_v17 = vmul.f32 %v1560_v15, %v1560_v15  ;;  %v1570_v18 = vld [vmem:[%s2706_s0 + $0x68] sm:$0xff]  ;;  %v1577_v20 = vld [vmem:[%s2706_s0 + $0x20] sm:$0xff]  ;;  %v1584_v21 = vld [vmem:[%s2706_s0 + $0x70] sm:$0xff] }
   0x5   :  { %v89_v19 = vmul.f32 %v1570_v18, %v1570_v18  ;;  %v80_v22 = vmul.f32 %v1577_v20, %v1577_v20  ;;  %v90_v23 = vmul.f32 %v1584_v21, %v1584_v21  ;;  %v1594_v24 = vld [vmem:[%s2706_s0 + $0x28] sm:$0xff]  ;;  %v1601_v26 = vld [vmem:[%s2706_s0 + $0x78] sm:$0xff]  ;;  %v1608_v27 = vld [vmem:[%s2706_s0 + $0x30] sm:$0xff] }
   0x6   :  { %v81_v25 = vmul.f32 %v1594_v24, %v1594_v24  ;;  %v91_v28 = vmul.f32 %v1601_v26, %v1601_v26  ;;  %v82_v29 = vmul.f32 %v1608_v27, %v1608_v27  ;;  %v1618_v30 = vld [vmem:[%s2706_s0 + $0x38] sm:$0xff]  ;;  %v455_v34 = vld [vmem:[%s2709_s3 + $0x70] sm:$0xff]  ;;  %v454_v35 = vld [vmem:[%s2709_s3 + $0x68] sm:$0xff] }
   0x7   :  { %v83_v31 = vmul.f32 %v1618_v30, %v1618_v30  ;;  %v456_v32 = vld [vmem:[%s2709_s3 + $0x78] sm:$0xff]  ;;  %v1389_v36 = vpop.eup %1388  ;;  %v453_v37 = vld [vmem:[%s2709_s3 + $0x60] sm:$0xff]  ;;  %v451_v40 = vld [vmem:[%s2709_s3 + $0x50] sm:$0xff] }
   0x8   :  { %461 = vmatpush.msra.mxu0 %v456_v32  ;;  %1351 = vmatpush.msra.mxu2 %v456_v32  ;;  %v452_v38 = vld [vmem:[%s2709_s3 + $0x58] sm:$0xff]  ;;  %v125_v39 = vmul.f32 128.0, %v1389_v36  ;;  %v450_v41 = vld [vmem:[%s2709_s3 + $0x48] sm:$0xff]  ;;  %v449_v43 = vld [vmem:[%s2709_s3 + $0x40] sm:$0xff]  ;;  %vm129_vm0 = vweird.f32 %v1389_v36 }
   0x9   :  { %v448_v44 = vld [vmem:[%s2709_s3 + $0x38] sm:$0xff]  ;;  %v447_v46 = vld [vmem:[%s2709_s3 + $0x30] sm:$0xff]  ;;  %v446_v47 = vld [vmem:[%s2709_s3 + $0x28] sm:$0xff] }
   0xa   :  { %110 = vadd.xlane.f32.xlu1 %v85_v3  ;;  %108 = vadd.xlane.f32.xlu0 %v84_v4  ;;  %v126_v42 = vsub.f32 1.0, %v125_v39  ;;  %v445_v49 = vld [vmem:[%s2709_s3 + $0x20] sm:$0xff]  ;;  %v444_v53 = vld [vmem:[%s2709_s3 + $0x18] sm:$0xff]  ;;  %v443_v55 = vld [vmem:[%s2709_s3 + $0x10] sm:$0xff] }
   0xb   :  { %92 = vadd.xlane.f32.xlu2 %v76_v5  ;;  %462 = vmatpush.msra.mxu0 %v455_v34  ;;  %v442_v58 = vld [vmem:[%s2709_s3 + $0x8] sm:$0xff]  ;;  %v441_v60 = vld [vmem:[%s2709_s3] sm:$0xff] }
   0xc   :  { %1352 = vmatpush.msra.mxu2 %v455_v34  ;;  %v127_v45 = vmul.f32 %v1389_v36, %v126_v42 }
   0xd   :  { %463 = vmatpush.msra.mxu0 %v454_v35 }
   0xe   :  { %1353 = vmatpush.msra.mxu2 %v454_v35  ;;  %v128_v48 = vadd.f32 %v1389_v36, %v127_v45 }
   0xf   :  { %464 = vmatpush.msra.mxu0 %v453_v37 }
  0x10   :  { %1354 = vmatpush.msra.mxu2 %v453_v37  ;;  %v1662_v54 = vsel %vm129_vm0, %v1389_v36, %v128_v48 }
  0x11   :  { %465 = vmatpush.msra.mxu0 %v452_v38 }
  0x12   :  { %112 = vadd.xlane.f32.xlu1 %v86_v7  ;;  %64 = vadd.xlane.f32.xlu0 %v1522_v6 }
  0x13   :  { %46 = vadd.xlane.f32.xlu2 %v1529_v8  ;;  %1355 = vmatpush.msra.mxu2 %v452_v38 }
  0x14   :  { %466 = vmatpush.msra.mxu0 %v451_v40 }
  0x15   :  { %1356 = vmatpush.msra.mxu2 %v451_v40 }
  0x16   :  { %467 = vmatpush.msra.mxu0 %v450_v41 }
  0x17   :  { %1357 = vmatpush.msra.mxu2 %v450_v41 }
  0x18   :  { %468 = vmatpush.msra.mxu0 %v449_v43 }
  0x19   :  { %1358 = vmatpush.msra.mxu2 %v449_v43 }
  0x1a   :  { %66 = vadd.xlane.f32.xlu1 %v1536_v9  ;;  %94 = vadd.xlane.f32.xlu0 %v77_v10 }
  0x1b   :  { %114 = vadd.xlane.f32.xlu2 %v87_v11  ;;  %469 = vmatpush.msra.mxu0 %v448_v44 }
  0x1c   :  { %1359 = vmatpush.msra.mxu2 %v448_v44 }
  0x1d   :  { %470 = vmatpush.msra.mxu0 %v447_v46 }
  0x1e   :  { %1360 = vmatpush.msra.mxu2 %v447_v46 }
  0x1f   :  { %471 = vmatpush.msra.mxu0 %v446_v47 }
  0x20   :  { %1361 = vmatpush.msra.mxu2 %v446_v47 }
  0x21   :  { %472 = vmatpush.msra.mxu0 %v445_v49 }
  0x22   :  { %96 = vadd.xlane.f32.xlu1 %v78_v13  ;;  %48 = vadd.xlane.f32.xlu0 %v1546_v12 }
  0x23   :  { %68 = vadd.xlane.f32.xlu2 %v1553_v14  ;;  %1362 = vmatpush.msra.mxu2 %v445_v49 }
  0x24   :  { %473 = vmatpush.msra.mxu0 %v444_v53 }
  0x25   :  { %1363 = vmatpush.msra.mxu2 %v444_v53 }
  0x26   :  { %474 = vmatpush.msra.mxu0 %v443_v55 }
  0x27   :  { %1364 = vmatpush.msra.mxu2 %v443_v55 }
  0x28   :  { %475 = vmatpush.msra.mxu0 %v442_v58 }
  0x29   :  { %1365 = vmatpush.msra.mxu2 %v442_v58 }
  0x2a   :  { %50 = vadd.xlane.f32.xlu1 %v1560_v15  ;;  %116 = vadd.xlane.f32.xlu0 %v88_v16 }
  0x2b   :  { %98 = vadd.xlane.f32.xlu2 %v79_v17  ;;  %476 = vmatpush.msra.mxu0 %v441_v60 }
  0x2c   :  { %1366 = vmatpush.msra.mxu2 %v441_v60 }
  0x32   :  { %118 = vadd.xlane.f32.xlu1 %v89_v19  ;;  %70 = vadd.xlane.f32.xlu0 %v1570_v18 }
  0x33   :  { %52 = vadd.xlane.f32.xlu2 %v1577_v20 }
  0x3a   :  { %72 = vadd.xlane.f32.xlu1 %v1584_v21  ;;  %100 = vadd.xlane.f32.xlu0 %v80_v22 }
  0x3b   :  { %120 = vadd.xlane.f32.xlu2 %v90_v23 }
  0x42   :  { %102 = vadd.xlane.f32.xlu1 %v81_v25  ;;  %54 = vadd.xlane.f32.xlu0 %v1594_v24 }
  0x43   :  { %74 = vadd.xlane.f32.xlu2 %v1601_v26 }
  0x4a   :  { %56 = vadd.xlane.f32.xlu1 %v1608_v27  ;;  %122 = vadd.xlane.f32.xlu0 %v91_v28 }
  0x4b   :  { %104 = vadd.xlane.f32.xlu2 %v82_v29 }
  0x52   :  { %58 = vadd.xlane.f32.xlu0 %v1618_v30  ;;  %106 = vadd.xlane.f32.xlu1 %v83_v31 }
  0x75   :  { %v63_v50 = vpop.xlane.xlu1 %62  ;;  %v61_v51 = vpop.xlane.xlu0 %60 }
  0x76   :  { %v45_v52 = vpop.xlane.xlu2 %44  ;;  %v1668_v56 = vmul.f32 %v1662_v54, %v63_v50  ;;  %v1671_v57 = vmul.f32 %v1662_v54, %v61_v51 }
  0x77   :  { %v1677_v59 = vmul.f32 %v1662_v54, %v45_v52 }
  0x78   :  { %v172_v63 = vmul.f32 %v1668_v56, %v1668_v56  ;;  %v171_v3 = vmul.f32 %v1671_v57, %v1671_v57 }
  0x79   :  { %v163_v10 = vmul.f32 %v1677_v59, %v1677_v59 }
  0x7d   :  { %v111_v61 = vpop.xlane.xlu1 %110  ;;  %v109_v62 = vpop.xlane.xlu0 %108 }
  0x7e   :  { %v156_v4 = vmul.f32 %v1662_v54, %v111_v61  ;;  %v155_v5 = vmul.f32 %v1662_v54, %v109_v62  ;;  %v93_v7 = vpop.xlane.xlu2 %92 }
  0x7f   :  { %v147_v11 = vmul.f32 %v1662_v54, %v93_v7 }
  0x80   :  { %v188_v13 = vsub.f32 %v156_v4, %v172_v63  ;;  %v187_v16 = vsub.f32 %v155_v5, %v171_v3 }
  0x81   :  { %v179_v17 = vsub.f32 %v147_v11, %v163_v10  ;;  %v203_v10 = vsub.f32 %v1503_v1, %v1671_v57 }
  0x82   :  { %v1691_v19 = vadd.f32 1e-05, %v188_v13  ;;  %v219_v22 = vadd.f32 1e-05, %v187_v16 }
  0x83   :  { %v1693_v23 = vadd.f32 1e-05, %v179_v17 }
  0x84   :  { %1390 = vrsqrt.f32 %v1691_v19  ;;  %vm313_vm2 = vweird.f32 %v219_v22  ;;  %vm323_vm7 = vweird.f32 %v1691_v19 }
  0x85   :  { %1392 = vrsqrt.f32 %v219_v22  ;;  %v113_v25 = vpop.xlane.xlu1 %112  ;;  %v65_v28 = vpop.xlane.xlu0 %64  ;;  %vm233_vm6 = vweird.f32 %v1693_v23 }
  0x86   :  { %1394 = vrsqrt.f32 %v1693_v23  ;;  %v157_v29 = vmul.f32 %v1662_v54, %v113_v25  ;;  %v1699_v31 = vmul.f32 %v1662_v54, %v65_v28  ;;  %v47_v32 = vpop.xlane.xlu2 %46 }
  0x87   :  { %v1706_v36 = vmul.f32 %v1662_v54, %v47_v32 }
  0x88   :  { %v173_v33 = vmul.f32 %v1699_v31, %v1699_v31 }
  0x89   :  { %v164_v47 = vmul.f32 %v1706_v36, %v1706_v36 }
  0x8a   :  { %v1703_v34 = vpop.eup %1390  ;;  %v189_v35 = vsub.f32 %v157_v29, %v173_v33 }
  0x8b   :  { %v1393_v37 = vpop.eup %1392  ;;  %v318_v38 = vmul.f32 %v1703_v34, %v1691_v19  ;;  %vm324_vm3 = vweird.f32 %v1703_v34 }
  0x8c   :  { %v1395_v39 = vpop.eup %1394  ;;  %v308_v40 = vmul.f32 %v1393_v37, %v219_v22  ;;  %v1710_v41 = vadd.f32 1e-05, %v189_v35  ;;  %vm314_vm1 = vweird.f32 %v1393_v37  ;;  %v1744_v22 = vld [vmem:[%s2707_s1] ss:$0 sm:$0xff]  ;;  %vm1757_vm9 = vmor %vm323_vm7, %vm324_vm3 }
  0x8d   :  { %v319_v42 = vmul.f32 %v1703_v34, %v318_v38  ;;  %v228_v43 = vmul.f32 %v1395_v39, %v1693_v23  ;;  %v67_v44 = vpop.xlane.xlu1 %66  ;;  %v95_v45 = vpop.xlane.xlu0 %94  ;;  %vm234_vm4 = vweird.f32 %v1395_v39  ;;  %vm315_vm5 = vmor %vm313_vm2, %vm314_vm1  ;;  %v195_v38 = vsub.f32 %v1508_v2, %v1677_v59  ;;  %v1764_v2 = vld [vmem:[%s2708_s2] ss:$0 sm:$0xff] }
  0x8e   :  { %v309_v46 = vmul.f32 %v1393_v37, %v308_v40  ;;  %1396 = vrsqrt.f32 %v1710_v41  ;;  %v1718_v48 = vmul.f32 %v1662_v54, %v67_v44  ;;  %v115_v49 = vpop.xlane.xlu2 %114  ;;  %v148_v52 = vmul.f32 %v1662_v54, %v95_v45  ;;  %vm235_vm8 = vmor %vm233_vm6, %vm234_vm4 }
  0x8f   :  { %v320_v50 = vmul.f32 0.5, %v319_v42  ;;  %v229_v51 = vmul.f32 %v1395_v39, %v228_v43  ;;  %v158_v53 = vmul.f32 %v1662_v54, %v115_v49  ;;  %vm333_vm11 = vweird.f32 %v1710_v41 }
  0x90   :  { %v310_v55 = vmul.f32 0.5, %v309_v46  ;;  %v174_v58 = vmul.f32 %v1718_v48, %v1718_v48  ;;  %v180_v61 = vsub.f32 %v148_v52, %v164_v47  ;;  %v204_v47 = vsub.f32 %v1498_v0, %v1668_v56 }
  0x91   :  { %v230_v60 = vmul.f32 0.5, %v229_v51  ;;  %v321_v62 = vsub.f32 1.5, %v320_v50 }
  0x92   :  { %v311_v63 = vsub.f32 1.5, %v310_v55  ;;  %v190_v3 = vsub.f32 %v158_v53, %v174_v58  ;;  %v1724_v5 = vadd.f32 1e-05, %v180_v61 }
  0x93   :  { %v231_v4 = vsub.f32 1.5, %v230_v60  ;;  %v322_v29 = vmul.f32 %v1703_v34, %v321_v62 }
  0x94   :  { %v1726_v7 = vpop.eup %1396  ;;  %v1730_v11 = vadd.f32 1e-05, %v190_v3  ;;  %v312_v13 = vmul.f32 %v1393_v37, %v311_v63  ;;  %1398 = vrsqrt.f32 %v1724_v5  ;;  %vm243_vm14 = vweird.f32 %v1724_v5 }
  0x95   :  { %v328_v16 = vmul.f32 %v1726_v7, %v1710_v41  ;;  %v97_v17 = vpop.xlane.xlu1 %96  ;;  %v49_v25 = vpop.xlane.xlu0 %48  ;;  %v232_v33 = vmul.f32 %v1395_v39, %v231_v4  ;;  %v326_v45 = vsel %vm1757_vm9, %v1703_v34, %v322_v29  ;;  %vm334_vm10 = vweird.f32 %v1726_v7 }
  0x96   :  { %1400 = vrsqrt.f32 %v1730_v11  ;;  %v149_v28 = vmul.f32 %v1662_v54, %v97_v17  ;;  %v1739_v1 = vmul.f32 %v1662_v54, %v49_v25  ;;  %v69_v57 = vpop.xlane.xlu2 %68  ;;  %v316_v35 = vsel %vm315_vm5, %v1393_v37, %v312_v13  ;;  %vm1799_vm12 = vmor %vm333_vm11, %vm334_vm10 }
  0x97   :  { %v329_v32 = vmul.f32 %v1726_v7, %v328_v16  ;;  %v395_v42 = vmul.f32 %v316_v35, %v203_v10  ;;  %v236_v44 = vsel %vm235_vm8, %v1395_v39, %v232_v33  ;;  %v1773_v39 = vmul.f32 %v1662_v54, %v69_v57 }
  0x98   :  { %v165_v40 = vmul.f32 %v1739_v1, %v1739_v1  ;;  %v387_v19 = vmul.f32 %v236_v44, %v195_v38  ;;  %v396_v58 = vmul.f32 %v326_v45, %v204_v47  ;;  %v205_v35 = vsub.f32 %v1522_v6, %v1699_v31 }
  0x99   :  { %v330_v23 = vmul.f32 0.5, %v329_v32  ;;  %v414_v37 = vmul.f32 %v1744_v22, %v395_v42  ;;  %v175_v4 = vmul.f32 %v1773_v39, %v1773_v39  ;;  %vm343_vm1 = vweird.f32 %v1730_v11 }
  0x9a   :  { %v181_v59 = vsub.f32 %v149_v28, %v165_v40  ;;  %v1399_v46 = vpop.eup %1398  ;;  %v406_v53 = vmul.f32 %v1744_v22, %v387_v19  ;;  %v415_v32 = vmul.f32 %v1744_v22, %v396_v58  ;;  %v197_v25 = vsub.f32 %v1546_v12, %v1739_v1 }
  0x9b   :  { %v331_v49 = vsub.f32 1.5, %v330_v23  ;;  %v238_v51 = vmul.f32 %v1399_v46, %v1724_v5  ;;  %v433_v55 = vadd.f32 %v1764_v2, %v414_v37  ;;  %vm244_vm13 = vweird.f32 %v1399_v46 }
  0x9c   :  { %v1775_v50 = vpop.eup %1400  ;;  %v1778_v52 = vadd.f32 1e-05, %v181_v59  ;;  %v425_v62 = vadd.f32 %v1764_v2, %v406_v53  ;;  %v196_v23 = vsub.f32 %v1529_v8, %v1706_v36  ;;  %vm245_vm0 = vmor %vm243_vm14, %vm244_vm13  ;;  %v434_v6 = vadd.f32 %v1764_v2, %v415_v32 }
  0x9d   :  { %v338_v34 = vmul.f32 %v1775_v50, %v1730_v11  ;;  %v51_v0 = vpop.xlane.xlu1 %50  ;;  %v117_v56 = vpop.xlane.xlu0 %116  ;;  %v332_v60 = vmul.f32 %v1726_v7, %v331_v49  ;;  %v239_v61 = vmul.f32 %v1399_v46, %v238_v51  ;;  %501 = vmatmul.f32.vlgmr.msra.gmra.mxu2 %v433_v55  ;;  %vm344_vm15 = vweird.f32 %v1775_v50 }
  0x9e   :  { %1402 = vrsqrt.f32 %v1778_v52  ;;  %v99_v63 = vpop.xlane.xlu2 %98  ;;  %v1792_v10 = vmul.f32 %v1662_v54, %v51_v0  ;;  %v159_v13 = vmul.f32 %v1662_v54, %v117_v56  ;;  %477 = vmatmul.f32.vlgmr.msra.gmra.mxu0 %v425_v62  ;;  %vm1833_vm2 = vmor %vm343_vm1, %vm344_vm15  ;;  %v206_v56 = vsub.f32 %v1536_v9, %v1718_v48 }
  0x9f   :  { %v339_v3 = vmul.f32 %v1775_v50, %v338_v34  ;;  %v240_v16 = vmul.f32 0.5, %v239_v61  ;;  %v150_v17 = vmul.f32 %v1662_v54, %v99_v63  ;;  %v336_v41 = vsel %vm1799_vm12, %v1726_v7, %v332_v60 }
  0xa0   :  { %v166_v57 = vmul.f32 %v1792_v10, %v1792_v10  ;;  %v191_v29 = vsub.f32 %v159_v13, %v175_v4  ;;  %v397_v59 = vmul.f32 %v336_v41, %v205_v35  ;;  %vm253_vm4 = vweird.f32 %v1778_v52 }
  0xa1   :  { %v340_v28 = vmul.f32 0.5, %v339_v3  ;;  %v241_v33 = vsub.f32 1.5, %v240_v16 }
  0xa2   :  { %v1811_v40 = vadd.f32 1e-05, %v191_v29  ;;  %v182_v42 = vsub.f32 %v150_v17, %v166_v57  ;;  %v416_v0 = vmul.f32 %v1744_v22, %v397_v59 }
  0xa3   :  { %v341_v38 = vsub.f32 1.5, %v340_v28  ;;  %v242_v44 = vmul.f32 %v1399_v46, %v241_v33 }
  0xa4   :  { %v1403_v43 = vpop.eup %1402  ;;  %1404 = vrsqrt.f32 %v1811_v40  ;;  %v1820_v37 = vadd.f32 1e-05, %v182_v42  ;;  %v435_v48 = vadd.f32 %v1764_v2, %v416_v0  ;;  %vm353_vm7 = vweird.f32 %v1811_v40 }
  0xa5   :  { %v248_v7 = vmul.f32 %v1403_v43, %v1778_v52  ;;  %v119_v31 = vpop.xlane.xlu1 %118  ;;  %v71_v19 = vpop.xlane.xlu0 %70  ;;  %v246_v5 = vsel %vm245_vm0, %v1399_v46, %v242_v44  ;;  %504 = vmatmul.f32.gmra.mxu2 %v434_v6  ;;  %v342_v51 = vmul.f32 %v1775_v50, %v341_v38  ;;  %vm254_vm3 = vweird.f32 %v1403_v43 }
  0xa6   :  { %v160_v45 = vmul.f32 %v1662_v54, %v119_v31  ;;  %v1824_v8 = vmul.f32 %v1662_v54, %v71_v19  ;;  %v53_v36 = vpop.xlane.xlu2 %52  ;;  %v388_v49 = vmul.f32 %v246_v5, %v196_v23  ;;  %1406 = vrsqrt.f32 %v1820_v37  ;;  %vm255_vm5 = vmor %vm253_vm4, %vm254_vm3 }
  0xa7   :  { %v249_v47 = vmul.f32 %v1403_v43, %v248_v7  ;;  %v346_v58 = vsel %vm1833_vm2, %v1775_v50, %v342_v51  ;;  %v1847_v62 = vmul.f32 %v1662_v54, %v53_v36  ;;  %vm263_vm10 = vweird.f32 %v1820_v37 }
  0xa8   :  { %v176_v53 = vmul.f32 %v1824_v8, %v1824_v8  ;;  %v407_v46 = vmul.f32 %v1744_v22, %v388_v49  ;;  %v398_v16 = vmul.f32 %v346_v58, %v206_v56  ;;  %v207_v56 = vsub.f32 %v1553_v14, %v1773_v39 }
  0xa9   :  { %v250_v55 = vmul.f32 0.5, %v249_v47  ;;  %v167_v41 = vmul.f32 %v1847_v62, %v1847_v62 }
  0xaa   :  { %v192_v11 = vsub.f32 %v160_v45, %v176_v53  ;;  %v1844_v60 = vpop.eup %1404  ;;  %v426_v63 = vadd.f32 %v1764_v2, %v407_v46  ;;  %v417_v44 = vmul.f32 %v1744_v22, %v398_v16 }
  0xab   :  { %v251_v61 = vsub.f32 1.5, %v250_v55  ;;  %v348_v3 = vmul.f32 %v1844_v60, %v1811_v40  ;;  %vm354_vm6 = vweird.f32 %v1844_v60 }
  0xac   :  { %v1852_v4 = vadd.f32 1e-05, %v192_v11  ;;  %480 = vmatmul.f32.gmra.mxu0 %v426_v63  ;;  %v1407_v17 = vpop.eup %1406  ;;  %v436_v49 = vadd.f32 %v1764_v2, %v417_v44  ;;  %vm1881_vm8 = vmor %vm353_vm7, %vm354_vm6 }
  0xad   :  { %v252_v9 = vmul.f32 %v1403_v43, %v251_v61  ;;  %v73_v50 = vpop.xlane.xlu1 %72  ;;  %v101_v13 = vpop.xlane.xlu0 %100  ;;  %v349_v28 = vmul.f32 %v1844_v60, %v348_v3  ;;  %v258_v32 = vmul.f32 %v1407_v17, %v1820_v37  ;;  %507 = vmatmul.f32.gmra.mxu2 %v435_v48  ;;  %vm264_vm9 = vweird.f32 %v1407_v17 }
  0xae   :  { %1408 = vrsqrt.f32 %v1852_v4  ;;  %v1861_v57 = vmul.f32 %v1662_v54, %v73_v50  ;;  %v121_v29 = vpop.xlane.xlu2 %120  ;;  %v151_v33 = vmul.f32 %v1662_v54, %v101_v13  ;;  %v198_v3 = vsub.f32 %v1560_v15, %v1792_v10  ;;  %vm265_vm11 = vmor %vm263_vm10, %vm264_vm9 }
  0xaf   :  { %v256_v52 = vsel %vm255_vm5, %v1403_v43, %v252_v9  ;;  %v350_v12 = vmul.f32 0.5, %v349_v28  ;;  %v259_v38 = vmul.f32 %v1407_v17, %v258_v32  ;;  %v161_v23 = vmul.f32 %v1662_v54, %v121_v29 }
  0xb0   :  { %v389_v35 = vmul.f32 %v256_v52, %v197_v25  ;;  %v177_v1 = vmul.f32 %v1861_v57, %v1861_v57  ;;  %v183_v42 = vsub.f32 %v151_v33, %v167_v41  ;;  %vm363_vm13 = vweird.f32 %v1852_v4 }
  0xb1   :  { %v351_v43 = vsub.f32 1.5, %v350_v12  ;;  %v260_v7 = vmul.f32 0.5, %v259_v38  ;;  %v208_v41 = vsub.f32 %v1570_v18, %v1824_v8 }
  0xb2   :  { %v408_v59 = vmul.f32 %v1744_v22, %v389_v35  ;;  %v1873_v6 = vadd.f32 1e-05, %v183_v42  ;;  %v193_v31 = vsub.f32 %v161_v23, %v177_v1 }
  0xb3   :  { %v352_v36 = vmul.f32 %v1844_v60, %v351_v43  ;;  %v261_v5 = vsub.f32 1.5, %v260_v7 }
  0xb4   :  { %v1409_v19 = vpop.eup %1408  ;;  %v427_v45 = vadd.f32 %v1764_v2, %v408_v59  ;;  %1410 = vrsqrt.f32 %v1873_v6  ;;  %v1885_v55 = vadd.f32 1e-05, %v193_v31  ;;  %vm273_vm0 = vweird.f32 %v1873_v6 }
  0xb5   :  { %v358_v47 = vmul.f32 %v1409_v19, %v1852_v4  ;;  %v103_v51 = vpop.xlane.xlu1 %102  ;;  %v55_v53 = vpop.xlane.xlu0 %54  ;;  %510 = vmatmul.f32.gmra.mxu2 %v436_v49  ;;  %v356_v58 = vsel %vm1881_vm8, %v1844_v60, %v352_v36  ;;  %v262_v61 = vmul.f32 %v1407_v17, %v261_v5  ;;  %vm364_vm12 = vweird.f32 %v1409_v19 }
  0xb6   :  { %v152_v40 = vmul.f32 %v1662_v54, %v103_v51  ;;  %v1889_v46 = vmul.f32 %v1662_v54, %v55_v53  ;;  %483 = vmatmul.f32.gmra.mxu0 %v427_v45  ;;  %v75_v0 = vpop.xlane.xlu2 %74  ;;  %1412 = vrsqrt.f32 %v1885_v55  ;;  %v399_v39 = vmul.f32 %v356_v58, %v207_v56  ;;  %vm365_vm14 = vmor %vm363_vm13, %vm364_vm12 }
  0xb7   :  { %v359_v11 = vmul.f32 %v1409_v19, %v358_v47  ;;  %v266_v48 = vsel %vm265_vm11, %v1407_v17, %v262_v61  ;;  %v1906_v37 = vmul.f32 %v1662_v54, %v75_v0  ;;  %v199_v56 = vsub.f32 %v1577_v20, %v1847_v62 }
  0xb8   :  { %v168_v63 = vmul.f32 %v1889_v46, %v1889_v46  ;;  %v418_v13 = vmul.f32 %v1744_v22, %v399_v39  ;;  %v390_v16 = vmul.f32 %v266_v48, %v198_v3  ;;  %vm373_vm3 = vweird.f32 %v1885_v55 }
  0xb9   :  { %v360_v14 = vmul.f32 0.5, %v359_v11  ;;  %v178_v38 = vmul.f32 %v1906_v37, %v1906_v37 }
  0xba   :  { %v184_v9 = vsub.f32 %v152_v40, %v168_v63  ;;  %v1903_v50 = vpop.eup %1410  ;;  %v437_v28 = vadd.f32 %v1764_v2, %v418_v13  ;;  %v409_v52 = vmul.f32 %v1744_v22, %v390_v16 }
  0xbb   :  { %v361_v60 = vsub.f32 1.5, %v360_v14  ;;  %v268_v25 = vmul.f32 %v1903_v50, %v1873_v6  ;;  %vm274_vm15 = vweird.f32 %v1903_v50  ;;  %v209_v14 = vsub.f32 %v1584_v21, %v1861_v57 }
  0xbc   :  { %v1911_v15 = vadd.f32 1e-05, %v184_v9  ;;  %v1413_v32 = vpop.eup %1412  ;;  %v428_v59 = vadd.f32 %v1764_v2, %v409_v52  ;;  %vm275_vm2 = vmor %vm273_vm0, %vm274_vm15 }
  0xbd   :  { %v362_v10 = vmul.f32 %v1409_v19, %v361_v60  ;;  %v57_v17 = vpop.xlane.xlu1 %56  ;;  %v123_v29 = vpop.xlane.xlu0 %122  ;;  %v269_v33 = vmul.f32 %v1903_v50, %v268_v25  ;;  %v368_v1 = vmul.f32 %v1413_v32, %v1885_v55  ;;  %513 = vmatmul.f32.gmra.mxu2 %v437_v28  ;;  %vm374_vm1 = vweird.f32 %v1413_v32 }
  0xbe   :  { %1414 = vrsqrt.f32 %v1911_v15  ;;  %v1922_v35 = vmul.f32 %v1662_v54, %v57_v17  ;;  %v105_v4 = vpop.xlane.xlu2 %104  ;;  %v162_v42 = vmul.f32 %v1662_v54, %v123_v29  ;;  %486 = vmatmul.f32.gmra.mxu0 %v428_v59  ;;  %vm375_vm4 = vmor %vm373_vm3, %vm374_vm1  ;;  %vm283_vm6 = vweird.f32 %v1911_v15 }
  0xbf   :  { %v366_v12 = vsel %vm365_vm14, %v1409_v19, %v362_v10  ;;  %v270_v8 = vmul.f32 0.5, %v269_v33  ;;  %v369_v44 = vmul.f32 %v1413_v32, %v368_v1  ;;  %v153_v7 = vmul.f32 %v1662_v54, %v105_v4 }
  0xc0   :  { %v400_v18 = vmul.f32 %v366_v12, %v208_v41  ;;  %v169_v23 = vmul.f32 %v1922_v35, %v1922_v35  ;;  %v194_v43 = vsub.f32 %v162_v42, %v178_v38  ;;  %v200_v28 = vsub.f32 %v1594_v24, %v1889_v46 }
  0xc1   :  { %v271_v31 = vsub.f32 1.5, %v270_v8  ;;  %v370_v45 = vmul.f32 0.5, %v369_v44  ;;  %v210_v42 = vsub.f32 %v1601_v26, %v1906_v37 }
  0xc2   :  { %v419_v19 = vmul.f32 %v1744_v22, %v400_v18  ;;  %v1934_v36 = vadd.f32 1e-05, %v194_v43  ;;  %v185_v5 = vsub.f32 %v153_v7, %v169_v23  ;;  %v201_v7 = vsub.f32 %v1608_v27, %v1922_v35 }
  0xc3   :  { %v272_v51 = vmul.f32 %v1903_v50, %v271_v31  ;;  %v371_v53 = vsub.f32 1.5, %v370_v45 }
  0xc4   :  { %v1415_v47 = vpop.eup %1414  ;;  %v438_v49 = vadd.f32 %v1764_v2, %v419_v19  ;;  %1416 = vrsqrt.f32 %v1934_v36  ;;  %v217_v11 = vadd.f32 1e-05, %v185_v5  ;;  %vm383_vm9 = vweird.f32 %v1934_v36 }
  0xc5   :  { %v278_v34 = vmul.f32 %v1415_v47, %v1911_v15  ;;  %v59_v40 = vpop.xlane.xlu0 %58  ;;  %v107_v0 = vpop.xlane.xlu1 %106  ;;  %v276_v63 = vsel %vm275_vm2, %v1903_v50, %v272_v51  ;;  %v372_v3 = vmul.f32 %v1413_v32, %v371_v53  ;;  %vm284_vm5 = vweird.f32 %v1415_v47 }
  0xc6   :  { %v1946_v6 = vmul.f32 %v1662_v54, %v59_v40  ;;  %v154_v58 = vmul.f32 %v1662_v54, %v107_v0  ;;  %516 = vmatmul.f32.gmra.mxu2 %v438_v49  ;;  %1418 = vrsqrt.f32 %v217_v11  ;;  %v391_v39 = vmul.f32 %v276_v63, %v199_v56  ;;  %vm285_vm7 = vmor %vm283_vm6, %vm284_vm5  ;;  %v1245_v40 = vld [vmem:[%s2711_s5 + $0x78] sm:$0xff]  ;;  %v1988_v0 = vld [vmem:[%s2710_s4] ss:$0 sm:$0xff] }
  0xc7   :  { %v279_v61 = vmul.f32 %v1415_v47, %v278_v34  ;;  %v376_v9 = vsel %vm375_vm4, %v1413_v32, %v372_v3  ;;  %vm293_vm12 = vweird.f32 %v217_v11  ;;  %1250 = vmatpush.msra.mxu1 %v1245_v40  ;;  %1367 = vmatpush.msra.mxu3 %v1245_v40  ;;  %v1242_v56 = vld [vmem:[%s2711_s5 + $0x60] sm:$0xff] }
  0xc8   :  { %v170_v20 = vmul.f32 %v1946_v6, %v1946_v6  ;;  %v401_v48 = vmul.f32 %v376_v9, %v209_v14  ;;  %v410_v50 = vmul.f32 %v1744_v22, %v391_v39  ;;  %v202_v49 = vsub.f32 %v1618_v30, %v1946_v6  ;;  %v1244_v30 = vld [vmem:[%s2711_s5 + $0x70] sm:$0xff]  ;;  %v1241_v6 = vld [vmem:[%s2711_s5 + $0x58] sm:$0xff]  ;;  %v1238_v9 = vld [vmem:[%s2711_s5 + $0x40] sm:$0xff] }
  0xc9   :  { %v280_v62 = vmul.f32 0.5, %v279_v61  ;;  %1251 = vmatpush.msra.mxu1 %v1244_v30  ;;  %1368 = vmatpush.msra.mxu3 %v1244_v30  ;;  %v1240_v61 = vld [vmem:[%s2711_s5 + $0x50] sm:$0xff] }
  0xca   :  { %v186_v54 = vsub.f32 %v154_v58, %v170_v20  ;;  %v1417_v55 = vpop.eup %1416  ;;  %v420_v21 = vmul.f32 %v1744_v22, %v401_v48  ;;  %v429_v25 = vadd.f32 %v1764_v2, %v410_v50  ;;  %v1239_v20 = vld [vmem:[%s2711_s5 + $0x48] sm:$0xff] }
  0xcb   :  { %v281_v60 = vsub.f32 1.5, %v280_v62  ;;  %v378_v13 = vmul.f32 %v1417_v55, %v1934_v36  ;;  %vm384_vm8 = vweird.f32 %v1417_v55 }
  0xcc   :  { %v218_v16 = vadd.f32 1e-05, %v186_v54  ;;  %v1419_v10 = vpop.eup %1418  ;;  %v439_v29 = vadd.f32 %v1764_v2, %v420_v21  ;;  %489 = vmatmul.f32.gmra.mxu0 %v429_v25  ;;  %vm385_vm10 = vmor %vm383_vm9, %vm384_vm8  ;;  %v1236_v21 = vld [vmem:[%s2711_s5 + $0x30] sm:$0xff] }
  0xcd   :  { %v282_v57 = vmul.f32 %v1415_v47, %v281_v60  ;;  %v379_v17 = vmul.f32 %v1417_v55, %v378_v13  ;;  %v288_v32 = vmul.f32 %v1419_v10, %v217_v11  ;;  %vm294_vm11 = vweird.f32 %v1419_v10  ;;  %v1237_v60 = vld [vmem:[%s2711_s5 + $0x38] sm:$0xff] }
  0xce   :  { %1420 = vrsqrt.f32 %v218_v16  ;;  %519 = vmatmul.f32.gmra.mxu2 %v439_v29  ;;  %vm295_vm13 = vmor %vm293_vm12, %vm294_vm11  ;;  %vm303_vm15 = vweird.f32 %v218_v16 }
  0xcf   :  { %v286_v52 = vsel %vm285_vm7, %v1415_v47, %v282_v57  ;;  %v380_v33 = vmul.f32 0.5, %v379_v17  ;;  %v289_v4 = vmul.f32 %v1419_v10, %v288_v32 }
  0xd0   :  { %v392_v41 = vmul.f32 %v286_v52, %v200_v28  ;;  %v1235_v52 = vld [vmem:[%s2711_s5 + $0x28] sm:$0xff] }
  0xd1   :  { %v381_v12 = vsub.f32 1.5, %v380_v33  ;;  %v290_v1 = vmul.f32 0.5, %v289_v4 }
  0xd2   :  { %v411_v15 = vmul.f32 %v1744_v22, %v392_v41 }
  0xd3   :  { %v382_v46 = vmul.f32 %v1417_v55, %v381_v12  ;;  %v291_v18 = vsub.f32 1.5, %v290_v1 }
  0xd4   :  { %v1421_v38 = vpop.eup %1420  ;;  %v430_v24 = vadd.f32 %v1764_v2, %v411_v15  ;;  %v1234_v15 = vld [vmem:[%s2711_s5 + $0x20] sm:$0xff] }
  0xd5   :  { %v298_v8 = vmul.f32 %v1421_v38, %v218_v16  ;;  %v386_v23 = vsel %vm385_vm10, %v1417_v55, %v382_v46  ;;  %v292_v59 = vmul.f32 %v1419_v10, %v291_v18  ;;  %vm304_vm14 = vweird.f32 %v1421_v38  ;;  %v1233_v46 = vld [vmem:[%s2711_s5 + $0x18] sm:$0xff] }
  0xd6   :  { %492 = vmatmul.f32.gmra.mxu0 %v430_v24  ;;  %v402_v43 = vmul.f32 %v386_v23, %v210_v42  ;;  %vm305_vm0 = vmor %vm303_vm15, %vm304_vm14 }
  0xd7   :  { %v299_v44 = vmul.f32 %v1421_v38, %v298_v8  ;;  %v296_v45 = vsel %vm295_vm13, %v1419_v10, %v292_v59 }
  0xd8   :  { %v421_v19 = vmul.f32 %v1744_v22, %v402_v43  ;;  %v393_v36 = vmul.f32 %v296_v45, %v201_v7  ;;  %v1232_v43 = vld [vmem:[%s2711_s5 + $0x10] sm:$0xff] }
  0xd9   :  { %v300_v31 = vmul.f32 0.5, %v299_v44 }
  0xda   :  { %v440_v37 = vadd.f32 %v1764_v2, %v421_v19  ;;  %v412_v5 = vmul.f32 %v1744_v22, %v393_v36 }
  0xdb   :  { %v301_v26 = vsub.f32 1.5, %v300_v31 }
  0xdc   :  { %522 = vmatmul.f32.gmra.mxu2 %v440_v37  ;;  %v431_v27 = vadd.f32 %v1764_v2, %v412_v5 }
  0xdd   :  { %v302_v47 = vmul.f32 %v1421_v38, %v301_v26  ;;  %v1231_v26 = vld [vmem:[%s2711_s5 + $0x8] sm:$0xff] }
  0xde   :  { %495 = vmatmul.f32.gmra.mxu0 %v431_v27 }
  0xdf   :  { %v306_v35 = vsel %vm305_vm0, %v1421_v38, %v302_v47 }
  0xe0   :  { %v394_v51 = vmul.f32 %v306_v35, %v202_v49  ;;  %v1230_v35 = vld [vmem:[%s2711_s5] sm:$0xff] }
  0xe2   :  { %v413_v53 = vmul.f32 %v1744_v22, %v394_v51  ;;  %v1243_v22 = vld [vmem:[%s2711_s5 + $0x68] sm:$0xff] }
  0xe3   :  { %1252 = vmatpush.msra.mxu1 %v1243_v22  ;;  %1369 = vmatpush.msra.mxu3 %v1243_v22 }
  0xe4   :  { %v432_v34 = vadd.f32 %v1764_v2, %v413_v53 }
  0xe5   :  { %1253 = vmatpush.msra.mxu1 %v1242_v56  ;;  %1370 = vmatpush.msra.mxu3 %v1242_v56 }
  0xe6   :  { %498 = vmatmul.f32.gmra.mxu0 %v432_v34 }
  0xe7   :  { %1254 = vmatpush.msra.mxu1 %v1241_v6  ;;  %1371 = vmatpush.msra.mxu3 %v1241_v6 }
  0xe9   :  { %1255 = vmatpush.msra.mxu1 %v1240_v61  ;;  %1372 = vmatpush.msra.mxu3 %v1240_v61 }
  0xeb   :  { %1256 = vmatpush.msra.mxu1 %v1239_v20  ;;  %1373 = vmatpush.msra.mxu3 %v1239_v20 }
  0xed   :  { %1257 = vmatpush.msra.mxu1 %v1238_v9  ;;  %1374 = vmatpush.msra.mxu3 %v1238_v9 }
  0xef   :  { %1258 = vmatpush.msra.mxu1 %v1237_v60  ;;  %1375 = vmatpush.msra.mxu3 %v1237_v60 }
  0xf1   :  { %1259 = vmatpush.msra.mxu1 %v1236_v21  ;;  %1376 = vmatpush.msra.mxu3 %v1236_v21 }
  0xf3   :  { %1260 = vmatpush.msra.mxu1 %v1235_v52  ;;  %1377 = vmatpush.msra.mxu3 %v1235_v52 }
  0xf5   :  { %1261 = vmatpush.msra.mxu1 %v1234_v15  ;;  %1378 = vmatpush.msra.mxu3 %v1234_v15 }
  0xf7   :  { %1262 = vmatpush.msra.mxu1 %v1233_v46  ;;  %1379 = vmatpush.msra.mxu3 %v1233_v46 }
  0xf9   :  { %1263 = vmatpush.msra.mxu1 %v1232_v43  ;;  %1380 = vmatpush.msra.mxu3 %v1232_v43 }
  0xfb   :  { %1264 = vmatpush.msra.mxu1 %v1231_v26  ;;  %1381 = vmatpush.msra.mxu3 %v1231_v26 }
  0xfd   :  { %1265 = vmatpush.msra.mxu1 %v1230_v35  ;;  %1382 = vmatpush.msra.mxu3 %v1230_v35 }
 0x11b   :  { %v478_v2 = vpop.f32.mrf.mxu0 }
 0x11c   :  { %v1997_v11 = vadd.f32 %v1988_v0, %v478_v2 }
 0x11e   :  { %v2003_v58 = vmul.f32 0.70710677, %v1997_v11  ;;  %v2120_v46 = vmul.f32 0.5, %v1997_v11 }
 0x120   :  { %v558_v63 = vmul.f32 %v2003_v58, %v2003_v58  ;;  %v502_v3 = vpop.f32.mrf.mxu2 }
 0x121   :  { %v2011_v14 = vadd.f32 %v1988_v0, %v502_v3 }
 0x122   :  { %v2016_v62 = vmin.f32 %v558_v63, 16.0 }
 0x123   :  { %v2019_v39 = vmul.f32 0.70710677, %v2011_v14 }
 0x124   :  { %v560_v54 = vmul.f32 2.1237322e-06, %v2016_v62  ;;  %v571_v48 = vmul.f32 3.8918573e-05, %v2016_v62 }
 0x125   :  { %v878_v55 = vmul.f32 %v2019_v39, %v2019_v39 }
 0x126   :  { %v572_v50 = vadd.f32 0.001143296, %v571_v48  ;;  %v561_v13 = vadd.f32 0.00028619796, %v560_v54 }
 0x127   :  { %v2031_v16 = vmin.f32 %v878_v55, 16.0 }
 0x128   :  { %v505_v57 = vpop.f32.mrf.mxu2  ;;  %v573_v10 = vmul.f32 %v572_v50, %v2016_v62  ;;  %v562_v41 = vmul.f32 %v561_v13, %v2016_v62 }
 0x129   :  { %v481_v25 = vpop.f32.mrf.mxu0  ;;  %v880_v28 = vmul.f32 2.1237322e-06, %v2031_v16  ;;  %v2039_v17 = vadd.f32 %v1988_v0, %v505_v57  ;;  %v891_v38 = vmul.f32 3.8918573e-05, %v2031_v16 }
 0x12a   :  { %v2042_v29 = vadd.f32 %v1988_v0, %v481_v25  ;;  %v574_v32 = vadd.f32 0.014752088, %v573_v10  ;;  %v563_v23 = vadd.f32 0.0036580483, %v562_v41 }
 0x12b   :  { %v881_v33 = vadd.f32 0.00028619796, %v880_v28  ;;  %v2049_v4 = vmul.f32 0.70710677, %v2039_v17  ;;  %v892_v19 = vadd.f32 0.001143296, %v891_v38 }
 0x12c   :  { %v2052_v12 = vmul.f32 0.70710677, %v2042_v29  ;;  %v575_v1 = vmul.f32 %v574_v32, %v2016_v62  ;;  %v564_v27 = vmul.f32 %v563_v23, %v2016_v62 }
 0x12d   :  { %v918_v24 = vmul.f32 %v2049_v4, %v2049_v4  ;;  %v882_v42 = vmul.f32 %v881_v33, %v2031_v16  ;;  %v893_v34 = vmul.f32 %v892_v19, %v2031_v16 }
 0x12e   :  { %v598_v18 = vmul.f32 %v2052_v12, %v2052_v12  ;;  %v576_v8 = vadd.f32 0.112945676, %v575_v1  ;;  %v565_v6 = vadd.f32 0.05243302, %v564_v27 }
 0x12f   :  { %v2067_v44 = vmin.f32 %v918_v24, 16.0  ;;  %v883_v37 = vadd.f32 0.0036580483, %v882_v42  ;;  %v894_v9 = vadd.f32 0.014752088, %v893_v34 }
 0x130   :  { %v2072_v59 = vmin.f32 %v598_v18, 16.0  ;;  %v508_v7 = vpop.f32.mrf.mxu2  ;;  %v577_v31 = vmul.f32 %v576_v8, %v2016_v62  ;;  %v566_v50 = vmul.f32 %v565_v6, %v2016_v62  ;;  %v2123_v18 = vmul.f32 0.5, %v2011_v14 }
 0x131   :  { %v2076_v45 = vadd.f32 %v1988_v0, %v508_v7  ;;  %v920_v5 = vmul.f32 2.1237322e-06, %v2067_v44  ;;  %v884_v22 = vmul.f32 %v883_v37, %v2031_v16  ;;  %v895_v57 = vmul.f32 %v894_v9, %v2031_v16 }
 0x132   :  { %v578_v49 = vadd.f32 0.4994258, %v577_v31  ;;  %v600_v51 = vmul.f32 2.1237322e-06, %v2072_v59  ;;  %v567_v32 = vadd.f32 0.18741608, %v566_v50 }
 0x133   :  { %v484_v36 = vpop.f32.mrf.mxu0  ;;  %v2089_v53 = vmul.f32 0.70710677, %v2076_v45  ;;  %v921_v2 = vadd.f32 0.00028619796, %v920_v5  ;;  %v885_v48 = vadd.f32 0.05243302, %v884_v22 }
 0x134   :  { %v485_v47 = vadd.f32 %v1988_v0, %v484_v36  ;;  %v579_v30 = vmul.f32 %v578_v49, %v2016_v62  ;;  %v601_v63 = vadd.f32 0.00028619796, %v600_v51  ;;  %v896_v24 = vadd.f32 0.112945676, %v895_v57 }
 0x135   :  { %v958_v56 = vmul.f32 %v2089_v53, %v2089_v53  ;;  %v922_v55 = vmul.f32 %v921_v2, %v2067_v44  ;;  %v886_v10 = vmul.f32 %v885_v48, %v2031_v16  ;;  %v568_v7 = vmul.f32 %v567_v32, %v2016_v62 }
 0x136   :  { %v2092_v40 = vmul.f32 0.70710677, %v485_v47  ;;  %v2098_v61 = vadd.f32 1.0, %v579_v30  ;;  %v602_v13 = vmul.f32 %v601_v63, %v2072_v59  ;;  %v2138_v14 = vmul.f32 0.5, %v2039_v17 }
 0x137   :  { %v2102_v54 = vmin.f32 %v958_v56, 16.0  ;;  %v923_v28 = vadd.f32 0.0036580483, %v922_v55  ;;  %v887_v8 = vadd.f32 0.18741608, %v886_v10  ;;  %v897_v37 = vmul.f32 %v896_v24, %v2031_v16 }
 0x138   :  { %v638_v3 = vmul.f32 %v2092_v40, %v2092_v40  ;;  %v511_v20 = vpop.f32.mrf.mxu2  ;;  %1422 = vrcp.f32 %v2098_v61  ;;  %v603_v33 = vadd.f32 0.0036580483, %v602_v13  ;;  %v2143_v5 = vmul.f32 0.5, %v2042_v29 }
 0x139   :  { %v512_v60 = vadd.f32 %v1988_v0, %v511_v20  ;;  %v960_v25 = vmul.f32 2.1237322e-06, %v2102_v54  ;;  %v924_v23 = vmul.f32 %v923_v28, %v2067_v44  ;;  %v2146_v62 = vmul.f32 0.5, %v2076_v45 }
 0x13a   :  { %v2109_v21 = vmin.f32 %v638_v3, 16.0  ;;  %v604_v36 = vmul.f32 %v603_v33, %v2072_v59  ;;  %v2149_v27 = vmul.f32 0.5, %v485_v47  ;;  %v888_v35 = vmul.f32 %v887_v8, %v2031_v16 }
 0x13b   :  { %v2114_v52 = vmul.f32 0.70710677, %v512_v60  ;;  %v487_v1 = vpop.f32.mrf.mxu0  ;;  %v961_v42 = vadd.f32 0.00028619796, %v960_v25  ;;  %v925_v51 = vadd.f32 0.05243302, %v924_v23  ;;  %vm586_vm1 = vweird.f32 %v2098_v61 }
 0x13c   :  { %v640_v15 = vmul.f32 2.1237322e-06, %v2109_v21  ;;  %v2130_v31 = vadd.f32 %v1988_v0, %v487_v1  ;;  %v569_v30 = vadd.f32 1.1283791, %v568_v7  ;;  %v605_v45 = vadd.f32 0.05243302, %v604_v36 }
 0x13d   :  { %v998_v43 = vmul.f32 %v2114_v52, %v2114_v52  ;;  %v962_v49 = vmul.f32 %v961_v42, %v2102_v54  ;;  %v898_v6 = vadd.f32 0.4994258, %v897_v37  ;;  %v592_v20 = vand.u32 2147483648, %v2098_v61 }
 0x13e   :  { %v2116_v41 = vpop.eup %1422  ;;  %v641_v26 = vadd.f32 0.00028619796, %v640_v15  ;;  %v2155_v22 = vmul.f32 0.70710677, %v2130_v31  ;;  %v889_v9 = vadd.f32 1.1283791, %v888_v35  ;;  %v926_v48 = vmul.f32 %v925_v51, %v2067_v44 }
 0x13f   :  { %v582_v11 = vmul.f32 %v2116_v41, %v2098_v61  ;;  %v2152_v17 = vmin.f32 %v998_v43, 16.0  ;;  %v963_v63 = vadd.f32 0.0036580483, %v962_v49  ;;  %vm587_vm2 = vweird.f32 %v2116_v41 }
 0x140   :  { %v514_v38 = vpop.f32.mrf.mxu2  ;;  %v642_v2 = vmul.f32 %v641_v26, %v2109_v21  ;;  %v678_v57 = vmul.f32 %v2155_v22, %v2155_v22  ;;  %v590_v28 = vand.u32 2147483647, %v2098_v61  ;;  %v2179_v33 = vmul.f32 0.5, %v512_v60  ;;  %vm2186_vm3 = vmor %vm586_vm1, %vm587_vm2 }
 0x141   :  { %v2133_v19 = vadd.f32 %v1988_v0, %v514_v38  ;;  %v583_v34 = vsub.f32 1.0, %v582_v11  ;;  %v1000_v55 = vmul.f32 2.1237322e-06, %v2152_v17  ;;  %v899_v38 = vmul.f32 %v898_v6, %v2031_v16 }
 0x142   :  { %v643_v32 = vadd.f32 0.0036580483, %v642_v2  ;;  %v606_v24 = vmul.f32 %v605_v45, %v2072_v59  ;;  %v964_v42 = vmul.f32 %v963_v63, %v2102_v54  ;;  %v593_v8 = vor.u32 1.1754944e-38, %v592_v20 }
 0x143   :  { %v2158_v29 = vmul.f32 0.70710677, %v2133_v19  ;;  %v584_v56 = vmul.f32 %v2116_v41, %v583_v34  ;;  %v570_v23 = vmul.f32 %v569_v30, %v2003_v58  ;;  %v927_v43 = vadd.f32 0.18741608, %v926_v48 }
 0x144   :  { %v1001_v7 = vadd.f32 0.00028619796, %v1000_v55  ;;  %v2200_v11 = vmin.f32 %v678_v57, 16.0  ;;  %vm591_vm4 = vcmp.eq.f32.partialorder %v590_v28, 8.507059e+37  ;;  %v644_v26 = vmul.f32 %v643_v32, %v2109_v21 }
 0x145   :  { %v585_v13 = vadd.f32 %v2116_v41, %v584_v56  ;;  %v1038_v25 = vmul.f32 %v2158_v29, %v2158_v29  ;;  %v2209_v58 = vadd.f32 1.0, %v899_v38  ;;  %v607_v49 = vadd.f32 0.18741608, %v606_v24 }
 0x146   :  { %v965_v35 = vadd.f32 0.05243302, %v964_v42  ;;  %v1002_v45 = vmul.f32 %v1001_v7, %v2152_v17  ;;  %v928_v6 = vmul.f32 %v927_v43, %v2067_v44  ;;  %v680_v63 = vmul.f32 2.1237322e-06, %v2200_v11 }
 0x147   :  { %v589_v60 = vsel %vm2186_vm3, %v2116_v41, %v585_v13  ;;  %v2202_v36 = vmin.f32 %v1038_v25, 16.0  ;;  %1424 = vrcp.f32 %v2209_v58  ;;  %v645_v55 = vadd.f32 0.05243302, %v644_v26 }
 0x148   :  { %v594_v37 = vsel %vm591_vm4, %v593_v8, %v589_v60  ;;  %v966_v57 = vmul.f32 %v965_v35, %v2102_v54  ;;  %v2229_v25 = vmul.f32 0.5, %v2130_v31  ;;  %v608_v1 = vmul.f32 %v607_v49, %v2072_v59 }
 0x149   :  { %v517_v47 = vpop.f32.mrf.mxu2  ;;  %v490_v50 = vpop.f32.mrf.mxu0  ;;  %v595_v34 = vmul.f32 %v594_v37, %v570_v23  ;;  %v1040_v20 = vmul.f32 2.1237322e-06, %v2202_v36  ;;  %v1003_v38 = vadd.f32 0.0036580483, %v1002_v45  ;;  %v890_v60 = vmul.f32 %v889_v9, %v2019_v39 }
 0x14a   :  { %v2164_v3 = vadd.f32 %v1988_v0, %v517_v47  ;;  %v2176_v10 = vadd.f32 %v1988_v0, %v490_v50  ;;  %v929_v8 = vadd.f32 1.1283791, %v928_v6  ;;  %v681_v23 = vadd.f32 0.00028619796, %v680_v63 }
 0x14b   :  { %v1335_v48 = vclamps-f32 %v595_v34, 1.0  ;;  %v1041_v43 = vadd.f32 0.00028619796, %v1040_v20  ;;  %v646_v31 = vmul.f32 %v645_v55, %v2109_v21  ;;  %v967_v37 = vadd.f32 0.18741608, %v966_v57 }
 0x14c   :  { %v2182_v15 = vmul.f32 0.70710677, %v2164_v3  ;;  %v2198_v61 = vmul.f32 0.70710677, %v2176_v10  ;;  %v1004_v39 = vmul.f32 %v1003_v38, %v2152_v17  ;;  %v2249_v9 = vmul.f32 0.5, %v2133_v19 }
 0x14d   :  { %v1198_v24 = vadd.f32 1.0, %v1335_v48  ;;  %v1425_v7 = vpop.eup %1424  ;;  %v2257_v20 = vmul.f32 %v929_v8, %v2049_v4  ;;  %v647_v48 = vadd.f32 0.18741608, %v646_v31  ;;  %v968_v19 = vmul.f32 %v967_v37, %v2102_v54 }
 0x14e   :  { %v1078_v16 = vmul.f32 %v2182_v15, %v2182_v15  ;;  %v718_v41 = vmul.f32 %v2198_v61, %v2198_v61  ;;  %v902_v34 = vmul.f32 %v1425_v7, %v2209_v58  ;;  %vm907_vm5 = vweird.f32 %v1425_v7 }
 0x14f   :  { %v1214_v26 = vmul.f32 %v1198_v24, %v2120_v46  ;;  %v682_v46 = vmul.f32 %v681_v23, %v2200_v11  ;;  %v910_v24 = vand.u32 2147483647, %v2209_v58  ;;  %vm906_vm6 = vweird.f32 %v2209_v58 }
 0x150   :  { %v2211_v51 = vmin.f32 %v1078_v16, 16.0  ;;  %v2214_v2 = vmin.f32 %v718_v41, 16.0  ;;  %v903_v63 = vsub.f32 1.0, %v902_v34  ;;  %v648_v31 = vmul.f32 %v647_v48, %v2109_v21  ;;  %vm908_vm7 = vmor %vm906_vm6, %vm907_vm5 }
 0x151   :  { %v520_v30 = vpop.f32.mrf.mxu2  ;;  %1266 = vmatmul.f32.vlgmr.msra.gmra.mxu1 %v1214_v26  ;;  %v683_v4 = vadd.f32 0.0036580483, %v682_v46  ;;  %vm911_vm8 = vcmp.eq.f32.partialorder %v910_v24, 8.507059e+37 }
 0x152   :  { %v2217_v47 = vadd.f32 %v1988_v0, %v520_v30  ;;  %v1080_v50 = vmul.f32 2.1237322e-06, %v2211_v51  ;;  %v720_v28 = vmul.f32 2.1237322e-06, %v2214_v2  ;;  %v609_v30 = vadd.f32 1.1283791, %v608_v1 }
 0x153   :  { %v493_v56 = vpop.f32.mrf.mxu0  ;;  %v1005_v1 = vadd.f32 0.05243302, %v1004_v39  ;;  %v2286_v24 = vadd.f32 1.1283791, %v648_v31 }
 0x154   :  { %v2225_v13 = vmul.f32 0.70710677, %v2217_v47  ;;  %v2233_v32 = vadd.f32 %v1988_v0, %v493_v56  ;;  %v1081_v16 = vadd.f32 0.00028619796, %v1080_v50  ;;  %v721_v49 = vadd.f32 0.00028619796, %v720_v28 }
 0x155   :  { %v1042_v56 = vmul.f32 %v1041_v43, %v2202_v36  ;;  %v904_v28 = vmul.f32 %v1425_v7, %v903_v63  ;;  %v684_v63 = vmul.f32 %v683_v4, %v2200_v11 }
 0x156   :  { %2727 = vst [vmem:[#allocation2_spill] sm:$0xff] %v2233_v32  ;;  %v1118_v42 = vmul.f32 %v2225_v13, %v2225_v13  ;;  %v2244_v35 = vmul.f32 0.70710677, %v2233_v32  ;;  %v1082_v55 = vmul.f32 %v1081_v16, %v2211_v51  ;;  %v722_v57 = vmul.f32 %v721_v49, %v2214_v2 }
 0x157   :  { %v1043_v8 = vadd.f32 0.0036580483, %v1042_v56  ;;  %v905_v43 = vadd.f32 %v1425_v7, %v904_v28 }
 0x158   :  { %v2241_v41 = vmin.f32 %v1118_v42, 16.0  ;;  %v758_v6 = vmul.f32 %v2244_v35, %v2244_v35  ;;  %v912_v42 = vand.u32 2147483648, %v2209_v58  ;;  %v1083_v16 = vadd.f32 0.0036580483, %v1082_v55 }
 0x159   :  { %v723_v49 = vadd.f32 0.0036580483, %v722_v57  ;;  %v909_v34 = vsel %vm908_vm7, %v1425_v7, %v905_v43  ;;  %v931_v58 = vmul.f32 3.8918573e-05, %v2067_v44  ;;  %v1044_v48 = vmul.f32 %v1043_v8, %v2202_v36 }
 0x15a   :  { %v1120_v45 = vmul.f32 2.1237322e-06, %v2241_v41  ;;  %v2262_v38 = vmin.f32 %v758_v6, 16.0  ;;  %v913_v37 = vor.u32 1.1754944e-38, %v912_v42  ;;  %v2276_v6 = vmul.f32 %v609_v30, %v2052_v12 }
 0x15b   :  { %v496_v23 = vpop.f32.mrf.mxu0  ;;  %v1084_v7 = vmul.f32 %v1083_v16, %v2211_v51  ;;  %v932_v28 = vadd.f32 0.001143296, %v931_v58  ;;  %v724_v42 = vmul.f32 %v723_v49, %v2214_v2  ;;  %v685_v8 = vadd.f32 0.05243302, %v684_v63 }
 0x15c   :  { %v1121_v50 = vadd.f32 0.00028619796, %v1120_v45  ;;  %v2270_v39 = vadd.f32 %v1988_v0, %v496_v23  ;;  %v1006_v45 = vmul.f32 %v1005_v1, %v2152_v17  ;;  %v760_v46 = vmul.f32 2.1237322e-06, %v2262_v38 }
 0x15d   :  { %v914_v56 = vsel %vm911_vm8, %v913_v37, %v909_v34  ;;  %v2284_v1 = vadd.f32 1.1283791, %v968_v19  ;;  %v2293_v43 = vmul.f32 0.5, %v2164_v3  ;;  %v611_v19 = vmul.f32 3.8918573e-05, %v2072_v59 }
 0x15e   :  { %v1122_v26 = vmul.f32 %v1121_v50, %v2241_v41  ;;  %2728 = vst [vmem:[#allocation3_spill] sm:$0xff] %v2270_v39  ;;  %v915_v55 = vmul.f32 %v914_v56, %v890_v60  ;;  %v2282_v57 = vmul.f32 0.70710677, %v2270_v39  ;;  %v1007_v30 = vadd.f32 0.18741608, %v1006_v45 }
 0x15f   :  { %v761_v23 = vadd.f32 0.00028619796, %v760_v46  ;;  %v933_v60 = vmul.f32 %v932_v28, %v2067_v44  ;;  %v1085_v31 = vadd.f32 0.05243302, %v1084_v7  ;;  %v725_v34 = vadd.f32 0.05243302, %v724_v42 }
 0x160   :  { %v1123_v50 = vadd.f32 0.0036580483, %v1122_v26  ;;  %2729 = vst [vmem:[#allocation4_spill] sm:$0xff] %v2282_v57  ;;  %v1343_v12 = vclamps-f32 %v915_v55, 1.0  ;;  %v798_v4 = vmul.f32 %v2282_v57, %v2282_v57  ;;  %v1045_v26 = vadd.f32 0.05243302, %v1044_v48 }
 0x161   :  { %v934_v49 = vadd.f32 0.014752088, %v933_v60  ;;  %v612_v46 = vadd.f32 0.001143296, %v611_v19  ;;  %v971_v56 = vmul.f32 3.8918573e-05, %v2102_v54  ;;  %v762_v58 = vmul.f32 %v761_v23, %v2262_v38 }
 0x162   :  { %v1206_v16 = vadd.f32 1.0, %v1343_v12  ;;  %v1124_v37 = vmul.f32 %v1123_v50, %v2241_v41  ;;  %v2300_v63 = vmin.f32 %v798_v4, 16.0  ;;  %v651_v55 = vmul.f32 3.8918573e-05, %v2109_v21 }
 0x163   :  { %v935_v3 = vmul.f32 %v934_v49, %v2067_v44  ;;  %v1008_v48 = vmul.f32 %v1007_v30, %v2152_v17  ;;  %v686_v7 = vmul.f32 %v685_v8, %v2200_v11  ;;  %v613_v50 = vmul.f32 %v612_v46, %v2072_v59 }
 0x164   :  { %v1222_v45 = vmul.f32 %v1206_v16, %v2123_v18  ;;  %v972_v28 = vadd.f32 0.001143296, %v971_v56  ;;  %v1046_v18 = vmul.f32 %v1045_v26, %v2202_v36  ;;  %v1086_v42 = vmul.f32 %v1085_v31, %v2211_v51 }
 0x165   :  { %v1125_v12 = vadd.f32 0.05243302, %v1124_v37  ;;  %v936_v23 = vadd.f32 0.112945676, %v935_v3  ;;  %v614_v4 = vadd.f32 0.014752088, %v613_v50  ;;  %v726_v30 = vmul.f32 %v725_v34, %v2214_v2 }
 0x166   :  { %1290 = vmatmul.f32.vlgmr.msra.gmra.mxu3 %v1222_v45  ;;  %v973_v60 = vmul.f32 %v972_v28, %v2102_v54  ;;  %v652_v16 = vadd.f32 0.001143296, %v651_v55  ;;  %v1011_v19 = vmul.f32 3.8918573e-05, %v2152_v17  ;;  %v763_v49 = vadd.f32 0.0036580483, %v762_v58 }
 0x167   :  { %v800_v8 = vmul.f32 2.1237322e-06, %v2300_v63  ;;  %v937_v45 = vmul.f32 %v936_v23, %v2067_v44  ;;  %v687_v46 = vadd.f32 0.18741608, %v686_v7  ;;  %v615_v26 = vmul.f32 %v614_v4, %v2072_v59 }
 0x168   :  { %v974_v56 = vadd.f32 0.014752088, %v973_v60  ;;  %v653_v31 = vmul.f32 %v652_v16, %v2109_v21  ;;  %v1047_v37 = vadd.f32 0.18741608, %v1046_v18  ;;  %v1087_v3 = vadd.f32 0.18741608, %v1086_v42 }
 0x169   :  { %v1126_v50 = vmul.f32 %v1125_v12, %v2241_v41  ;;  %v938_v55 = vadd.f32 0.4994258, %v937_v45  ;;  %v616_v28 = vadd.f32 0.112945676, %v615_v26  ;;  %v1012_v58 = vadd.f32 0.001143296, %v1011_v19  ;;  %v523_v19 = vpop.f32.mrf.mxu2 }
 0x16a   :  { %v975_v39 = vmul.f32 %v974_v56, %v2102_v54  ;;  %v654_v34 = vadd.f32 0.014752088, %v653_v31  ;;  %v727_v57 = vadd.f32 0.18741608, %v726_v30  ;;  %v764_v32 = vmul.f32 %v763_v49, %v2262_v38 }
 0x16b   :  { %v801_v23 = vadd.f32 0.00028619796, %v800_v8  ;;  %v939_v7 = vmul.f32 %v938_v55, %v2067_v44  ;;  %v688_v4 = vmul.f32 %v687_v46, %v2200_v11  ;;  %v617_v60 = vmul.f32 %v616_v28, %v2072_v59 }
 0x16c   :  { %v976_v18 = vadd.f32 0.112945676, %v975_v39  ;;  %v655_v42 = vmul.f32 %v654_v34, %v2109_v21  ;;  %v1048_v12 = vmul.f32 %v1047_v37, %v2202_v36  ;;  %v1088_v16 = vmul.f32 %v1087_v3, %v2211_v51 }
 0x16d   :  { %v1127_v45 = vadd.f32 0.18741608, %v1126_v50  ;;  %v2325_v26 = vadd.f32 1.0, %v939_v7  ;;  %v618_v30 = vadd.f32 0.4994258, %v617_v60  ;;  %v1013_v44 = vmul.f32 %v1012_v58, %v2152_v17 }
 0x16e   :  { %v977_v49 = vmul.f32 %v976_v18, %v2102_v54  ;;  %v656_v8 = vadd.f32 0.112945676, %v655_v42  ;;  %v728_v46 = vmul.f32 %v727_v57, %v2214_v2  ;;  %v765_v56 = vadd.f32 0.05243302, %v764_v32 }
 0x16f   :  { %v802_v39 = vmul.f32 %v801_v23, %v2300_v63  ;;  %1426 = vrcp.f32 %v2325_v26  ;;  %v1009_v31 = vadd.f32 1.1283791, %v1008_v48  ;;  %v689_v37 = vadd.f32 1.1283791, %v688_v4 }
 0x170   :  { %v2333_v3 = vadd.f32 %v1988_v0, %v523_v19  ;;  %v619_v50 = vmul.f32 %v618_v30, %v2072_v59  ;;  %v1049_v55 = vadd.f32 1.1283791, %v1048_v12  ;;  %v1089_v28 = vadd.f32 1.1283791, %v1088_v16  ;;  %v499_v30 = vpop.f32.mrf.mxu0 }
 0x171   :  { %v1128_v34 = vmul.f32 %v1127_v45, %v2241_v41  ;;  %v657_v58 = vmul.f32 %v656_v8, %v2109_v21  ;;  %v2340_v32 = vmul.f32 %v2284_v1, %v2089_v53  ;;  %v978_v23 = vadd.f32 0.4994258, %v977_v49 }
 0x172   :  { %v2342_v57 = vadd.f32 1.0, %v619_v50  ;;  %v1014_v48 = vadd.f32 0.014752088, %v1013_v44  ;;  %v2345_v7 = vmul.f32 0.5, %v2176_v10  ;;  %v729_v4 = vadd.f32 1.1283791, %v728_v46 }
 0x173   :  { %v766_v59 = vmul.f32 %v765_v56, %v2262_v38  ;;  %v803_v60 = vadd.f32 0.0036580483, %v802_v39  ;;  %v2350_v18 = vmul.f32 %v2286_v24, %v2092_v40  ;;  %v2353_v42 = vmul.f32 0.70710677, %v2333_v3 }
 0x174   :  { %1428 = vrcp.f32 %v2342_v57  ;;  %v658_v53 = vadd.f32 0.4994258, %v657_v58  ;;  %v2357_v12 = vmul.f32 %v1009_v31, %v2114_v52  ;;  %v2360_v10 = vmul.f32 %v689_v37, %v2155_v22 }
 0x175   :  { %v1427_v1 = vpop.eup %1426  ;;  %v1129_v16 = vadd.f32 1.1283791, %v1128_v34  ;;  %v979_v45 = vmul.f32 %v978_v23, %v2102_v54  ;;  %v2364_v19 = vmul.f32 %v1049_v55, %v2158_v29  ;;  %v2367_v40 = vmul.f32 %v1089_v28, %v2182_v15 }
 0x176   :  { %v942_v24 = vmul.f32 %v1427_v1, %v2325_v26  ;;  %v1015_v49 = vmul.f32 %v1014_v48, %v2152_v17  ;;  %v2372_v52 = vmul.f32 %v729_v4, %v2198_v61  ;;  %v767_v8 = vadd.f32 0.18741608, %v766_v59 }
 0x177   :  { %v804_v22 = vmul.f32 %v803_v60, %v2300_v63  ;;  %v2375_v44 = vadd.f32 1.0, %v979_v45  ;;  %v950_v29 = vand.u32 2147483647, %v2325_v26  ;;  %v1158_v15 = vmul.f32 %v2353_v42, %v2353_v42 }
 0x178   :  { %v943_v54 = vsub.f32 1.0, %v942_v24  ;;  %v659_v46 = vmul.f32 %v658_v53, %v2109_v21  ;;  %v2382_v56 = vmul.f32 %v1129_v16, %v2225_v13  ;;  %v952_v39 = vand.u32 2147483648, %v2325_v26 }
 0x179   :  { %v2386_v61 = vadd.f32 %v1988_v0, %v499_v30  ;;  %1430 = vrcp.f32 %v2375_v44  ;;  %vm947_vm9 = vweird.f32 %v1427_v1  ;;  %v1016_v55 = vadd.f32 0.112945676, %v1015_v49 }
 0x17a   :  { %v1429_v31 = vpop.eup %1428  ;;  %v944_v37 = vmul.f32 %v1427_v1, %v943_v54  ;;  %v2389_v50 = vadd.f32 1.0, %v659_v46  ;;  %v2392_v28 = vmul.f32 %v767_v8, %v2262_v38  ;;  %v2394_v21 = vadd.f32 0.05243302, %v804_v22 }
 0x17b   :  { %vm946_vm10 = vweird.f32 %v2325_v26  ;;  %v622_v13 = vmul.f32 %v1429_v31, %v2342_v57  ;;  %vm951_vm11 = vcmp.eq.f32.partialorder %v950_v29, 8.507059e+37  ;;  %v2398_v0 = vmin.f32 %v1158_v15, 16.0 }
 0x17c   :  { %v945_v34 = vadd.f32 %v1427_v1, %v944_v37  ;;  %1432 = vrcp.f32 %v2389_v50  ;;  %vm948_vm12 = vmor %vm946_vm10, %vm947_vm9  ;;  %v953_v58 = vor.u32 1.1754944e-38, %v952_v39  ;;  %v630_v48 = vand.u32 2147483647, %v2342_v57 }
 0x17d   :  { %v623_v23 = vsub.f32 1.0, %v622_v13  ;;  %v632_v4 = vand.u32 2147483648, %v2342_v57  ;;  %v2404_v60 = vmul.f32 0.70710677, %v2386_v61  ;;  %v990_v26 = vand.u32 2147483647, %v2375_v44 }
 0x17e   :  { %v949_v59 = vsel %vm948_vm12, %v1427_v1, %v945_v34  ;;  %v1017_v53 = vmul.f32 %v1016_v55, %v2152_v17  ;;  %vm627_vm13 = vweird.f32 %v1429_v31  ;;  %v992_v30 = vand.u32 2147483648, %v2375_v44 }
 0x17f   :  { %v1431_v16 = vpop.eup %1430  ;;  %v954_v45 = vsel %vm951_vm11, %v953_v58, %v949_v59  ;;  %v624_v24 = vmul.f32 %v1429_v31, %v623_v23  ;;  %v1160_v8 = vmul.f32 2.1237322e-06, %v2398_v0  ;;  %vm626_vm14 = vweird.f32 %v2342_v57 }
 0x180   :  { %v955_v49 = vmul.f32 %v954_v45, %v2257_v20  ;;  %v982_v1 = vmul.f32 %v1431_v16, %v2375_v44  ;;  %vm631_vm15 = vcmp.eq.f32.partialorder %v630_v48, 8.507059e+37  ;;  %v633_v54 = vor.u32 1.1754944e-38, %v632_v4  ;;  %vm628_vm0 = vmor %vm626_vm14, %vm627_vm13 }
 0x181   :  { %v625_v22 = vadd.f32 %v1429_v31, %v624_v24  ;;  %v1018_v29 = vadd.f32 0.4994258, %v1017_v53  ;;  %vm986_vm1 = vweird.f32 %v2375_v44  ;;  %v691_v37 = vmul.f32 3.8918573e-05, %v2200_v11 }
 0x182   :  { %v1433_v15 = vpop.eup %1432  ;;  %v1344_v46 = vclamps-f32 %v955_v49, 1.0  ;;  %v983_v39 = vsub.f32 1.0, %v982_v1  ;;  %vm2415_vm2 = vcmp.eq.f32.partialorder %v990_v26, 8.507059e+37  ;;  %v993_v57 = vor.u32 1.1754944e-38, %v992_v30 }
 0x183   :  { %v629_v55 = vsel %vm628_vm0, %v1429_v31, %v625_v22  ;;  %v662_v13 = vmul.f32 %v1433_v15, %v2389_v50  ;;  %vm987_vm3 = vweird.f32 %v1431_v16  ;;  %v670_v59 = vand.u32 2147483647, %v2389_v50 }
 0x184   :  { %v1207_v34 = vadd.f32 1.0, %v1344_v46  ;;  %v634_v58 = vsel %vm631_vm15, %v633_v54, %v629_v55  ;;  %v984_v23 = vmul.f32 %v1431_v16, %v983_v39  ;;  %v1019_v53 = vmul.f32 %v1018_v29, %v2152_v17  ;;  %vm988_vm4 = vmor %vm986_vm1, %vm987_vm3 }
 0x185   :  { %v635_v48 = vmul.f32 %v634_v58, %v2276_v6  ;;  %v663_v4 = vsub.f32 1.0, %v662_v13  ;;  %v672_v45 = vand.u32 2147483648, %v2389_v50  ;;  %v692_v24 = vadd.f32 0.001143296, %v691_v37 }
 0x186   :  { %v1223_v31 = vmul.f32 %v1207_v34, %v2138_v14  ;;  %v985_v26 = vadd.f32 %v1431_v16, %v984_v23  ;;  %vm667_vm5 = vweird.f32 %v1433_v15  ;;  %v2427_v1 = vadd.f32 1.0, %v1019_v53 }
 0x187   :  { %v1336_v30 = vclamps-f32 %v635_v48, 1.0  ;;  %v664_v49 = vmul.f32 %v1433_v15, %v663_v4  ;;  %vm666_vm6 = vweird.f32 %v2389_v50  ;;  %v693_v17 = vmul.f32 %v692_v24, %v2200_v11 }
 0x188   :  { %1293 = vmatmul.f32.gmra.mxu3 %v1223_v31  ;;  %v989_v6 = vsel %vm988_vm4, %v1431_v16, %v985_v26  ;;  %v1051_v14 = vmul.f32 3.8918573e-05, %v2202_v36  ;;  %v731_v44 = vmul.f32 3.8918573e-05, %v2214_v2  ;;  %v2437_v46 = vmul.f32 %v2404_v60, %v2404_v60  ;;  %vm668_vm7 = vmor %vm666_vm6, %vm667_vm5 }
 0x189   :  { %v1199_v22 = vadd.f32 1.0, %v1336_v30  ;;  %v994_v54 = vsel %vm2415_vm2, %v993_v57, %v989_v6  ;;  %v665_v29 = vadd.f32 %v1433_v15, %v664_v49  ;;  %v673_v16 = vor.u32 1.1754944e-38, %v672_v45 }
 0x18a   :  { %v995_v39 = vmul.f32 %v994_v54, %v2340_v32  ;;  %1434 = vrcp.f32 %v2427_v1  ;;  %v2441_v50 = vadd.f32 0.00028619796, %v1160_v8  ;;  %vm671_vm8 = vcmp.eq.f32.partialorder %v670_v59, 8.507059e+37 }
 0x18b   :  { %v1215_v37 = vmul.f32 %v1199_v22, %v2143_v5  ;;  %v669_v55 = vsel %vm668_vm7, %v1433_v15, %v665_v29  ;;  %v1030_v13 = vand.u32 2147483647, %v2427_v1  ;;  %v694_v34 = vadd.f32 0.014752088, %v693_v17 }
 0x18c   :  { %v1345_v20 = vclamps-f32 %v995_v39, 1.0  ;;  %v674_v57 = vsel %vm671_vm8, %v673_v16, %v669_v55  ;;  %v1032_v32 = vand.u32 2147483648, %v2427_v1  ;;  %v1052_v23 = vadd.f32 0.001143296, %v1051_v14 }
 0x18d   :  { %1269 = vmatmul.f32.gmra.mxu1 %v1215_v37  ;;  %v675_v58 = vmul.f32 %v674_v57, %v2350_v18  ;;  %v732_v48 = vadd.f32 0.001143296, %v731_v44  ;;  %v695_v8 = vmul.f32 %v694_v34, %v2200_v11  ;;  %v1091_v53 = vmul.f32 3.8918573e-05, %v2211_v51 }
 0x18e   :  { %v1208_v4 = vadd.f32 1.0, %v1345_v20  ;;  %v1131_v5 = vmul.f32 3.8918573e-05, %v2241_v41  ;;  %vm1026_vm9 = vweird.f32 %v2427_v1  ;;  %v1053_v59 = vmul.f32 %v1052_v23, %v2202_v36 }
 0x18f   :  { %v1337_v15 = vclamps-f32 %v675_v58, 1.0  ;;  %v733_v31 = vmul.f32 %v732_v48, %v2214_v2  ;;  %v771_v18 = vmul.f32 3.8918573e-05, %v2262_v38  ;;  %v696_v24 = vadd.f32 0.112945676, %v695_v8 }
 0x190   :  { %v1435_v26 = vpop.eup %1434  ;;  %v1224_v45 = vmul.f32 %v1208_v4, %v2146_v62  ;;  %v1092_v30 = vadd.f32 0.001143296, %v1091_v53  ;;  %v1132_v49 = vadd.f32 0.001143296, %v1131_v5  ;;  %v1054_v14 = vadd.f32 0.014752088, %v1053_v59 }
 0x191   :  { %v1200_v6 = vadd.f32 1.0, %v1337_v15  ;;  %v1022_v17 = vmul.f32 %v1435_v26, %v2427_v1  ;;  %vm1027_vm10 = vweird.f32 %v1435_v26  ;;  %v697_v22 = vmul.f32 %v696_v24, %v2200_v11 }
 0x192   :  { %1296 = vmatmul.f32.gmra.mxu3 %v1224_v45  ;;  %v734_v54 = vadd.f32 0.014752088, %v733_v31  ;;  %v1093_v29 = vmul.f32 %v1092_v30, %v2211_v51  ;;  %v1133_v44 = vmul.f32 %v1132_v49, %v2241_v41  ;;  %v1055_v62 = vmul.f32 %v1054_v14, %v2202_v36  ;;  %vm1028_vm11 = vmor %vm1026_vm9, %vm1027_vm10 }
 0x193   :  { %v1216_v39 = vmul.f32 %v1200_v6, %v2149_v27  ;;  %v1023_v16 = vsub.f32 1.0, %v1022_v17  ;;  %v772_v37 = vadd.f32 0.001143296, %v771_v18  ;;  %v698_v55 = vadd.f32 0.4994258, %v697_v22 }
 0x194   :  { %v735_v20 = vmul.f32 %v734_v54, %v2214_v2  ;;  %v1094_v57 = vadd.f32 0.014752088, %v1093_v29  ;;  %v1134_v34 = vadd.f32 0.014752088, %v1133_v44  ;;  %v1056_v23 = vadd.f32 0.112945676, %v1055_v62 }
 0x195   :  { %1272 = vmatmul.f32.gmra.mxu1 %v1216_v39  ;;  %v1024_v58 = vmul.f32 %v1435_v26, %v1023_v16  ;;  %v773_v48 = vmul.f32 %v772_v37, %v2262_v38  ;;  %v811_v4 = vmul.f32 3.8918573e-05, %v2300_v63  ;;  %v699_v8 = vmul.f32 %v698_v55, %v2200_v11 }
 0x196   :  { %v736_v53 = vadd.f32 0.112945676, %v735_v20  ;;  %v1095_v27 = vmul.f32 %v1094_v57, %v2211_v51  ;;  %v1135_v5 = vmul.f32 %v1134_v34, %v2241_v41  ;;  %v1033_v59 = vor.u32 1.1754944e-38, %v1032_v32 }
 0x197   :  { %v1025_v15 = vadd.f32 %v1435_v26, %v1024_v58  ;;  %v1057_v31 = vmul.f32 %v1056_v23, %v2202_v36  ;;  %v774_v18 = vadd.f32 0.014752088, %v773_v48  ;;  %v2471_v45 = vadd.f32 1.0, %v699_v8 }
 0x198   :  { %v737_v24 = vmul.f32 %v736_v53, %v2214_v2  ;;  %v1096_v30 = vadd.f32 0.112945676, %v1095_v27  ;;  %v1136_v11 = vadd.f32 0.112945676, %v1135_v5  ;;  %v2475_v49 = vmin.f32 %v2437_v46, 16.0 }
 0x199   :  { %v1029_v6 = vsel %vm1028_vm11, %v1435_v26, %v1025_v15  ;;  %vm1031_vm12 = vcmp.eq.f32.partialorder %v1030_v13, 8.507059e+37  ;;  %v1058_v17 = vadd.f32 0.4994258, %v1057_v31  ;;  %1436 = vrcp.f32 %v2471_v45 }
 0x19a   :  { %v1034_v32 = vsel %vm1031_vm12, %v1033_v59, %v1029_v6  ;;  %v775_v14 = vmul.f32 %v774_v18, %v2262_v38  ;;  %v812_v22 = vadd.f32 0.001143296, %v811_v4  ;;  %v806_v1 = vmul.f32 %v2394_v21, %v2300_v63 }
 0x19b   :  { %v1035_v54 = vmul.f32 %v1034_v32, %v2357_v12  ;;  %v1059_v29 = vmul.f32 %v1058_v17, %v2202_v36  ;;  %v738_v44 = vadd.f32 0.4994258, %v737_v24  ;;  %v2484_v46 = vadd.f32 1.1283791, %v2392_v28 }
 0x19c   :  { %v1162_v13 = vmul.f32 %v2441_v50, %v2398_v0  ;;  %v1097_v26 = vmul.f32 %v1096_v30, %v2211_v51  ;;  %v1137_v39 = vmul.f32 %v1136_v11, %v2241_v41  ;;  %v840_v16 = vmul.f32 2.1237322e-06, %v2475_v49 }
 0x19d   :  { %v1346_v62 = vclamps-f32 %v1035_v54, 1.0  ;;  %v2491_v37 = vadd.f32 1.0, %v1059_v29  ;;  %v739_v12 = vmul.f32 %v738_v44, %v2214_v2  ;;  %v776_v55 = vadd.f32 0.112945676, %v775_v14 }
 0x19e   :  { %v1098_v21 = vadd.f32 0.4994258, %v1097_v26  ;;  %v1138_v36 = vadd.f32 0.4994258, %v1137_v39  ;;  %v813_v28 = vmul.f32 %v812_v22, %v2300_v63  ;;  %v2495_v20 = vadd.f32 0.18741608, %v806_v1 }
 0x19f   :  { %v1209_v57 = vadd.f32 1.0, %v1346_v62  ;;  %v710_v50 = vand.u32 2147483647, %v2471_v45  ;;  %1438 = vrcp.f32 %v2491_v37  ;;  %v1437_v34 = vpop.eup %1436  ;;  %v712_v58 = vand.u32 2147483648, %v2471_v45 }
 0x1a0   :  { %v2500_v23 = vadd.f32 1.0, %v739_v12  ;;  %v1099_v48 = vmul.f32 %v1098_v21, %v2211_v51  ;;  %v1139_v2 = vmul.f32 %v1138_v36, %v2241_v41  ;;  %v2504_v4 = vadd.f32 0.0036580483, %v1162_v13 }
 0x1a1   :  { %v2506_v8 = vadd.f32 0.00028619796, %v840_v16  ;;  %v1225_v53 = vmul.f32 %v1209_v57, %v2179_v33  ;;  %v702_v27 = vmul.f32 %v1437_v34, %v2471_v45  ;;  %v1070_v5 = vand.u32 2147483647, %v2491_v37 }
 0x1a2   :  { %1440 = vrcp.f32 %v2500_v23  ;;  %v777_v15 = vmul.f32 %v776_v55, %v2262_v38  ;;  %v814_v59 = vadd.f32 0.014752088, %v813_v28  ;;  %v1072_v51 = vand.u32 2147483648, %v2491_v37 }
 0x1a3   :  { %1299 = vmatmul.f32.gmra.mxu3 %v1225_v53  ;;  %v703_v31 = vsub.f32 1.0, %v702_v27  ;;  %v2514_v41 = vadd.f32 1.0, %v1099_v48  ;;  %v2516_v18 = vadd.f32 1.0, %v1139_v2  ;;  %vm706_vm13 = vweird.f32 %v2471_v45 }
 0x1a4   :  { %vm707_vm14 = vweird.f32 %v1437_v34  ;;  %vm2519_vm15 = vcmp.eq.f32.partialorder %v710_v50, 8.507059e+37  ;;  %v713_v24 = vor.u32 1.1754944e-38, %v712_v58  ;;  %v750_v6 = vand.u32 2147483647, %v2500_v23 }
 0x1a5   :  { %v1439_v30 = vpop.eup %1438  ;;  %v704_v11 = vmul.f32 %v1437_v34, %v703_v31  ;;  %v752_v17 = vand.u32 2147483648, %v2500_v23  ;;  %1442 = vrcp.f32 %v2514_v41  ;;  %vm1066_vm0 = vweird.f32 %v2491_v37  ;;  %vm708_vm2 = vmor %vm706_vm13, %vm707_vm14 }
 0x1a6   :  { %v1062_v32 = vmul.f32 %v1439_v30, %v2491_v37  ;;  %vm2528_vm1 = vcmp.eq.f32.partialorder %v1070_v5, 8.507059e+37  ;;  %v778_v22 = vadd.f32 0.4994258, %v777_v15  ;;  %v1073_v54 = vor.u32 1.1754944e-38, %v1072_v51 }
 0x1a7   :  { %v705_v1 = vadd.f32 %v1437_v34, %v704_v11  ;;  %1444 = vrcp.f32 %v2516_v18  ;;  %v815_v29 = vmul.f32 %v814_v59, %v2300_v63  ;;  %vm746_vm3 = vweird.f32 %v2500_v23 }
 0x1a8   :  { %v1441_v44 = vpop.eup %1440  ;;  %v1063_v13 = vsub.f32 1.0, %v1062_v32  ;;  %v1110_v26 = vand.u32 2147483647, %v2514_v41  ;;  %v1171_v39 = vmul.f32 3.8918573e-05, %v2398_v0  ;;  %vm1067_vm4 = vweird.f32 %v1439_v30 }
 0x1a9   :  { %v709_v16 = vsel %vm708_vm2, %v1437_v34, %v705_v1  ;;  %v742_v62 = vmul.f32 %v1441_v44, %v2500_v23  ;;  %vm2541_vm5 = vcmp.eq.f32.partialorder %v750_v6, 8.507059e+37  ;;  %v753_v21 = vor.u32 1.1754944e-38, %v752_v17  ;;  %vm1068_vm9 = vmor %vm1066_vm0, %vm1067_vm4 }
 0x1aa   :  { %v714_v45 = vsel %vm2519_vm15, %v713_v24, %v709_v16  ;;  %v1064_v36 = vmul.f32 %v1439_v30, %v1063_v13  ;;  %vm1106_vm6 = vweird.f32 %v2514_v41  ;;  %v1112_v55 = vand.u32 2147483648, %v2514_v41 }
 0x1ab   :  { %v779_v28 = vmul.f32 %v778_v22, %v2262_v38  ;;  %v1443_v57 = vpop.eup %1442  ;;  %v715_v50 = vmul.f32 %v714_v45, %v2360_v10  ;;  %v743_v34 = vsub.f32 1.0, %v742_v62  ;;  %v1150_v58 = vand.u32 2147483647, %v2516_v18 }
 0x1ac   :  { %v816_v48 = vadd.f32 0.112945676, %v815_v29  ;;  %v1065_v2 = vadd.f32 %v1439_v30, %v1064_v36  ;;  %v1102_v53 = vmul.f32 %v1443_v57, %v2514_v41  ;;  %vm2553_vm7 = vcmp.eq.f32.partialorder %v1110_v26, 8.507059e+37 }
 0x1ad   :  { %vm1146_vm8 = vweird.f32 %v2516_v18  ;;  %v2558_v5 = vadd.f32 1.0, %v779_v28  ;;  %v1172_v15 = vadd.f32 0.001143296, %v1171_v39  ;;  %v1445_v38 = vpop.eup %1444  ;;  %v1338_v59 = vclamps-f32 %v715_v50, 1.0 }
 0x1ae   :  { %v744_v10 = vmul.f32 %v1441_v44, %v743_v34  ;;  %vm747_vm10 = vweird.f32 %v1441_v44  ;;  %vm1107_vm11 = vweird.f32 %v1443_v57  ;;  %v1069_v31 = vsel %vm1068_vm9, %v1439_v30, %v1065_v2 }
 0x1af   :  { %v1103_v51 = vsub.f32 1.0, %v1102_v53  ;;  %v1142_v33 = vmul.f32 %v1445_v38, %v2516_v18  ;;  %v817_v24 = vmul.f32 %v816_v48, %v2300_v63  ;;  %v1201_v11 = vadd.f32 1.0, %v1338_v59  ;;  %vm748_vm12 = vmor %vm746_vm3, %vm747_vm10 }
 0x1b0   :  { %v1074_v6 = vsel %vm2528_vm1, %v1073_v54, %v1069_v31  ;;  %v745_v17 = vadd.f32 %v1441_v44, %v744_v10  ;;  %1446 = vrcp.f32 %v2558_v5  ;;  %v1173_v30 = vmul.f32 %v1172_v15, %v2398_v0  ;;  %vm1108_vm14 = vmor %vm1106_vm6, %vm1107_vm11 }
 0x1b1   :  { %v1075_v32 = vmul.f32 %v1074_v6, %v2364_v19  ;;  %v1104_v37 = vmul.f32 %v1443_v57, %v1103_v51  ;;  %v1143_v22 = vsub.f32 1.0, %v1142_v33  ;;  %v1217_v1 = vmul.f32 %v1201_v11, %v2229_v25 }
 0x1b2   :  { %v749_v29 = vsel %vm748_vm12, %v1441_v44, %v745_v17  ;;  %vm1147_vm13 = vweird.f32 %v1445_v38  ;;  %v1152_v13 = vand.u32 2147483648, %v2516_v18  ;;  %v1113_v23 = vor.u32 1.1754944e-38, %v1112_v55 }
 0x1b3   :  { %v1347_v14 = vclamps-f32 %v1075_v32, 1.0  ;;  %v754_v54 = vsel %vm2541_vm5, %v753_v21, %v749_v29  ;;  %v1105_v26 = vadd.f32 %v1443_v57, %v1104_v37  ;;  %v1144_v39 = vmul.f32 %v1445_v38, %v1143_v22  ;;  %1275 = vmatmul.f32.gmra.mxu1 %v1217_v1  ;;  %vm1148_vm0 = vmor %vm1146_vm8, %vm1147_vm13 }
 0x1b4   :  { %v755_v19 = vmul.f32 %v754_v54, %v2372_v52  ;;  %vm2580_vm15 = vcmp.eq.f32.partialorder %v1150_v58, 8.507059e+37  ;;  %v818_v44 = vadd.f32 0.4994258, %v817_v24  ;;  %v1174_v12 = vadd.f32 0.014752088, %v1173_v30  ;;  %v2742_v54 = vld [vmem:[#allocation2_spill] sm:$0xff] }
 0x1b5   :  { %v1210_v16 = vadd.f32 1.0, %v1347_v14  ;;  %v1109_v62 = vsel %vm1108_vm14, %v1443_v57, %v1105_v26  ;;  %v1145_v45 = vadd.f32 %v1445_v38, %v1144_v39  ;;  %v1153_v52 = vor.u32 1.1754944e-38, %v1152_v13 }
 0x1b6   :  { %v1447_v21 = vpop.eup %1446  ;;  %v1339_v36 = vclamps-f32 %v755_v19, 1.0  ;;  %v1114_v28 = vsel %vm2553_vm7, %v1113_v23, %v1109_v62  ;;  %v819_v41 = vmul.f32 %v818_v44, %v2300_v63  ;;  %v851_v53 = vmul.f32 3.8918573e-05, %v2475_v49 }
 0x1b7   :  { %v1226_v55 = vmul.f32 %v1210_v16, %v2249_v9  ;;  %v1115_v50 = vmul.f32 %v1114_v28, %v2367_v40  ;;  %v1149_v34 = vsel %vm1148_vm0, %v1445_v38, %v1145_v45  ;;  %v782_v57 = vmul.f32 %v1447_v21, %v2558_v5 }
 0x1b8   :  { %v1202_v58 = vadd.f32 1.0, %v1339_v36  ;;  %v1154_v48 = vsel %vm2580_vm15, %v1153_v52, %v1149_v34  ;;  %v2595_v2 = vadd.f32 1.0, %v819_v41  ;;  %v1175_v9 = vmul.f32 %v1174_v12, %v2398_v0 }
 0x1b9   :  { %1302 = vmatmul.f32.gmra.mxu3 %v1226_v55  ;;  %v1348_v18 = vclamps-f32 %v1115_v50, 1.0  ;;  %v1155_v27 = vmul.f32 %v1154_v48, %v2382_v56  ;;  %v783_v15 = vsub.f32 1.0, %v782_v57  ;;  %v1164_v40 = vmul.f32 %v2504_v4, %v2398_v0  ;;  %v2743_v57 = vld [vmem:[#allocation4_spill] sm:$0xff] }
 0x1ba   :  { %v1218_v38 = vmul.f32 %v1202_v58, %v2345_v7  ;;  %v792_v59 = vand.u32 2147483648, %v2558_v5  ;;  %1448 = vrcp.f32 %v2595_v2  ;;  %vm787_vm1 = vweird.f32 %v1447_v21 }
 0x1bb   :  { %v1211_v10 = vadd.f32 1.0, %v1348_v18  ;;  %v784_v31 = vmul.f32 %v1447_v21, %v783_v15  ;;  %v790_v51 = vand.u32 2147483647, %v2558_v5  ;;  %v770_v56 = vmul.f32 %v2484_v46, %v2244_v35 }
 0x1bc   :  { %1278 = vmatmul.f32.gmra.mxu1 %v1218_v38  ;;  %v1176_v33 = vadd.f32 0.112945676, %v1175_v9  ;;  %v852_v24 = vadd.f32 0.001143296, %v851_v53  ;;  %v1349_v4 = vclamps-f32 %v1155_v27, 1.0  ;;  %vm786_vm2 = vweird.f32 %v2558_v5 }
 0x1bd   :  { %v1227_v11 = vmul.f32 %v1211_v10, %v2293_v43  ;;  %v785_v6 = vadd.f32 %v1447_v21, %v784_v31  ;;  %v842_v7 = vmul.f32 %v2506_v8, %v2475_v49  ;;  %vm788_vm3 = vmor %vm786_vm2, %vm787_vm1  ;;  %v793_v17 = vor.u32 1.1754944e-38, %v792_v59 }
 0x1be   :  { %v1177_v32 = vmul.f32 %v1176_v33, %v2398_v0  ;;  %v853_v37 = vmul.f32 %v852_v24, %v2475_v49  ;;  %v808_v35 = vmul.f32 %v2495_v20, %v2300_v63  ;;  %v1165_v46 = vadd.f32 0.05243302, %v1164_v40 }
 0x1bf   :  { %v789_v22 = vsel %vm788_vm3, %v1447_v21, %v785_v6  ;;  %vm791_vm4 = vcmp.eq.f32.partialorder %v790_v51, 8.507059e+37  ;;  %v540_v5 = vmul.f32 0.5, %v2217_v47  ;;  %v1212_v8 = vadd.f32 1.0, %v1349_v4  ;;  %v2634_v51 = vld [vmem:[%s2712_s6] ss:$0 sm:$0xff] }
 0x1c0   :  { %v1449_v43 = vpop.eup %1448  ;;  %v794_v30 = vsel %vm791_vm4, %v793_v17, %v789_v22  ;;  %v1178_v1 = vadd.f32 0.4994258, %v1177_v32  ;;  %v854_v29 = vadd.f32 0.014752088, %v853_v37  ;;  %v531_v26 = vmul.f32 0.5, %v2742_v54 }
 0x1c1   :  { %1305 = vmatmul.f32.gmra.mxu3 %v1227_v11  ;;  %v795_v13 = vmul.f32 %v794_v30, %v770_v56  ;;  %v822_v14 = vmul.f32 %v1449_v43, %v2595_v2  ;;  %v843_v39 = vadd.f32 0.0036580483, %v842_v7  ;;  %v809_v20 = vadd.f32 1.1283791, %v808_v35  ;;  %v2744_v56 = vld [vmem:[#allocation3_spill] sm:$0xff] }
 0x1c2   :  { %v1179_v19 = vmul.f32 %v1178_v1, %v2398_v0  ;;  %v855_v63 = vmul.f32 %v854_v29, %v2475_v49  ;;  %v1166_v23 = vmul.f32 %v1165_v46, %v2398_v0  ;;  %v830_v16 = vand.u32 2147483647, %v2595_v2 }
 0x1c3   :  { %v1340_v25 = vclamps-f32 %v795_v13, 1.0  ;;  %v823_v44 = vsub.f32 1.0, %v822_v14  ;;  %v832_v47 = vand.u32 2147483648, %v2595_v2  ;;  %v1228_v12 = vmul.f32 %v1212_v8, %v540_v5 }
 0x1c4   :  { %v1180_v62 = vadd.f32 1.0, %v1179_v19  ;;  %v856_v45 = vadd.f32 0.112945676, %v855_v63  ;;  %vm827_vm5 = vweird.f32 %v1449_v43  ;;  %v844_v28 = vmul.f32 %v843_v39, %v2475_v49 }
 0x1c5   :  { %v1203_v21 = vadd.f32 1.0, %v1340_v25  ;;  %v824_v36 = vmul.f32 %v1449_v43, %v823_v44  ;;  %vm826_vm6 = vweird.f32 %v2595_v2  ;;  %v1167_v50 = vadd.f32 0.18741608, %v1166_v23 }
 0x1c6   :  { %1450 = vrcp.f32 %v1180_v62  ;;  %v857_v55 = vmul.f32 %v856_v45, %v2475_v49  ;;  %vm828_vm7 = vmor %vm826_vm6, %vm827_vm5  ;;  %v833_v34 = vor.u32 1.1754944e-38, %v832_v47  ;;  %v810_v58 = vmul.f32 %v809_v20, %v2743_v57 }
 0x1c7   :  { %v1219_v52 = vmul.f32 %v1203_v21, %v531_v26  ;;  %v825_v41 = vadd.f32 %v1449_v43, %v824_v36  ;;  %vm831_vm8 = vcmp.eq.f32.partialorder %v830_v16, 8.507059e+37  ;;  %v845_v18 = vadd.f32 0.05243302, %v844_v28 }
 0x1c8   :  { %v858_v53 = vadd.f32 0.4994258, %v857_v55  ;;  %v1168_v2 = vmul.f32 %v1167_v50, %v2398_v0  ;;  %v532_v33 = vmul.f32 0.5, %v2744_v56  ;;  %v1192_v6 = vand.u32 2147483648, %v1180_v62 }
 0x1c9   :  { %1308 = vmatmul.f32.gmra.mxu3 %v1228_v12  ;;  %1281 = vmatmul.f32.gmra.mxu1 %v1219_v52  ;;  %v829_v48 = vsel %vm828_vm7, %v1449_v43, %v825_v41  ;;  %v846_v31 = vmul.f32 %v845_v18, %v2475_v49  ;;  %v1190_v0 = vand.u32 2147483647, %v1180_v62  ;;  %vm1186_vm10 = vweird.f32 %v1180_v62 }
 0x1ca   :  { %v834_v27 = vsel %vm831_vm8, %v833_v34, %v829_v48  ;;  %v859_v9 = vmul.f32 %v858_v53, %v2475_v49  ;;  %v1169_v4 = vadd.f32 1.1283791, %v1168_v2  ;;  %v1193_v22 = vor.u32 1.1754944e-38, %v1192_v6 }
 0x1cb   :  { %v835_v15 = vmul.f32 %v834_v27, %v810_v58  ;;  %v847_v37 = vadd.f32 0.18741608, %v846_v31  ;;  %vm1191_vm12 = vcmp.eq.f32.partialorder %v1190_v0, 8.507059e+37  ;;  %v541_v20 = vmul.f32 0.5, %v2333_v3 }
 0x1cc   :  { %v1451_v40 = vpop.eup %1450  ;;  %v860_v10 = vadd.f32 1.0, %v859_v9  ;;  %v1170_v30 = vmul.f32 %v1169_v4, %v2353_v42  ;;  %v533_v12 = vmul.f32 0.5, %v2386_v61 }
 0x1cd   :  { %v1341_v38 = vclamps-f32 %v835_v15, 1.0  ;;  %v1182_v59 = vmul.f32 %v1451_v40, %v1180_v62  ;;  %vm1187_vm9 = vweird.f32 %v1451_v40  ;;  %v848_v29 = vmul.f32 %v847_v37, %v2475_v49 }
 0x1ce   :  { %1452 = vrcp.f32 %v860_v10  ;;  %v1267_v32 = vpop.f32.mrf.mxu1  ;;  %vm1188_vm11 = vmor %vm1186_vm10, %vm1187_vm9  ;;  %v872_v26 = vand.u32 2147483648, %v860_v10  ;;  %v870_v63 = vand.u32 2147483647, %v860_v10  ;;  %vm866_vm14 = vweird.f32 %v860_v10 }
 0x1cf   :  { %v1204_v24 = vadd.f32 1.0, %v1341_v38  ;;  %v1183_v11 = vsub.f32 1.0, %v1182_v59  ;;  %v1268_v35 = vadd.f32 %v2634_v51, %v1267_v32  ;;  %v849_v39 = vadd.f32 1.1283791, %v848_v29 }
 0x1d0   :  { %v873_v44 = vor.u32 1.1754944e-38, %v872_v26  ;;  %vm871_vm0 = vcmp.eq.f32.partialorder %v870_v63, 8.507059e+37 }
 0x1d1   :  { %v1220_v7 = vmul.f32 %v1204_v24, %v532_v33  ;;  %v1184_v17 = vmul.f32 %v1451_v40, %v1183_v11  ;;  %1315 = vst [vmem:[%s2713_s7] sm:$0xff] %v1268_v35  ;;  %v850_v49 = vmul.f32 %v849_v39, %v2404_v60 }
 0x1d3   :  { %1284 = vmatmul.f32.gmra.mxu1 %v1220_v7  ;;  %v1185_v46 = vadd.f32 %v1451_v40, %v1184_v17 }
 0x1d4   :  { %v1453_v43 = vpop.eup %1452 }
 0x1d5   :  { %v1189_v1 = vsel %vm1188_vm11, %v1451_v40, %v1185_v46  ;;  %v862_v8 = vmul.f32 %v1453_v43, %v860_v10  ;;  %vm867_vm13 = vweird.f32 %v1453_v43 }
 0x1d6   :  { %v1194_v5 = vsel %vm1191_vm12, %v1193_v22, %v1189_v1  ;;  %vm868_vm15 = vmor %vm866_vm14, %vm867_vm13 }
 0x1d7   :  { %v1195_v13 = vmul.f32 %v1194_v5, %v1170_v30  ;;  %v863_v14 = vsub.f32 1.0, %v862_v8 }
 0x1d9   :  { %v1350_v54 = vclamps-f32 %v1195_v13, 1.0  ;;  %v864_v19 = vmul.f32 %v1453_v43, %v863_v14 }
 0x1db   :  { %v1213_v23 = vadd.f32 1.0, %v1350_v54  ;;  %v865_v25 = vadd.f32 %v1453_v43, %v864_v19 }
 0x1dd   :  { %v1229_v42 = vmul.f32 %v1213_v23, %v541_v20  ;;  %v869_v16 = vsel %vm868_vm15, %v1453_v43, %v865_v25 }
 0x1de   :  { %v874_v47 = vsel %vm871_vm0, %v873_v44, %v869_v16 }
 0x1df   :  { %1311 = vmatmul.f32.gmra.mxu3 %v1229_v42  ;;  %v875_v62 = vmul.f32 %v874_v47, %v850_v49 }
 0x1e1   :  { %v1342_v45 = vclamps-f32 %v875_v62, 1.0 }
 0x1e3   :  { %v1205_v21 = vadd.f32 1.0, %v1342_v45 }
 0x1e5   :  { %v1221_v36 = vmul.f32 %v1205_v21, %v533_v12 }
 0x1e7   :  { %1287 = vmatmul.f32.gmra.mxu1 %v1221_v36 }
 0x1e9   :  { %v1291_v3 = vpop.f32.mrf.mxu3 }
 0x1ea   :  { %v1292_v28 = vadd.f32 %v2634_v51, %v1291_v3 }
 0x1ec   :  { %1323 = vst [vmem:[%s2713_s7 + $0x40] sm:$0xff] %v1292_v28 }
 0x20a   :  { %v1270_v52 = vpop.f32.mrf.mxu1 }
 0x20b   :  { %v1271_v60 = vadd.f32 %v2634_v51, %v1270_v52  ;;  %v1294_v41 = vpop.f32.mrf.mxu3 }
 0x20c   :  { %v1295_v55 = vadd.f32 %v2634_v51, %v1294_v41 }
 0x20d   :  { %1316 = vst [vmem:[%s2713_s7 + $0x8] sm:$0xff] %v1271_v60 }
 0x20e   :  { %1324 = vst [vmem:[%s2713_s7 + $0x48] sm:$0xff] %v1295_v55 }
 0x212   :  { %v1273_v61 = vpop.f32.mrf.mxu1 }
 0x213   :  { %v1274_v50 = vadd.f32 %v2634_v51, %v1273_v61 }
 0x215   :  { %1317 = vst [vmem:[%s2713_s7 + $0x10] sm:$0xff] %v1274_v50  ;;  %v1297_v34 = vpop.f32.mrf.mxu3 }
 0x216   :  { %v1298_v57 = vadd.f32 %v2634_v51, %v1297_v34 }
 0x218   :  { %1325 = vst [vmem:[%s2713_s7 + $0x50] sm:$0xff] %v1298_v57 }
 0x226   :  { %v1300_v58 = vpop.f32.mrf.mxu3 }
 0x227   :  { %v1301_v48 = vadd.f32 %v2634_v51, %v1300_v58 }
 0x229   :  { %1326 = vst [vmem:[%s2713_s7 + $0x58] sm:$0xff] %v1301_v48 }
 0x230   :  { %v1276_v53 = vpop.f32.mrf.mxu1 }
 0x231   :  { %v1277_v18 = vadd.f32 %v2634_v51, %v1276_v53 }
 0x233   :  { %1318 = vst [vmem:[%s2713_s7 + $0x18] sm:$0xff] %v1277_v18 }
 0x239   :  { %v1279_v27 = vpop.f32.mrf.mxu1 }
 0x23a   :  { %v1280_v15 = vadd.f32 %v2634_v51, %v1279_v27 }
 0x23c   :  { %v1303_v9 = vpop.f32.mrf.mxu3  ;;  %1319 = vst [vmem:[%s2713_s7 + $0x20] sm:$0xff] %v1280_v15 }
 0x23d   :  { %v1304_v40 = vadd.f32 %v2634_v51, %v1303_v9 }
 0x23f   :  { %1327 = vst [vmem:[%s2713_s7 + $0x60] sm:$0xff] %v1304_v40 }
 0x244   :  { %v1306_v2 = vpop.f32.mrf.mxu3 }
 0x245   :  { %v1307_v38 = vadd.f32 %v2634_v51, %v1306_v2 }
 0x246   :  { %v1282_v59 = vpop.f32.mrf.mxu1 }
 0x247   :  { %1328 = vst [vmem:[%s2713_s7 + $0x68] sm:$0xff] %v1307_v38  ;;  %v1283_v10 = vadd.f32 %v2634_v51, %v1282_v59 }
 0x249   :  { %1320 = vst [vmem:[%s2713_s7 + $0x28] sm:$0xff] %v1283_v10 }
 0x24c   :  { %v1309_v31 = vpop.f32.mrf.mxu3 }
 0x24d   :  { %v1310_v56 = vadd.f32 %v2634_v51, %v1309_v31 }
 0x24f   :  { %1329 = vst [vmem:[%s2713_s7 + $0x70] sm:$0xff] %v1310_v56 }
 0x250   :  { %v1285_v33 = vpop.f32.mrf.mxu1 }
 0x251   :  { %v1286_v24 = vadd.f32 %v2634_v51, %v1285_v33 }
 0x253   :  { %1321 = vst [vmem:[%s2713_s7 + $0x30] sm:$0xff] %v1286_v24 }
 0x262   :  { %v1312_v11 = vpop.f32.mrf.mxu3 }
 0x263   :  { %v1313_v4 = vadd.f32 %v2634_v51, %v1312_v11 }
 0x264   :  { %v1288_v6 = vpop.f32.mrf.mxu1 }
 0x265   :  { %1330 = vst [vmem:[%s2713_s7 + $0x78] sm:$0xff] %v1313_v4  ;;  %v1289_v7 = vadd.f32 %v2634_v51, %v1288_v6 }
 0x267   :  { %1322 = vst [vmem:[%s2713_s7 + $0x38] sm:$0xff] %v1289_v7 }

// kernel: block_forward.17
= control target key start
LH: loop header
LB: loop body
LE: loop exit
PB: predicated region body
PF: predicated region fallthrough
CT: control target
= control target key end

     0   :  { %v1454_v33 = vmov 32.0   ;;  %s2706_s0 = inlined_call_operand.vmem [shape: f32[128,128], index: 0, kind: input, shape index: {}]   ;;  %s2707_s1 = inlined_call_operand.vmem [shape: f32[1,128], index: 1, kind: input, shape index: {}]   ;;  %s2708_s2 = inlined_call_operand.vmem [shape: f32[1,128], index: 2, kind: input, shape index: {}]   ;;  %s2709_s3 = inlined_call_operand.vmem [shape: f32[128,128], index: 3, kind: input, shape index: {}]   ;;  %s2710_s4 = inlined_call_operand.vmem [shape: f32[1,128], index: 4, kind: input, shape index: {}]   ;;  %s2711_s5 = inlined_call_operand.vmem [shape: f32[128,128], index: 5, kind: input, shape index: {}]   ;;  %s2712_s6 = inlined_call_operand.vmem [shape: f32[1,128], index: 6, kind: input, shape index: {}]   ;;  %s2713_s7 = inlined_call_operand.vmem [shape: f32[128,128], index: 7, kind: output, shape index: {}]  }
   0x1   :  { %v1498_v0 = vld [vmem:[%s2706_s0 + $0x48] sm:$0xff]  ;;  %v1503_v1 = vld [vmem:[%s2706_s0 + $0x40] sm:$0xff]  ;;  %v1522_v6 = vld [vmem:[%s2706_s0 + $0x50] sm:$0xff]  ;;  %1388 = vrcp.f32 %v1454_v33 }
   0x2   :  { %v1508_v2 = vld [vmem:[%s2706_s0] sm:$0xff]  ;;  %62 = vadd.xlane.f32.xlu1 %v1498_v0  ;;  %60 = vadd.xlane.f32.xlu0 %v1503_v1  ;;  %v85_v3 = vmul.f32 %v1498_v0, %v1498_v0  ;;  %v84_v4 = vmul.f32 %v1503_v1, %v1503_v1  ;;  %v86_v7 = vmul.f32 %v1522_v6, %v1522_v6  ;;  %v1529_v8 = vld [vmem:[%s2706_s0 + $0x8] sm:$0xff]  ;;  %v1536_v9 = vld [vmem:[%s2706_s0 + $0x58] sm:$0xff] }
   0x3   :  { %44 = vadd.xlane.f32.xlu2 %v1508_v2  ;;  %v76_v5 = vmul.f32 %v1508_v2, %v1508_v2  ;;  %v77_v10 = vmul.f32 %v1529_v8, %v1529_v8  ;;  %v87_v11 = vmul.f32 %v1536_v9, %v1536_v9  ;;  %v1546_v12 = vld [vmem:[%s2706_s0 + $0x10] sm:$0xff]  ;;  %v1553_v14 = vld [vmem:[%s2706_s0 + $0x60] sm:$0xff]  ;;  %v1560_v15 = vld [vmem:[%s2706_s0 + $0x18] sm:$0xff] }
   0x4   :  { %v78_v13 = vmul.f32 %v1546_v12, %v1546_v12  ;;  %v88_v16 = vmul.f32 %v1553_v14, %v1553_v14  ;;  %v79_v17 = vmul.f32 %v1560_v15, %v1560_v15  ;;  %v1570_v18 = vld [vmem:[%s2706_s0 + $0x68] sm:$0xff]  ;;  %v1577_v20 = vld [vmem:[%s2706_s0 + $0x20] sm:$0xff]  ;;  %v1584_v21 = vld [vmem:[%s2706_s0 + $0x70] sm:$0xff] }
   0x5   :  { %v89_v19 = vmul.f32 %v1570_v18, %v1570_v18  ;;  %v80_v22 = vmul.f32 %v1577_v20, %v1577_v20  ;;  %v90_v23 = vmul.f32 %v1584_v21, %v1584_v21  ;;  %v1594_v24 = vld [vmem:[%s2706_s0 + $0x28] sm:$0xff]  ;;  %v1601_v26 = vld [vmem:[%s2706_s0 + $0x78] sm:$0xff]  ;;  %v1608_v27 = vld [vmem:[%s2706_s0 + $0x30] sm:$0xff] }
   0x6   :  { %v81_v25 = vmul.f32 %v1594_v24, %v1594_v24  ;;  %v91_v28 = vmul.f32 %v1601_v26, %v1601_v26  ;;  %v82_v29 = vmul.f32 %v1608_v27, %v1608_v27  ;;  %v1618_v30 = vld [vmem:[%s2706_s0 + $0x38] sm:$0xff]  ;;  %v455_v34 = vld [vmem:[%s2709_s3 + $0x70] sm:$0xff]  ;;  %v454_v35 = vld [vmem:[%s2709_s3 + $0x68] sm:$0xff] }
   0x7   :  { %v83_v31 = vmul.f32 %v1618_v30, %v1618_v30  ;;  %v456_v32 = vld [vmem:[%s2709_s3 + $0x78] sm:$0xff]  ;;  %v1389_v36 = vpop.eup %1388  ;;  %v453_v37 = vld [vmem:[%s2709_s3 + $0x60] sm:$0xff]  ;;  %v451_v40 = vld [vmem:[%s2709_s3 + $0x50] sm:$0xff] }
   0x8   :  { %461 = vmatpush.msra.mxu0 %v456_v32  ;;  %1351 = vmatpush.msra.mxu2 %v456_v32  ;;  %v452_v38 = vld [vmem:[%s2709_s3 + $0x58] sm:$0xff]  ;;  %v125_v39 = vmul.f32 32.0, %v1389_v36  ;;  %v450_v41 = vld [vmem:[%s2709_s3 + $0x48] sm:$0xff]  ;;  %v449_v43 = vld [vmem:[%s2709_s3 + $0x40] sm:$0xff]  ;;  %vm129_vm0 = vweird.f32 %v1389_v36 }
   0x9   :  { %v448_v44 = vld [vmem:[%s2709_s3 + $0x38] sm:$0xff]  ;;  %v447_v46 = vld [vmem:[%s2709_s3 + $0x30] sm:$0xff]  ;;  %v446_v47 = vld [vmem:[%s2709_s3 + $0x28] sm:$0xff] }
   0xa   :  { %110 = vadd.xlane.f32.xlu1 %v85_v3  ;;  %108 = vadd.xlane.f32.xlu0 %v84_v4  ;;  %v126_v42 = vsub.f32 1.0, %v125_v39  ;;  %v445_v49 = vld [vmem:[%s2709_s3 + $0x20] sm:$0xff]  ;;  %v444_v53 = vld [vmem:[%s2709_s3 + $0x18] sm:$0xff]  ;;  %v443_v55 = vld [vmem:[%s2709_s3 + $0x10] sm:$0xff] }
   0xb   :  { %92 = vadd.xlane.f32.xlu2 %v76_v5  ;;  %462 = vmatpush.msra.mxu0 %v455_v34  ;;  %v442_v58 = vld [vmem:[%s2709_s3 + $0x8] sm:$0xff]  ;;  %v441_v60 = vld [vmem:[%s2709_s3] sm:$0xff] }
   0xc   :  { %1352 = vmatpush.msra.mxu2 %v455_v34  ;;  %v127_v45 = vmul.f32 %v1389_v36, %v126_v42 }
   0xd   :  { %463 = vmatpush.msra.mxu0 %v454_v35 }
   0xe   :  { %1353 = vmatpush.msra.mxu2 %v454_v35  ;;  %v128_v48 = vadd.f32 %v1389_v36, %v127_v45 }
   0xf   :  { %464 = vmatpush.msra.mxu0 %v453_v37 }
  0x10   :  { %1354 = vmatpush.msra.mxu2 %v453_v37  ;;  %v1662_v54 = vsel %vm129_vm0, %v1389_v36, %v128_v48 }
  0x11   :  { %465 = vmatpush.msra.mxu0 %v452_v38 }
  0x12   :  { %112 = vadd.xlane.f32.xlu1 %v86_v7  ;;  %64 = vadd.xlane.f32.xlu0 %v1522_v6 }
  0x13   :  { %46 = vadd.xlane.f32.xlu2 %v1529_v8  ;;  %1355 = vmatpush.msra.mxu2 %v452_v38 }
  0x14   :  { %466 = vmatpush.msra.mxu0 %v451_v40 }
  0x15   :  { %1356 = vmatpush.msra.mxu2 %v451_v40 }
  0x16   :  { %467 = vmatpush.msra.mxu0 %v450_v41 }
  0x17   :  { %1357 = vmatpush.msra.mxu2 %v450_v41 }
  0x18   :  { %468 = vmatpush.msra.mxu0 %v449_v43 }
  0x19   :  { %1358 = vmatpush.msra.mxu2 %v449_v43 }
  0x1a   :  { %66 = vadd.xlane.f32.xlu1 %v1536_v9  ;;  %94 = vadd.xlane.f32.xlu0 %v77_v10 }
  0x1b   :  { %114 = vadd.xlane.f32.xlu2 %v87_v11  ;;  %469 = vmatpush.msra.mxu0 %v448_v44 }
  0x1c   :  { %1359 = vmatpush.msra.mxu2 %v448_v44 }
  0x1d   :  { %470 = vmatpush.msra.mxu0 %v447_v46 }
  0x1e   :  { %1360 = vmatpush.msra.mxu2 %v447_v46 }
  0x1f   :  { %471 = vmatpush.msra.mxu0 %v446_v47 }
  0x20   :  { %1361 = vmatpush.msra.mxu2 %v446_v47 }
  0x21   :  { %472 = vmatpush.msra.mxu0 %v445_v49 }
  0x22   :  { %96 = vadd.xlane.f32.xlu1 %v78_v13  ;;  %48 = vadd.xlane.f32.xlu0 %v1546_v12 }
  0x23   :  { %68 = vadd.xlane.f32.xlu2 %v1553_v14  ;;  %1362 = vmatpush.msra.mxu2 %v445_v49 }
  0x24   :  { %473 = vmatpush.msra.mxu0 %v444_v53 }
  0x25   :  { %1363 = vmatpush.msra.mxu2 %v444_v53 }
  0x26   :  { %474 = vmatpush.msra.mxu0 %v443_v55 }
  0x27   :  { %1364 = vmatpush.msra.mxu2 %v443_v55 }
  0x28   :  { %475 = vmatpush.msra.mxu0 %v442_v58 }
  0x29   :  { %1365 = vmatpush.msra.mxu2 %v442_v58 }
  0x2a   :  { %50 = vadd.xlane.f32.xlu1 %v1560_v15  ;;  %116 = vadd.xlane.f32.xlu0 %v88_v16 }
  0x2b   :  { %98 = vadd.xlane.f32.xlu2 %v79_v17  ;;  %476 = vmatpush.msra.mxu0 %v441_v60 }
  0x2c   :  { %1366 = vmatpush.msra.mxu2 %v441_v60 }
  0x32   :  { %118 = vadd.xlane.f32.xlu1 %v89_v19  ;;  %70 = vadd.xlane.f32.xlu0 %v1570_v18 }
  0x33   :  { %52 = vadd.xlane.f32.xlu2 %v1577_v20 }
  0x3a   :  { %72 = vadd.xlane.f32.xlu1 %v1584_v21  ;;  %100 = vadd.xlane.f32.xlu0 %v80_v22 }
  0x3b   :  { %120 = vadd.xlane.f32.xlu2 %v90_v23 }
  0x42   :  { %102 = vadd.xlane.f32.xlu1 %v81_v25  ;;  %54 = vadd.xlane.f32.xlu0 %v1594_v24 }
  0x43   :  { %74 = vadd.xlane.f32.xlu2 %v1601_v26 }
  0x4a   :  { %56 = vadd.xlane.f32.xlu1 %v1608_v27  ;;  %122 = vadd.xlane.f32.xlu0 %v91_v28 }
  0x4b   :  { %104 = vadd.xlane.f32.xlu2 %v82_v29 }
  0x52   :  { %58 = vadd.xlane.f32.xlu0 %v1618_v30  ;;  %106 = vadd.xlane.f32.xlu1 %v83_v31 }
  0x75   :  { %v63_v50 = vpop.xlane.xlu1 %62  ;;  %v61_v51 = vpop.xlane.xlu0 %60 }
  0x76   :  { %v45_v52 = vpop.xlane.xlu2 %44  ;;  %v1668_v56 = vmul.f32 %v1662_v54, %v63_v50  ;;  %v1671_v57 = vmul.f32 %v1662_v54, %v61_v51 }
  0x77   :  { %v1677_v59 = vmul.f32 %v1662_v54, %v45_v52 }
  0x78   :  { %v172_v63 = vmul.f32 %v1668_v56, %v1668_v56  ;;  %v171_v3 = vmul.f32 %v1671_v57, %v1671_v57 }
  0x79   :  { %v163_v10 = vmul.f32 %v1677_v59, %v1677_v59 }
  0x7d   :  { %v111_v61 = vpop.xlane.xlu1 %110  ;;  %v109_v62 = vpop.xlane.xlu0 %108 }
  0x7e   :  { %v156_v4 = vmul.f32 %v1662_v54, %v111_v61  ;;  %v155_v5 = vmul.f32 %v1662_v54, %v109_v62  ;;  %v93_v7 = vpop.xlane.xlu2 %92 }
  0x7f   :  { %v147_v11 = vmul.f32 %v1662_v54, %v93_v7 }
  0x80   :  { %v188_v13 = vsub.f32 %v156_v4, %v172_v63  ;;  %v187_v16 = vsub.f32 %v155_v5, %v171_v3 }
  0x81   :  { %v179_v17 = vsub.f32 %v147_v11, %v163_v10  ;;  %v203_v10 = vsub.f32 %v1503_v1, %v1671_v57 }
  0x82   :  { %v1691_v19 = vadd.f32 1e-05, %v188_v13  ;;  %v219_v22 = vadd.f32 1e-05, %v187_v16 }
  0x83   :  { %v1693_v23 = vadd.f32 1e-05, %v179_v17 }
  0x84   :  { %1390 = vrsqrt.f32 %v1691_v19  ;;  %vm313_vm2 = vweird.f32 %v219_v22  ;;  %vm323_vm7 = vweird.f32 %v1691_v19 }
  0x85   :  { %1392 = vrsqrt.f32 %v219_v22  ;;  %v113_v25 = vpop.xlane.xlu1 %112  ;;  %v65_v28 = vpop.xlane.xlu0 %64  ;;  %vm233_vm6 = vweird.f32 %v1693_v23 }
  0x86   :  { %1394 = vrsqrt.f32 %v1693_v23  ;;  %v157_v29 = vmul.f32 %v1662_v54, %v113_v25  ;;  %v1699_v31 = vmul.f32 %v1662_v54, %v65_v28  ;;  %v47_v32 = vpop.xlane.xlu2 %46 }
  0x87   :  { %v1706_v36 = vmul.f32 %v1662_v54, %v47_v32 }
  0x88   :  { %v173_v33 = vmul.f32 %v1699_v31, %v1699_v31 }
  0x89   :  { %v164_v47 = vmul.f32 %v1706_v36, %v1706_v36 }
  0x8a   :  { %v1703_v34 = vpop.eup %1390  ;;  %v189_v35 = vsub.f32 %v157_v29, %v173_v33 }
  0x8b   :  { %v1393_v37 = vpop.eup %1392  ;;  %v318_v38 = vmul.f32 %v1703_v34, %v1691_v19  ;;  %vm324_vm3 = vweird.f32 %v1703_v34 }
  0x8c   :  { %v1395_v39 = vpop.eup %1394  ;;  %v308_v40 = vmul.f32 %v1393_v37, %v219_v22  ;;  %v1710_v41 = vadd.f32 1e-05, %v189_v35  ;;  %vm314_vm1 = vweird.f32 %v1393_v37  ;;  %v1744_v22 = vld [vmem:[%s2707_s1] ss:$0 sm:$0xff]  ;;  %vm1757_vm9 = vmor %vm323_vm7, %vm324_vm3 }
  0x8d   :  { %v319_v42 = vmul.f32 %v1703_v34, %v318_v38  ;;  %v228_v43 = vmul.f32 %v1395_v39, %v1693_v23  ;;  %v67_v44 = vpop.xlane.xlu1 %66  ;;  %v95_v45 = vpop.xlane.xlu0 %94  ;;  %vm234_vm4 = vweird.f32 %v1395_v39  ;;  %vm315_vm5 = vmor %vm313_vm2, %vm314_vm1  ;;  %v195_v38 = vsub.f32 %v1508_v2, %v1677_v59  ;;  %v1764_v2 = vld [vmem:[%s2708_s2] ss:$0 sm:$0xff] }
  0x8e   :  { %v309_v46 = vmul.f32 %v1393_v37, %v308_v40  ;;  %1396 = vrsqrt.f32 %v1710_v41  ;;  %v1718_v48 = vmul.f32 %v1662_v54, %v67_v44  ;;  %v115_v49 = vpop.xlane.xlu2 %114  ;;  %v148_v52 = vmul.f32 %v1662_v54, %v95_v45  ;;  %vm235_vm8 = vmor %vm233_vm6, %vm234_vm4 }
  0x8f   :  { %v320_v50 = vmul.f32 0.5, %v319_v42  ;;  %v229_v51 = vmul.f32 %v1395_v39, %v228_v43  ;;  %v158_v53 = vmul.f32 %v1662_v54, %v115_v49  ;;  %vm333_vm11 = vweird.f32 %v1710_v41 }
  0x90   :  { %v310_v55 = vmul.f32 0.5, %v309_v46  ;;  %v174_v58 = vmul.f32 %v1718_v48, %v1718_v48  ;;  %v180_v61 = vsub.f32 %v148_v52, %v164_v47  ;;  %v204_v47 = vsub.f32 %v1498_v0, %v1668_v56 }
  0x91   :  { %v230_v60 = vmul.f32 0.5, %v229_v51  ;;  %v321_v62 = vsub.f32 1.5, %v320_v50 }
  0x92   :  { %v311_v63 = vsub.f32 1.5, %v310_v55  ;;  %v190_v3 = vsub.f32 %v158_v53, %v174_v58  ;;  %v1724_v5 = vadd.f32 1e-05, %v180_v61 }
  0x93   :  { %v231_v4 = vsub.f32 1.5, %v230_v60  ;;  %v322_v29 = vmul.f32 %v1703_v34, %v321_v62 }
  0x94   :  { %v1726_v7 = vpop.eup %1396  ;;  %v1730_v11 = vadd.f32 1e-05, %v190_v3  ;;  %v312_v13 = vmul.f32 %v1393_v37, %v311_v63  ;;  %1398 = vrsqrt.f32 %v1724_v5  ;;  %vm243_vm14 = vweird.f32 %v1724_v5 }
  0x95   :  { %v328_v16 = vmul.f32 %v1726_v7, %v1710_v41  ;;  %v97_v17 = vpop.xlane.xlu1 %96  ;;  %v49_v25 = vpop.xlane.xlu0 %48  ;;  %v232_v33 = vmul.f32 %v1395_v39, %v231_v4  ;;  %v326_v45 = vsel %vm1757_vm9, %v1703_v34, %v322_v29  ;;  %vm334_vm10 = vweird.f32 %v1726_v7 }
  0x96   :  { %1400 = vrsqrt.f32 %v1730_v11  ;;  %v149_v28 = vmul.f32 %v1662_v54, %v97_v17  ;;  %v1739_v1 = vmul.f32 %v1662_v54, %v49_v25  ;;  %v69_v57 = vpop.xlane.xlu2 %68  ;;  %v316_v35 = vsel %vm315_vm5, %v1393_v37, %v312_v13  ;;  %vm1799_vm12 = vmor %vm333_vm11, %vm334_vm10 }
  0x97   :  { %v329_v32 = vmul.f32 %v1726_v7, %v328_v16  ;;  %v395_v42 = vmul.f32 %v316_v35, %v203_v10  ;;  %v236_v44 = vsel %vm235_vm8, %v1395_v39, %v232_v33  ;;  %v1773_v39 = vmul.f32 %v1662_v54, %v69_v57 }
  0x98   :  { %v165_v40 = vmul.f32 %v1739_v1, %v1739_v1  ;;  %v387_v19 = vmul.f32 %v236_v44, %v195_v38  ;;  %v396_v58 = vmul.f32 %v326_v45, %v204_v47  ;;  %v205_v35 = vsub.f32 %v1522_v6, %v1699_v31 }
  0x99   :  { %v330_v23 = vmul.f32 0.5, %v329_v32  ;;  %v414_v37 = vmul.f32 %v1744_v22, %v395_v42  ;;  %v175_v4 = vmul.f32 %v1773_v39, %v1773_v39  ;;  %vm343_vm1 = vweird.f32 %v1730_v11 }
  0x9a   :  { %v181_v59 = vsub.f32 %v149_v28, %v165_v40  ;;  %v1399_v46 = vpop.eup %1398  ;;  %v406_v53 = vmul.f32 %v1744_v22, %v387_v19  ;;  %v415_v32 = vmul.f32 %v1744_v22, %v396_v58  ;;  %v197_v25 = vsub.f32 %v1546_v12, %v1739_v1 }
  0x9b   :  { %v331_v49 = vsub.f32 1.5, %v330_v23  ;;  %v238_v51 = vmul.f32 %v1399_v46, %v1724_v5  ;;  %v433_v55 = vadd.f32 %v1764_v2, %v414_v37  ;;  %vm244_vm13 = vweird.f32 %v1399_v46 }
  0x9c   :  { %v1775_v50 = vpop.eup %1400  ;;  %v1778_v52 = vadd.f32 1e-05, %v181_v59  ;;  %v425_v62 = vadd.f32 %v1764_v2, %v406_v53  ;;  %v196_v23 = vsub.f32 %v1529_v8, %v1706_v36  ;;  %vm245_vm0 = vmor %vm243_vm14, %vm244_vm13  ;;  %v434_v6 = vadd.f32 %v1764_v2, %v415_v32 }
  0x9d   :  { %v338_v34 = vmul.f32 %v1775_v50, %v1730_v11  ;;  %v51_v0 = vpop.xlane.xlu1 %50  ;;  %v117_v56 = vpop.xlane.xlu0 %116  ;;  %v332_v60 = vmul.f32 %v1726_v7, %v331_v49  ;;  %v239_v61 = vmul.f32 %v1399_v46, %v238_v51  ;;  %501 = vmatmul.f32.vlgmr.msra.gmra.mxu2 %v433_v55  ;;  %vm344_vm15 = vweird.f32 %v1775_v50 }
  0x9e   :  { %1402 = vrsqrt.f32 %v1778_v52  ;;  %v99_v63 = vpop.xlane.xlu2 %98  ;;  %v1792_v10 = vmul.f32 %v1662_v54, %v51_v0  ;;  %v159_v13 = vmul.f32 %v1662_v54, %v117_v56  ;;  %477 = vmatmul.f32.vlgmr.msra.gmra.mxu0 %v425_v62  ;;  %vm1833_vm2 = vmor %vm343_vm1, %vm344_vm15  ;;  %v206_v56 = vsub.f32 %v1536_v9, %v1718_v48 }
  0x9f   :  { %v339_v3 = vmul.f32 %v1775_v50, %v338_v34  ;;  %v240_v16 = vmul.f32 0.5, %v239_v61  ;;  %v150_v17 = vmul.f32 %v1662_v54, %v99_v63  ;;  %v336_v41 = vsel %vm1799_vm12, %v1726_v7, %v332_v60 }
  0xa0   :  { %v166_v57 = vmul.f32 %v1792_v10, %v1792_v10  ;;  %v191_v29 = vsub.f32 %v159_v13, %v175_v4  ;;  %v397_v59 = vmul.f32 %v336_v41, %v205_v35  ;;  %vm253_vm4 = vweird.f32 %v1778_v52 }
  0xa1   :  { %v340_v28 = vmul.f32 0.5, %v339_v3  ;;  %v241_v33 = vsub.f32 1.5, %v240_v16 }
  0xa2   :  { %v1811_v40 = vadd.f32 1e-05, %v191_v29  ;;  %v182_v42 = vsub.f32 %v150_v17, %v166_v57  ;;  %v416_v0 = vmul.f32 %v1744_v22, %v397_v59 }
  0xa3   :  { %v341_v38 = vsub.f32 1.5, %v340_v28  ;;  %v242_v44 = vmul.f32 %v1399_v46, %v241_v33 }
  0xa4   :  { %v1403_v43 = vpop.eup %1402  ;;  %1404 = vrsqrt.f32 %v1811_v40  ;;  %v1820_v37 = vadd.f32 1e-05, %v182_v42  ;;  %v435_v48 = vadd.f32 %v1764_v2, %v416_v0  ;;  %vm353_vm7 = vweird.f32 %v1811_v40 }
  0xa5   :  { %v248_v7 = vmul.f32 %v1403_v43, %v1778_v52  ;;  %v119_v31 = vpop.xlane.xlu1 %118  ;;  %v71_v19 = vpop.xlane.xlu0 %70  ;;  %v246_v5 = vsel %vm245_vm0, %v1399_v46, %v242_v44  ;;  %504 = vmatmul.f32.gmra.mxu2 %v434_v6  ;;  %v342_v51 = vmul.f32 %v1775_v50, %v341_v38  ;;  %vm254_vm3 = vweird.f32 %v1403_v43 }
  0xa6   :  { %v160_v45 = vmul.f32 %v1662_v54, %v119_v31  ;;  %v1824_v8 = vmul.f32 %v1662_v54, %v71_v19  ;;  %v53_v36 = vpop.xlane.xlu2 %52  ;;  %v388_v49 = vmul.f32 %v246_v5, %v196_v23  ;;  %1406 = vrsqrt.f32 %v1820_v37  ;;  %vm255_vm5 = vmor %vm253_vm4, %vm254_vm3 }
  0xa7   :  { %v249_v47 = vmul.f32 %v1403_v43, %v248_v7  ;;  %v346_v58 = vsel %vm1833_vm2, %v1775_v50, %v342_v51  ;;  %v1847_v62 = vmul.f32 %v1662_v54, %v53_v36  ;;  %vm263_vm10 = vweird.f32 %v1820_v37 }
  0xa8   :  { %v176_v53 = vmul.f32 %v1824_v8, %v1824_v8  ;;  %v407_v46 = vmul.f32 %v1744_v22, %v388_v49  ;;  %v398_v16 = vmul.f32 %v346_v58, %v206_v56  ;;  %v207_v56 = vsub.f32 %v1553_v14, %v1773_v39 }
  0xa9   :  { %v250_v55 = vmul.f32 0.5, %v249_v47  ;;  %v167_v41 = vmul.f32 %v1847_v62, %v1847_v62 }
  0xaa   :  { %v192_v11 = vsub.f32 %v160_v45, %v176_v53  ;;  %v1844_v60 = vpop.eup %1404  ;;  %v426_v63 = vadd.f32 %v1764_v2, %v407_v46  ;;  %v417_v44 = vmul.f32 %v1744_v22, %v398_v16 }
  0xab   :  { %v251_v61 = vsub.f32 1.5, %v250_v55  ;;  %v348_v3 = vmul.f32 %v1844_v60, %v1811_v40  ;;  %vm354_vm6 = vweird.f32 %v1844_v60 }
  0xac   :  { %v1852_v4 = vadd.f32 1e-05, %v192_v11  ;;  %480 = vmatmul.f32.gmra.mxu0 %v426_v63  ;;  %v1407_v17 = vpop.eup %1406  ;;  %v436_v49 = vadd.f32 %v1764_v2, %v417_v44  ;;  %vm1881_vm8 = vmor %vm353_vm7, %vm354_vm6 }
  0xad   :  { %v252_v9 = vmul.f32 %v1403_v43, %v251_v61  ;;  %v73_v50 = vpop.xlane.xlu1 %72  ;;  %v101_v13 = vpop.xlane.xlu0 %100  ;;  %v349_v28 = vmul.f32 %v1844_v60, %v348_v3  ;;  %v258_v32 = vmul.f32 %v1407_v17, %v1820_v37  ;;  %507 = vmatmul.f32.gmra.mxu2 %v435_v48  ;;  %vm264_vm9 = vweird.f32 %v1407_v17 }
  0xae   :  { %1408 = vrsqrt.f32 %v1852_v4  ;;  %v1861_v57 = vmul.f32 %v1662_v54, %v73_v50  ;;  %v121_v29 = vpop.xlane.xlu2 %120  ;;  %v151_v33 = vmul.f32 %v1662_v54, %v101_v13  ;;  %v198_v3 = vsub.f32 %v1560_v15, %v1792_v10  ;;  %vm265_vm11 = vmor %vm263_vm10, %vm264_vm9 }
  0xaf   :  { %v256_v52 = vsel %vm255_vm5, %v1403_v43, %v252_v9  ;;  %v350_v12 = vmul.f32 0.5, %v349_v28  ;;  %v259_v38 = vmul.f32 %v1407_v17, %v258_v32  ;;  %v161_v23 = vmul.f32 %v1662_v54, %v121_v29 }
  0xb0   :  { %v389_v35 = vmul.f32 %v256_v52, %v197_v25  ;;  %v177_v1 = vmul.f32 %v1861_v57, %v1861_v57  ;;  %v183_v42 = vsub.f32 %v151_v33, %v167_v41  ;;  %vm363_vm13 = vweird.f32 %v1852_v4 }
  0xb1   :  { %v351_v43 = vsub.f32 1.5, %v350_v12  ;;  %v260_v7 = vmul.f32 0.5, %v259_v38  ;;  %v208_v41 = vsub.f32 %v1570_v18, %v1824_v8 }
  0xb2   :  { %v408_v59 = vmul.f32 %v1744_v22, %v389_v35  ;;  %v1873_v6 = vadd.f32 1e-05, %v183_v42  ;;  %v193_v31 = vsub.f32 %v161_v23, %v177_v1 }
  0xb3   :  { %v352_v36 = vmul.f32 %v1844_v60, %v351_v43  ;;  %v261_v5 = vsub.f32 1.5, %v260_v7 }
  0xb4   :  { %v1409_v19 = vpop.eup %1408  ;;  %v427_v45 = vadd.f32 %v1764_v2, %v408_v59  ;;  %1410 = vrsqrt.f32 %v1873_v6  ;;  %v1885_v55 = vadd.f32 1e-05, %v193_v31  ;;  %vm273_vm0 = vweird.f32 %v1873_v6 }
  0xb5   :  { %v358_v47 = vmul.f32 %v1409_v19, %v1852_v4  ;;  %v103_v51 = vpop.xlane.xlu1 %102  ;;  %v55_v53 = vpop.xlane.xlu0 %54  ;;  %510 = vmatmul.f32.gmra.mxu2 %v436_v49  ;;  %v356_v58 = vsel %vm1881_vm8, %v1844_v60, %v352_v36  ;;  %v262_v61 = vmul.f32 %v1407_v17, %v261_v5  ;;  %vm364_vm12 = vweird.f32 %v1409_v19 }
  0xb6   :  { %v152_v40 = vmul.f32 %v1662_v54, %v103_v51  ;;  %v1889_v46 = vmul.f32 %v1662_v54, %v55_v53  ;;  %483 = vmatmul.f32.gmra.mxu0 %v427_v45  ;;  %v75_v0 = vpop.xlane.xlu2 %74  ;;  %1412 = vrsqrt.f32 %v1885_v55  ;;  %v399_v39 = vmul.f32 %v356_v58, %v207_v56  ;;  %vm365_vm14 = vmor %vm363_vm13, %vm364_vm12 }
  0xb7   :  { %v359_v11 = vmul.f32 %v1409_v19, %v358_v47  ;;  %v266_v48 = vsel %vm265_vm11, %v1407_v17, %v262_v61  ;;  %v1906_v37 = vmul.f32 %v1662_v54, %v75_v0  ;;  %v199_v56 = vsub.f32 %v1577_v20, %v1847_v62 }
  0xb8   :  { %v168_v63 = vmul.f32 %v1889_v46, %v1889_v46  ;;  %v418_v13 = vmul.f32 %v1744_v22, %v399_v39  ;;  %v390_v16 = vmul.f32 %v266_v48, %v198_v3  ;;  %vm373_vm3 = vweird.f32 %v1885_v55 }
  0xb9   :  { %v360_v14 = vmul.f32 0.5, %v359_v11  ;;  %v178_v38 = vmul.f32 %v1906_v37, %v1906_v37 }
  0xba   :  { %v184_v9 = vsub.f32 %v152_v40, %v168_v63  ;;  %v1903_v50 = vpop.eup %1410  ;;  %v437_v28 = vadd.f32 %v1764_v2, %v418_v13  ;;  %v409_v52 = vmul.f32 %v1744_v22, %v390_v16 }
  0xbb   :  { %v361_v60 = vsub.f32 1.5, %v360_v14  ;;  %v268_v25 = vmul.f32 %v1903_v50, %v1873_v6  ;;  %vm274_vm15 = vweird.f32 %v1903_v50  ;;  %v209_v14 = vsub.f32 %v1584_v21, %v1861_v57 }
  0xbc   :  { %v1911_v15 = vadd.f32 1e-05, %v184_v9  ;;  %v1413_v32 = vpop.eup %1412  ;;  %v428_v59 = vadd.f32 %v1764_v2, %v409_v52  ;;  %vm275_vm2 = vmor %vm273_vm0, %vm274_vm15 }
  0xbd   :  { %v362_v10 = vmul.f32 %v1409_v19, %v361_v60  ;;  %v57_v17 = vpop.xlane.xlu1 %56  ;;  %v123_v29 = vpop.xlane.xlu0 %122  ;;  %v269_v33 = vmul.f32 %v1903_v50, %v268_v25  ;;  %v368_v1 = vmul.f32 %v1413_v32, %v1885_v55  ;;  %513 = vmatmul.f32.gmra.mxu2 %v437_v28  ;;  %vm374_vm1 = vweird.f32 %v1413_v32 }
  0xbe   :  { %1414 = vrsqrt.f32 %v1911_v15  ;;  %v1922_v35 = vmul.f32 %v1662_v54, %v57_v17  ;;  %v105_v4 = vpop.xlane.xlu2 %104  ;;  %v162_v42 = vmul.f32 %v1662_v54, %v123_v29  ;;  %486 = vmatmul.f32.gmra.mxu0 %v428_v59  ;;  %vm375_vm4 = vmor %vm373_vm3, %vm374_vm1  ;;  %vm283_vm6 = vweird.f32 %v1911_v15 }
  0xbf   :  { %v366_v12 = vsel %vm365_vm14, %v1409_v19, %v362_v10  ;;  %v270_v8 = vmul.f32 0.5, %v269_v33  ;;  %v369_v44 = vmul.f32 %v1413_v32, %v368_v1  ;;  %v153_v7 = vmul.f32 %v1662_v54, %v105_v4 }
  0xc0   :  { %v400_v18 = vmul.f32 %v366_v12, %v208_v41  ;;  %v169_v23 = vmul.f32 %v1922_v35, %v1922_v35  ;;  %v194_v43 = vsub.f32 %v162_v42, %v178_v38  ;;  %v200_v28 = vsub.f32 %v1594_v24, %v1889_v46 }
  0xc1   :  { %v271_v31 = vsub.f32 1.5, %v270_v8  ;;  %v370_v45 = vmul.f32 0.5, %v369_v44  ;;  %v210_v42 = vsub.f32 %v1601_v26, %v1906_v37 }
  0xc2   :  { %v419_v19 = vmul.f32 %v1744_v22, %v400_v18  ;;  %v1934_v36 = vadd.f32 1e-05, %v194_v43  ;;  %v185_v5 = vsub.f32 %v153_v7, %v169_v23  ;;  %v201_v7 = vsub.f32 %v1608_v27, %v1922_v35 }
  0xc3   :  { %v272_v51 = vmul.f32 %v1903_v50, %v271_v31  ;;  %v371_v53 = vsub.f32 1.5, %v370_v45 }
  0xc4   :  { %v1415_v47 = vpop.eup %1414  ;;  %v438_v49 = vadd.f32 %v1764_v2, %v419_v19  ;;  %1416 = vrsqrt.f32 %v1934_v36  ;;  %v217_v11 = vadd.f32 1e-05, %v185_v5  ;;  %vm383_vm9 = vweird.f32 %v1934_v36 }
  0xc5   :  { %v278_v34 = vmul.f32 %v1415_v47, %v1911_v15  ;;  %v59_v40 = vpop.xlane.xlu0 %58  ;;  %v107_v0 = vpop.xlane.xlu1 %106  ;;  %v276_v63 = vsel %vm275_vm2, %v1903_v50, %v272_v51  ;;  %v372_v3 = vmul.f32 %v1413_v32, %v371_v53  ;;  %vm284_vm5 = vweird.f32 %v1415_v47 }
  0xc6   :  { %v1946_v6 = vmul.f32 %v1662_v54, %v59_v40  ;;  %v154_v58 = vmul.f32 %v1662_v54, %v107_v0  ;;  %516 = vmatmul.f32.gmra.mxu2 %v438_v49  ;;  %1418 = vrsqrt.f32 %v217_v11  ;;  %v391_v39 = vmul.f32 %v276_v63, %v199_v56  ;;  %vm285_vm7 = vmor %vm283_vm6, %vm284_vm5  ;;  %v1245_v40 = vld [vmem:[%s2711_s5 + $0x78] sm:$0xff]  ;;  %v1988_v0 = vld [vmem:[%s2710_s4] ss:$0 sm:$0xff] }
  0xc7   :  { %v279_v61 = vmul.f32 %v1415_v47, %v278_v34  ;;  %v376_v9 = vsel %vm375_vm4, %v1413_v32, %v372_v3  ;;  %vm293_vm12 = vweird.f32 %v217_v11  ;;  %1250 = vmatpush.msra.mxu1 %v1245_v40  ;;  %1367 = vmatpush.msra.mxu3 %v1245_v40  ;;  %v1242_v56 = vld [vmem:[%s2711_s5 + $0x60] sm:$0xff] }
  0xc8   :  { %v170_v20 = vmul.f32 %v1946_v6, %v1946_v6  ;;  %v401_v48 = vmul.f32 %v376_v9, %v209_v14  ;;  %v410_v50 = vmul.f32 %v1744_v22, %v391_v39  ;;  %v202_v49 = vsub.f32 %v1618_v30, %v1946_v6  ;;  %v1244_v30 = vld [vmem:[%s2711_s5 + $0x70] sm:$0xff]  ;;  %v1241_v6 = vld [vmem:[%s2711_s5 + $0x58] sm:$0xff]  ;;  %v1238_v9 = vld [vmem:[%s2711_s5 + $0x40] sm:$0xff] }
  0xc9   :  { %v280_v62 = vmul.f32 0.5, %v279_v61  ;;  %1251 = vmatpush.msra.mxu1 %v1244_v30  ;;  %1368 = vmatpush.msra.mxu3 %v1244_v30  ;;  %v1240_v61 = vld [vmem:[%s2711_s5 + $0x50] sm:$0xff] }
  0xca   :  { %v186_v54 = vsub.f32 %v154_v58, %v170_v20  ;;  %v1417_v55 = vpop.eup %1416  ;;  %v420_v21 = vmul.f32 %v1744_v22, %v401_v48  ;;  %v429_v25 = vadd.f32 %v1764_v2, %v410_v50  ;;  %v1239_v20 = vld [vmem:[%s2711_s5 + $0x48] sm:$0xff] }
  0xcb   :  { %v281_v60 = vsub.f32 1.5, %v280_v62  ;;  %v378_v13 = vmul.f32 %v1417_v55, %v1934_v36  ;;  %vm384_vm8 = vweird.f32 %v1417_v55 }
  0xcc   :  { %v218_v16 = vadd.f32 1e-05, %v186_v54  ;;  %v1419_v10 = vpop.eup %1418  ;;  %v439_v29 = vadd.f32 %v1764_v2, %v420_v21  ;;  %489 = vmatmul.f32.gmra.mxu0 %v429_v25  ;;  %vm385_vm10 = vmor %vm383_vm9, %vm384_vm8  ;;  %v1236_v21 = vld [vmem:[%s2711_s5 + $0x30] sm:$0xff] }
  0xcd   :  { %v282_v57 = vmul.f32 %v1415_v47, %v281_v60  ;;  %v379_v17 = vmul.f32 %v1417_v55, %v378_v13  ;;  %v288_v32 = vmul.f32 %v1419_v10, %v217_v11  ;;  %vm294_vm11 = vweird.f32 %v1419_v10  ;;  %v1237_v60 = vld [vmem:[%s2711_s5 + $0x38] sm:$0xff] }
  0xce   :  { %1420 = vrsqrt.f32 %v218_v16  ;;  %519 = vmatmul.f32.gmra.mxu2 %v439_v29  ;;  %vm295_vm13 = vmor %vm293_vm12, %vm294_vm11  ;;  %vm303_vm15 = vweird.f32 %v218_v16 }
  0xcf   :  { %v286_v52 = vsel %vm285_vm7, %v1415_v47, %v282_v57  ;;  %v380_v33 = vmul.f32 0.5, %v379_v17  ;;  %v289_v4 = vmul.f32 %v1419_v10, %v288_v32 }
  0xd0   :  { %v392_v41 = vmul.f32 %v286_v52, %v200_v28  ;;  %v1235_v52 = vld [vmem:[%s2711_s5 + $0x28] sm:$0xff] }
  0xd1   :  { %v381_v12 = vsub.f32 1.5, %v380_v33  ;;  %v290_v1 = vmul.f32 0.5, %v289_v4 }
  0xd2   :  { %v411_v15 = vmul.f32 %v1744_v22, %v392_v41 }
  0xd3   :  { %v382_v46 = vmul.f32 %v1417_v55, %v381_v12  ;;  %v291_v18 = vsub.f32 1.5, %v290_v1 }
  0xd4   :  { %v1421_v38 = vpop.eup %1420  ;;  %v430_v24 = vadd.f32 %v1764_v2, %v411_v15  ;;  %v1234_v15 = vld [vmem:[%s2711_s5 + $0x20] sm:$0xff] }
  0xd5   :  { %v298_v8 = vmul.f32 %v1421_v38, %v218_v16  ;;  %v386_v23 = vsel %vm385_vm10, %v1417_v55, %v382_v46  ;;  %v292_v59 = vmul.f32 %v1419_v10, %v291_v18  ;;  %vm304_vm14 = vweird.f32 %v1421_v38  ;;  %v1233_v46 = vld [vmem:[%s2711_s5 + $0x18] sm:$0xff] }
  0xd6   :  { %492 = vmatmul.f32.gmra.mxu0 %v430_v24  ;;  %v402_v43 = vmul.f32 %v386_v23, %v210_v42  ;;  %vm305_vm0 = vmor %vm303_vm15, %vm304_vm14 }
  0xd7   :  { %v299_v44 = vmul.f32 %v1421_v38, %v298_v8  ;;  %v296_v45 = vsel %vm295_vm13, %v1419_v10, %v292_v59 }
  0xd8   :  { %v421_v19 = vmul.f32 %v1744_v22, %v402_v43  ;;  %v393_v36 = vmul.f32 %v296_v45, %v201_v7  ;;  %v1232_v43 = vld [vmem:[%s2711_s5 + $0x10] sm:$0xff] }
  0xd9   :  { %v300_v31 = vmul.f32 0.5, %v299_v44 }
  0xda   :  { %v440_v37 = vadd.f32 %v1764_v2, %v421_v19  ;;  %v412_v5 = vmul.f32 %v1744_v22, %v393_v36 }
  0xdb   :  { %v301_v26 = vsub.f32 1.5, %v300_v31 }
  0xdc   :  { %522 = vmatmul.f32.gmra.mxu2 %v440_v37  ;;  %v431_v27 = vadd.f32 %v1764_v2, %v412_v5 }
  0xdd   :  { %v302_v47 = vmul.f32 %v1421_v38, %v301_v26  ;;  %v1231_v26 = vld [vmem:[%s2711_s5 + $0x8] sm:$0xff] }
  0xde   :  { %495 = vmatmul.f32.gmra.mxu0 %v431_v27 }
  0xdf   :  { %v306_v35 = vsel %vm305_vm0, %v1421_v38, %v302_v47 }
  0xe0   :  { %v394_v51 = vmul.f32 %v306_v35, %v202_v49  ;;  %v1230_v35 = vld [vmem:[%s2711_s5] sm:$0xff] }
  0xe2   :  { %v413_v53 = vmul.f32 %v1744_v22, %v394_v51  ;;  %v1243_v22 = vld [vmem:[%s2711_s5 + $0x68] sm:$0xff] }
  0xe3   :  { %1252 = vmatpush.msra.mxu1 %v1243_v22  ;;  %1369 = vmatpush.msra.mxu3 %v1243_v22 }
  0xe4   :  { %v432_v34 = vadd.f32 %v1764_v2, %v413_v53 }
  0xe5   :  { %1253 = vmatpush.msra.mxu1 %v1242_v56  ;;  %1370 = vmatpush.msra.mxu3 %v1242_v56 }
  0xe6   :  { %498 = vmatmul.f32.gmra.mxu0 %v432_v34 }
  0xe7   :  { %1254 = vmatpush.msra.mxu1 %v1241_v6  ;;  %1371 = vmatpush.msra.mxu3 %v1241_v6 }
  0xe9   :  { %1255 = vmatpush.msra.mxu1 %v1240_v61  ;;  %1372 = vmatpush.msra.mxu3 %v1240_v61 }
  0xeb   :  { %1256 = vmatpush.msra.mxu1 %v1239_v20  ;;  %1373 = vmatpush.msra.mxu3 %v1239_v20 }
  0xed   :  { %1257 = vmatpush.msra.mxu1 %v1238_v9  ;;  %1374 = vmatpush.msra.mxu3 %v1238_v9 }
  0xef   :  { %1258 = vmatpush.msra.mxu1 %v1237_v60  ;;  %1375 = vmatpush.msra.mxu3 %v1237_v60 }
  0xf1   :  { %1259 = vmatpush.msra.mxu1 %v1236_v21  ;;  %1376 = vmatpush.msra.mxu3 %v1236_v21 }
  0xf3   :  { %1260 = vmatpush.msra.mxu1 %v1235_v52  ;;  %1377 = vmatpush.msra.mxu3 %v1235_v52 }
  0xf5   :  { %1261 = vmatpush.msra.mxu1 %v1234_v15  ;;  %1378 = vmatpush.msra.mxu3 %v1234_v15 }
  0xf7   :  { %1262 = vmatpush.msra.mxu1 %v1233_v46  ;;  %1379 = vmatpush.msra.mxu3 %v1233_v46 }
  0xf9   :  { %1263 = vmatpush.msra.mxu1 %v1232_v43  ;;  %1380 = vmatpush.msra.mxu3 %v1232_v43 }
  0xfb   :  { %1264 = vmatpush.msra.mxu1 %v1231_v26  ;;  %1381 = vmatpush.msra.mxu3 %v1231_v26 }
  0xfd   :  { %1265 = vmatpush.msra.mxu1 %v1230_v35  ;;  %1382 = vmatpush.msra.mxu3 %v1230_v35 }
 0x11b   :  { %v478_v2 = vpop.f32.mrf.mxu0 }
 0x11c   :  { %v1997_v11 = vadd.f32 %v1988_v0, %v478_v2 }
 0x11e   :  { %v2003_v58 = vmul.f32 0.70710677, %v1997_v11  ;;  %v2120_v46 = vmul.f32 0.5, %v1997_v11 }
 0x120   :  { %v558_v63 = vmul.f32 %v2003_v58, %v2003_v58  ;;  %v502_v3 = vpop.f32.mrf.mxu2 }
 0x121   :  { %v2011_v14 = vadd.f32 %v1988_v0, %v502_v3 }
 0x122   :  { %v2016_v62 = vmin.f32 %v558_v63, 16.0 }
 0x123   :  { %v2019_v39 = vmul.f32 0.70710677, %v2011_v14 }
 0x124   :  { %v560_v54 = vmul.f32 2.1237322e-06, %v2016_v62  ;;  %v571_v48 = vmul.f32 3.8918573e-05, %v2016_v62 }
 0x125   :  { %v878_v55 = vmul.f32 %v2019_v39, %v2019_v39 }
 0x126   :  { %v572_v50 = vadd.f32 0.001143296, %v571_v48  ;;  %v561_v13 = vadd.f32 0.00028619796, %v560_v54 }
 0x127   :  { %v2031_v16 = vmin.f32 %v878_v55, 16.0 }
 0x128   :  { %v505_v57 = vpop.f32.mrf.mxu2  ;;  %v573_v10 = vmul.f32 %v572_v50, %v2016_v62  ;;  %v562_v41 = vmul.f32 %v561_v13, %v2016_v62 }
 0x129   :  { %v481_v25 = vpop.f32.mrf.mxu0  ;;  %v880_v28 = vmul.f32 2.1237322e-06, %v2031_v16  ;;  %v2039_v17 = vadd.f32 %v1988_v0, %v505_v57  ;;  %v891_v38 = vmul.f32 3.8918573e-05, %v2031_v16 }
 0x12a   :  { %v2042_v29 = vadd.f32 %v1988_v0, %v481_v25  ;;  %v574_v32 = vadd.f32 0.014752088, %v573_v10  ;;  %v563_v23 = vadd.f32 0.0036580483, %v562_v41 }
 0x12b   :  { %v881_v33 = vadd.f32 0.00028619796, %v880_v28  ;;  %v2049_v4 = vmul.f32 0.70710677, %v2039_v17  ;;  %v892_v19 = vadd.f32 0.001143296, %v891_v38 }
 0x12c   :  { %v2052_v12 = vmul.f32 0.70710677, %v2042_v29  ;;  %v575_v1 = vmul.f32 %v574_v32, %v2016_v62  ;;  %v564_v27 = vmul.f32 %v563_v23, %v2016_v62 }
 0x12d   :  { %v918_v24 = vmul.f32 %v2049_v4, %v2049_v4  ;;  %v882_v42 = vmul.f32 %v881_v33, %v2031_v16  ;;  %v893_v34 = vmul.f32 %v892_v19, %v2031_v16 }
 0x12e   :  { %v598_v18 = vmul.f32 %v2052_v12, %v2052_v12  ;;  %v576_v8 = vadd.f32 0.112945676, %v575_v1  ;;  %v565_v6 = vadd.f32 0.05243302, %v564_v27 }
 0x12f   :  { %v2067_v44 = vmin.f32 %v918_v24, 16.0  ;;  %v883_v37 = vadd.f32 0.0036580483, %v882_v42  ;;  %v894_v9 = vadd.f32 0.014752088, %v893_v34 }
 0x130   :  { %v2072_v59 = vmin.f32 %v598_v18, 16.0  ;;  %v508_v7 = vpop.f32.mrf.mxu2  ;;  %v577_v31 = vmul.f32 %v576_v8, %v2016_v62  ;;  %v566_v50 = vmul.f32 %v565_v6, %v2016_v62  ;;  %v2123_v18 = vmul.f32 0.5, %v2011_v14 }
 0x131   :  { %v2076_v45 = vadd.f32 %v1988_v0, %v508_v7  ;;  %v920_v5 = vmul.f32 2.1237322e-06, %v2067_v44  ;;  %v884_v22 = vmul.f32 %v883_v37, %v2031_v16  ;;  %v895_v57 = vmul.f32 %v894_v9, %v2031_v16 }
 0x132   :  { %v578_v49 = vadd.f32 0.4994258, %v577_v31  ;;  %v600_v51 = vmul.f32 2.1237322e-06, %v2072_v59  ;;  %v567_v32 = vadd.f32 0.18741608, %v566_v50 }
 0x133   :  { %v484_v36 = vpop.f32.mrf.mxu0  ;;  %v2089_v53 = vmul.f32 0.70710677, %v2076_v45  ;;  %v921_v2 = vadd.f32 0.00028619796, %v920_v5  ;;  %v885_v48 = vadd.f32 0.05243302, %v884_v22 }
 0x134   :  { %v485_v47 = vadd.f32 %v1988_v0, %v484_v36  ;;  %v579_v30 = vmul.f32 %v578_v49, %v2016_v62  ;;  %v601_v63 = vadd.f32 0.00028619796, %v600_v51  ;;  %v896_v24 = vadd.f32 0.112945676, %v895_v57 }
 0x135   :  { %v958_v56 = vmul.f32 %v2089_v53, %v2089_v53  ;;  %v922_v55 = vmul.f32 %v921_v2, %v2067_v44  ;;  %v886_v10 = vmul.f32 %v885_v48, %v2031_v16  ;;  %v568_v7 = vmul.f32 %v567_v32, %v2016_v62 }
 0x136   :  { %v2092_v40 = vmul.f32 0.70710677, %v485_v47  ;;  %v2098_v61 = vadd.f32 1.0, %v579_v30  ;;  %v602_v13 = vmul.f32 %v601_v63, %v2072_v59  ;;  %v2138_v14 = vmul.f32 0.5, %v2039_v17 }
 0x137   :  { %v2102_v54 = vmin.f32 %v958_v56, 16.0  ;;  %v923_v28 = vadd.f32 0.0036580483, %v922_v55  ;;  %v887_v8 = vadd.f32 0.18741608, %v886_v10  ;;  %v897_v37 = vmul.f32 %v896_v24, %v2031_v16 }
 0x138   :  { %v638_v3 = vmul.f32 %v2092_v40, %v2092_v40  ;;  %v511_v20 = vpop.f32.mrf.mxu2  ;;  %1422 = vrcp.f32 %v2098_v61  ;;  %v603_v33 = vadd.f32 0.0036580483, %v602_v13  ;;  %v2143_v5 = vmul.f32 0.5, %v2042_v29 }
 0x139   :  { %v512_v60 = vadd.f32 %v1988_v0, %v511_v20  ;;  %v960_v25 = vmul.f32 2.1237322e-06, %v2102_v54  ;;  %v924_v23 = vmul.f32 %v923_v28, %v2067_v44  ;;  %v2146_v62 = vmul.f32 0.5, %v2076_v45 }
 0x13a   :  { %v2109_v21 = vmin.f32 %v638_v3, 16.0  ;;  %v604_v36 = vmul.f32 %v603_v33, %v2072_v59  ;;  %v2149_v27 = vmul.f32 0.5, %v485_v47  ;;  %v888_v35 = vmul.f32 %v887_v8, %v2031_v16 }
 0x13b   :  { %v2114_v52 = vmul.f32 0.70710677, %v512_v60  ;;  %v487_v1 = vpop.f32.mrf.mxu0  ;;  %v961_v42 = vadd.f32 0.00028619796, %v960_v25  ;;  %v925_v51 = vadd.f32 0.05243302, %v924_v23  ;;  %vm586_vm1 = vweird.f32 %v2098_v61 }
 0x13c   :  { %v640_v15 = vmul.f32 2.1237322e-06, %v2109_v21  ;;  %v2130_v31 = vadd.f32 %v1988_v0, %v487_v1  ;;  %v569_v30 = vadd.f32 1.1283791, %v568_v7  ;;  %v605_v45 = vadd.f32 0.05243302, %v604_v36 }
 0x13d   :  { %v998_v43 = vmul.f32 %v2114_v52, %v2114_v52  ;;  %v962_v49 = vmul.f32 %v961_v42, %v2102_v54  ;;  %v898_v6 = vadd.f32 0.4994258, %v897_v37  ;;  %v592_v20 = vand.u32 2147483648, %v2098_v61 }
 0x13e   :  { %v2116_v41 = vpop.eup %1422  ;;  %v641_v26 = vadd.f32 0.00028619796, %v640_v15  ;;  %v2155_v22 = vmul.f32 0.70710677, %v2130_v31  ;;  %v889_v9 = vadd.f32 1.1283791, %v888_v35  ;;  %v926_v48 = vmul.f32 %v925_v51, %v2067_v44 }
 0x13f   :  { %v582_v11 = vmul.f32 %v2116_v41, %v2098_v61  ;;  %v2152_v17 = vmin.f32 %v998_v43, 16.0  ;;  %v963_v63 = vadd.f32 0.0036580483, %v962_v49  ;;  %vm587_vm2 = vweird.f32 %v2116_v41 }
 0x140   :  { %v514_v38 = vpop.f32.mrf.mxu2  ;;  %v642_v2 = vmul.f32 %v641_v26, %v2109_v21  ;;  %v678_v57 = vmul.f32 %v2155_v22, %v2155_v22  ;;  %v590_v28 = vand.u32 2147483647, %v2098_v61  ;;  %v2179_v33 = vmul.f32 0.5, %v512_v60  ;;  %vm2186_vm3 = vmor %vm586_vm1, %vm587_vm2 }
 0x141   :  { %v2133_v19 = vadd.f32 %v1988_v0, %v514_v38  ;;  %v583_v34 = vsub.f32 1.0, %v582_v11  ;;  %v1000_v55 = vmul.f32 2.1237322e-06, %v2152_v17  ;;  %v899_v38 = vmul.f32 %v898_v6, %v2031_v16 }
 0x142   :  { %v643_v32 = vadd.f32 0.0036580483, %v642_v2  ;;  %v606_v24 = vmul.f32 %v605_v45, %v2072_v59  ;;  %v964_v42 = vmul.f32 %v963_v63, %v2102_v54  ;;  %v593_v8 = vor.u32 1.1754944e-38, %v592_v20 }
 0x143   :  { %v2158_v29 = vmul.f32 0.70710677, %v2133_v19  ;;  %v584_v56 = vmul.f32 %v2116_v41, %v583_v34  ;;  %v570_v23 = vmul.f32 %v569_v30, %v2003_v58  ;;  %v927_v43 = vadd.f32 0.18741608, %v926_v48 }
 0x144   :  { %v1001_v7 = vadd.f32 0.00028619796, %v1000_v55  ;;  %v2200_v11 = vmin.f32 %v678_v57, 16.0  ;;  %vm591_vm4 = vcmp.eq.f32.partialorder %v590_v28, 8.507059e+37  ;;  %v644_v26 = vmul.f32 %v643_v32, %v2109_v21 }
 0x145   :  { %v585_v13 = vadd.f32 %v2116_v41, %v584_v56  ;;  %v1038_v25 = vmul.f32 %v2158_v29, %v2158_v29  ;;  %v2209_v58 = vadd.f32 1.0, %v899_v38  ;;  %v607_v49 = vadd.f32 0.18741608, %v606_v24 }
 0x146   :  { %v965_v35 = vadd.f32 0.05243302, %v964_v42  ;;  %v1002_v45 = vmul.f32 %v1001_v7, %v2152_v17  ;;  %v928_v6 = vmul.f32 %v927_v43, %v2067_v44  ;;  %v680_v63 = vmul.f32 2.1237322e-06, %v2200_v11 }
 0x147   :  { %v589_v60 = vsel %vm2186_vm3, %v2116_v41, %v585_v13  ;;  %v2202_v36 = vmin.f32 %v1038_v25, 16.0  ;;  %1424 = vrcp.f32 %v2209_v58  ;;  %v645_v55 = vadd.f32 0.05243302, %v644_v26 }
 0x148   :  { %v594_v37 = vsel %vm591_vm4, %v593_v8, %v589_v60  ;;  %v966_v57 = vmul.f32 %v965_v35, %v2102_v54  ;;  %v2229_v25 = vmul.f32 0.5, %v2130_v31  ;;  %v608_v1 = vmul.f32 %v607_v49, %v2072_v59 }
 0x149   :  { %v517_v47 = vpop.f32.mrf.mxu2  ;;  %v490_v50 = vpop.f32.mrf.mxu0  ;;  %v595_v34 = vmul.f32 %v594_v37, %v570_v23  ;;  %v1040_v20 = vmul.f32 2.1237322e-06, %v2202_v36  ;;  %v1003_v38 = vadd.f32 0.0036580483, %v1002_v45  ;;  %v890_v60 = vmul.f32 %v889_v9, %v2019_v39 }
 0x14a   :  { %v2164_v3 = vadd.f32 %v1988_v0, %v517_v47  ;;  %v2176_v10 = vadd.f32 %v1988_v0, %v490_v50  ;;  %v929_v8 = vadd.f32 1.1283791, %v928_v6  ;;  %v681_v23 = vadd.f32 0.00028619796, %v680_v63 }
 0x14b   :  { %v1335_v48 = vclamps-f32 %v595_v34, 1.0  ;;  %v1041_v43 = vadd.f32 0.00028619796, %v1040_v20  ;;  %v646_v31 = vmul.f32 %v645_v55, %v2109_v21  ;;  %v967_v37 = vadd.f32 0.18741608, %v966_v57 }
 0x14c   :  { %v2182_v15 = vmul.f32 0.70710677, %v2164_v3  ;;  %v2198_v61 = vmul.f32 0.70710677, %v2176_v10  ;;  %v1004_v39 = vmul.f32 %v1003_v38, %v2152_v17  ;;  %v2249_v9 = vmul.f32 0.5, %v2133_v19 }
 0x14d   :  { %v1198_v24 = vadd.f32 1.0, %v1335_v48  ;;  %v1425_v7 = vpop.eup %1424  ;;  %v2257_v20 = vmul.f32 %v929_v8, %v2049_v4  ;;  %v647_v48 = vadd.f32 0.18741608, %v646_v31  ;;  %v968_v19 = vmul.f32 %v967_v37, %v2102_v54 }
 0x14e   :  { %v1078_v16 = vmul.f32 %v2182_v15, %v2182_v15  ;;  %v718_v41 = vmul.f32 %v2198_v61, %v2198_v61  ;;  %v902_v34 = vmul.f32 %v1425_v7, %v2209_v58  ;;  %vm907_vm5 = vweird.f32 %v1425_v7 }
 0x14f   :  { %v1214_v26 = vmul.f32 %v1198_v24, %v2120_v46  ;;  %v682_v46 = vmul.f32 %v681_v23, %v2200_v11  ;;  %v910_v24 = vand.u32 2147483647, %v2209_v58  ;;  %vm906_vm6 = vweird.f32 %v2209_v58 }
 0x150   :  { %v2211_v51 = vmin.f32 %v1078_v16, 16.0  ;;  %v2214_v2 = vmin.f32 %v718_v41, 16.0  ;;  %v903_v63 = vsub.f32 1.0, %v902_v34  ;;  %v648_v31 = vmul.f32 %v647_v48, %v2109_v21  ;;  %vm908_vm7 = vmor %vm906_vm6, %vm907_vm5 }
 0x151   :  { %v520_v30 = vpop.f32.mrf.mxu2  ;;  %1266 = vmatmul.f32.vlgmr.msra.gmra.mxu1 %v1214_v26  ;;  %v683_v4 = vadd.f32 0.0036580483, %v682_v46  ;;  %vm911_vm8 = vcmp.eq.f32.partialorder %v910_v24, 8.507059e+37 }
 0x152   :  { %v2217_v47 = vadd.f32 %v1988_v0, %v520_v30  ;;  %v1080_v50 = vmul.f32 2.1237322e-06, %v2211_v51  ;;  %v720_v28 = vmul.f32 2.1237322e-06, %v2214_v2  ;;  %v609_v30 = vadd.f32 1.1283791, %v608_v1 }
 0x153   :  { %v493_v56 = vpop.f32.mrf.mxu0  ;;  %v1005_v1 = vadd.f32 0.05243302, %v1004_v39  ;;  %v2286_v24 = vadd.f32 1.1283791, %v648_v31 }
 0x154   :  { %v2225_v13 = vmul.f32 0.70710677, %v2217_v47  ;;  %v2233_v32 = vadd.f32 %v1988_v0, %v493_v56  ;;  %v1081_v16 = vadd.f32 0.00028619796, %v1080_v50  ;;  %v721_v49 = vadd.f32 0.00028619796, %v720_v28 }
 0x155   :  { %v1042_v56 = vmul.f32 %v1041_v43, %v2202_v36  ;;  %v904_v28 = vmul.f32 %v1425_v7, %v903_v63  ;;  %v684_v63 = vmul.f32 %v683_v4, %v2200_v11 }
 0x156   :  { %2727 = vst [vmem:[#allocation2_spill] sm:$0xff] %v2233_v32  ;;  %v1118_v42 = vmul.f32 %v2225_v13, %v2225_v13  ;;  %v2244_v35 = vmul.f32 0.70710677, %v2233_v32  ;;  %v1082_v55 = vmul.f32 %v1081_v16, %v2211_v51  ;;  %v722_v57 = vmul.f32 %v721_v49, %v2214_v2 }
 0x157   :  { %v1043_v8 = vadd.f32 0.0036580483, %v1042_v56  ;;  %v905_v43 = vadd.f32 %v1425_v7, %v904_v28 }
 0x158   :  { %v2241_v41 = vmin.f32 %v1118_v42, 16.0  ;;  %v758_v6 = vmul.f32 %v2244_v35, %v2244_v35  ;;  %v912_v42 = vand.u32 2147483648, %v2209_v58  ;;  %v1083_v16 = vadd.f32 0.0036580483, %v1082_v55 }
 0x159   :  { %v723_v49 = vadd.f32 0.0036580483, %v722_v57  ;;  %v909_v34 = vsel %vm908_vm7, %v1425_v7, %v905_v43  ;;  %v931_v58 = vmul.f32 3.8918573e-05, %v2067_v44  ;;  %v1044_v48 = vmul.f32 %v1043_v8, %v2202_v36 }
 0x15a   :  { %v1120_v45 = vmul.f32 2.1237322e-06, %v2241_v41  ;;  %v2262_v38 = vmin.f32 %v758_v6, 16.0  ;;  %v913_v37 = vor.u32 1.1754944e-38, %v912_v42  ;;  %v2276_v6 = vmul.f32 %v609_v30, %v2052_v12 }
 0x15b   :  { %v496_v23 = vpop.f32.mrf.mxu0  ;;  %v1084_v7 = vmul.f32 %v1083_v16, %v2211_v51  ;;  %v932_v28 = vadd.f32 0.001143296, %v931_v58  ;;  %v724_v42 = vmul.f32 %v723_v49, %v2214_v2  ;;  %v685_v8 = vadd.f32 0.05243302, %v684_v63 }
 0x15c   :  { %v1121_v50 = vadd.f32 0.00028619796, %v1120_v45  ;;  %v2270_v39 = vadd.f32 %v1988_v0, %v496_v23  ;;  %v1006_v45 = vmul.f32 %v1005_v1, %v2152_v17  ;;  %v760_v46 = vmul.f32 2.1237322e-06, %v2262_v38 }
 0x15d   :  { %v914_v56 = vsel %vm911_vm8, %v913_v37, %v909_v34  ;;  %v2284_v1 = vadd.f32 1.1283791, %v968_v19  ;;  %v2293_v43 = vmul.f32 0.5, %v2164_v3  ;;  %v611_v19 = vmul.f32 3.8918573e-05, %v2072_v59 }
 0x15e   :  { %v1122_v26 = vmul.f32 %v1121_v50, %v2241_v41  ;;  %2728 = vst [vmem:[#allocation3_spill] sm:$0xff] %v2270_v39  ;;  %v915_v55 = vmul.f32 %v914_v56, %v890_v60  ;;  %v2282_v57 = vmul.f32 0.70710677, %v2270_v39  ;;  %v1007_v30 = vadd.f32 0.18741608, %v1006_v45 }
 0x15f   :  { %v761_v23 = vadd.f32 0.00028619796, %v760_v46  ;;  %v933_v60 = vmul.f32 %v932_v28, %v2067_v44  ;;  %v1085_v31 = vadd.f32 0.05243302, %v1084_v7  ;;  %v725_v34 = vadd.f32 0.05243302, %v724_v42 }
 0x160   :  { %v1123_v50 = vadd.f32 0.0036580483, %v1122_v26  ;;  %2729 = vst [vmem:[#allocation4_spill] sm:$0xff] %v2282_v57  ;;  %v1343_v12 = vclamps-f32 %v915_v55, 1.0  ;;  %v798_v4 = vmul.f32 %v2282_v57, %v2282_v57  ;;  %v1045_v26 = vadd.f32 0.05243302, %v1044_v48 }
 0x161   :  { %v934_v49 = vadd.f32 0.014752088, %v933_v60  ;;  %v612_v46 = vadd.f32 0.001143296, %v611_v19  ;;  %v971_v56 = vmul.f32 3.8918573e-05, %v2102_v54  ;;  %v762_v58 = vmul.f32 %v761_v23, %v2262_v38 }
 0x162   :  { %v1206_v16 = vadd.f32 1.0, %v1343_v12  ;;  %v1124_v37 = vmul.f32 %v1123_v50, %v2241_v41  ;;  %v2300_v63 = vmin.f32 %v798_v4, 16.0  ;;  %v651_v55 = vmul.f32 3.8918573e-05, %v2109_v21 }
 0x163   :  { %v935_v3 = vmul.f32 %v934_v49, %v2067_v44  ;;  %v1008_v48 = vmul.f32 %v1007_v30, %v2152_v17  ;;  %v686_v7 = vmul.f32 %v685_v8, %v2200_v11  ;;  %v613_v50 = vmul.f32 %v612_v46, %v2072_v59 }
 0x164   :  { %v1222_v45 = vmul.f32 %v1206_v16, %v2123_v18  ;;  %v972_v28 = vadd.f32 0.001143296, %v971_v56  ;;  %v1046_v18 = vmul.f32 %v1045_v26, %v2202_v36  ;;  %v1086_v42 = vmul.f32 %v1085_v31, %v2211_v51 }
 0x165   :  { %v1125_v12 = vadd.f32 0.05243302, %v1124_v37  ;;  %v936_v23 = vadd.f32 0.112945676, %v935_v3  ;;  %v614_v4 = vadd.f32 0.014752088, %v613_v50  ;;  %v726_v30 = vmul.f32 %v725_v34, %v2214_v2 }
 0x166   :  { %1290 = vmatmul.f32.vlgmr.msra.gmra.mxu3 %v1222_v45  ;;  %v973_v60 = vmul.f32 %v972_v28, %v2102_v54  ;;  %v652_v16 = vadd.f32 0.001143296, %v651_v55  ;;  %v1011_v19 = vmul.f32 3.8918573e-05, %v2152_v17  ;;  %v763_v49 = vadd.f32 0.0036580483, %v762_v58 }
 0x167   :  { %v800_v8 = vmul.f32 2.1237322e-06, %v2300_v63  ;;  %v937_v45 = vmul.f32 %v936_v23, %v2067_v44  ;;  %v687_v46 = vadd.f32 0.18741608, %v686_v7  ;;  %v615_v26 = vmul.f32 %v614_v4, %v2072_v59 }
 0x168   :  { %v974_v56 = vadd.f32 0.014752088, %v973_v60  ;;  %v653_v31 = vmul.f32 %v652_v16, %v2109_v21  ;;  %v1047_v37 = vadd.f32 0.18741608, %v1046_v18  ;;  %v1087_v3 = vadd.f32 0.18741608, %v1086_v42 }
 0x169   :  { %v1126_v50 = vmul.f32 %v1125_v12, %v2241_v41  ;;  %v938_v55 = vadd.f32 0.4994258, %v937_v45  ;;  %v616_v28 = vadd.f32 0.112945676, %v615_v26  ;;  %v1012_v58 = vadd.f32 0.001143296, %v1011_v19  ;;  %v523_v19 = vpop.f32.mrf.mxu2 }
 0x16a   :  { %v975_v39 = vmul.f32 %v974_v56, %v2102_v54  ;;  %v654_v34 = vadd.f32 0.014752088, %v653_v31  ;;  %v727_v57 = vadd.f32 0.18741608, %v726_v30  ;;  %v764_v32 = vmul.f32 %v763_v49, %v2262_v38 }
 0x16b   :  { %v801_v23 = vadd.f32 0.00028619796, %v800_v8  ;;  %v939_v7 = vmul.f32 %v938_v55, %v2067_v44  ;;  %v688_v4 = vmul.f32 %v687_v46, %v2200_v11  ;;  %v617_v60 = vmul.f32 %v616_v28, %v2072_v59 }
 0x16c   :  { %v976_v18 = vadd.f32 0.112945676, %v975_v39  ;;  %v655_v42 = vmul.f32 %v654_v34, %v2109_v21  ;;  %v1048_v12 = vmul.f32 %v1047_v37, %v2202_v36  ;;  %v1088_v16 = vmul.f32 %v1087_v3, %v2211_v51 }
 0x16d   :  { %v1127_v45 = vadd.f32 0.18741608, %v1126_v50  ;;  %v2325_v26 = vadd.f32 1.0, %v939_v7  ;;  %v618_v30 = vadd.f32 0.4994258, %v617_v60  ;;  %v1013_v44 = vmul.f32 %v1012_v58, %v2152_v17 }
 0x16e   :  { %v977_v49 = vmul.f32 %v976_v18, %v2102_v54  ;;  %v656_v8 = vadd.f32 0.112945676, %v655_v42  ;;  %v728_v46 = vmul.f32 %v727_v57, %v2214_v2  ;;  %v765_v56 = vadd.f32 0.05243302, %v764_v32 }
 0x16f   :  { %v802_v39 = vmul.f32 %v801_v23, %v2300_v63  ;;  %1426 = vrcp.f32 %v2325_v26  ;;  %v1009_v31 = vadd.f32 1.1283791, %v1008_v48  ;;  %v689_v37 = vadd.f32 1.1283791, %v688_v4 }
 0x170   :  { %v2333_v3 = vadd.f32 %v1988_v0, %v523_v19  ;;  %v619_v50 = vmul.f32 %v618_v30, %v2072_v59  ;;  %v1049_v55 = vadd.f32 1.1283791, %v1048_v12  ;;  %v1089_v28 = vadd.f32 1.1283791, %v1088_v16  ;;  %v499_v30 = vpop.f32.mrf.mxu0 }
 0x171   :  { %v1128_v34 = vmul.f32 %v1127_v45, %v2241_v41  ;;  %v657_v58 = vmul.f32 %v656_v8, %v2109_v21  ;;  %v2340_v32 = vmul.f32 %v2284_v1, %v2089_v53  ;;  %v978_v23 = vadd.f32 0.4994258, %v977_v49 }
 0x172   :  { %v2342_v57 = vadd.f32 1.0, %v619_v50  ;;  %v1014_v48 = vadd.f32 0.014752088, %v1013_v44  ;;  %v2345_v7 = vmul.f32 0.5, %v2176_v10  ;;  %v729_v4 = vadd.f32 1.1283791, %v728_v46 }
 0x173   :  { %v766_v59 = vmul.f32 %v765_v56, %v2262_v38  ;;  %v803_v60 = vadd.f32 0.0036580483, %v802_v39  ;;  %v2350_v18 = vmul.f32 %v2286_v24, %v2092_v40  ;;  %v2353_v42 = vmul.f32 0.70710677, %v2333_v3 }
 0x174   :  { %1428 = vrcp.f32 %v2342_v57  ;;  %v658_v53 = vadd.f32 0.4994258, %v657_v58  ;;  %v2357_v12 = vmul.f32 %v1009_v31, %v2114_v52  ;;  %v2360_v10 = vmul.f32 %v689_v37, %v2155_v22 }
 0x175   :  { %v1427_v1 = vpop.eup %1426  ;;  %v1129_v16 = vadd.f32 1.1283791, %v1128_v34  ;;  %v979_v45 = vmul.f32 %v978_v23, %v2102_v54  ;;  %v2364_v19 = vmul.f32 %v1049_v55, %v2158_v29  ;;  %v2367_v40 = vmul.f32 %v1089_v28, %v2182_v15 }
 0x176   :  { %v942_v24 = vmul.f32 %v1427_v1, %v2325_v26  ;;  %v1015_v49 = vmul.f32 %v1014_v48, %v2152_v17  ;;  %v2372_v52 = vmul.f32 %v729_v4, %v2198_v61  ;;  %v767_v8 = vadd.f32 0.18741608, %v766_v59 }
 0x177   :  { %v804_v22 = vmul.f32 %v803_v60, %v2300_v63  ;;  %v2375_v44 = vadd.f32 1.0, %v979_v45  ;;  %v950_v29 = vand.u32 2147483647, %v2325_v26  ;;  %v1158_v15 = vmul.f32 %v2353_v42, %v2353_v42 }
 0x178   :  { %v943_v54 = vsub.f32 1.0, %v942_v24  ;;  %v659_v46 = vmul.f32 %v658_v53, %v2109_v21  ;;  %v2382_v56 = vmul.f32 %v1129_v16, %v2225_v13  ;;  %v952_v39 = vand.u32 2147483648, %v2325_v26 }
 0x179   :  { %v2386_v61 = vadd.f32 %v1988_v0, %v499_v30  ;;  %1430 = vrcp.f32 %v2375_v44  ;;  %vm947_vm9 = vweird.f32 %v1427_v1  ;;  %v1016_v55 = vadd.f32 0.112945676, %v1015_v49 }
 0x17a   :  { %v1429_v31 = vpop.eup %1428  ;;  %v944_v37 = vmul.f32 %v1427_v1, %v943_v54  ;;  %v2389_v50 = vadd.f32 1.0, %v659_v46  ;;  %v2392_v28 = vmul.f32 %v767_v8, %v2262_v38  ;;  %v2394_v21 = vadd.f32 0.05243302, %v804_v22 }
 0x17b   :  { %vm946_vm10 = vweird.f32 %v2325_v26  ;;  %v622_v13 = vmul.f32 %v1429_v31, %v2342_v57  ;;  %vm951_vm11 = vcmp.eq.f32.partialorder %v950_v29, 8.507059e+37  ;;  %v2398_v0 = vmin.f32 %v1158_v15, 16.0 }
 0x17c   :  { %v945_v34 = vadd.f32 %v1427_v1, %v944_v37  ;;  %1432 = vrcp.f32 %v2389_v50  ;;  %vm948_vm12 = vmor %vm946_vm10, %vm947_vm9  ;;  %v953_v58 = vor.u32 1.1754944e-38, %v952_v39  ;;  %v630_v48 = vand.u32 2147483647, %v2342_v57 }
 0x17d   :  { %v623_v23 = vsub.f32 1.0, %v622_v13  ;;  %v632_v4 = vand.u32 2147483648, %v2342_v57  ;;  %v2404_v60 = vmul.f32 0.70710677, %v2386_v61  ;;  %v990_v26 = vand.u32 2147483647, %v2375_v44 }
 0x17e   :  { %v949_v59 = vsel %vm948_vm12, %v1427_v1, %v945_v34  ;;  %v1017_v53 = vmul.f32 %v1016_v55, %v2152_v17  ;;  %vm627_vm13 = vweird.f32 %v1429_v31  ;;  %v992_v30 = vand.u32 2147483648, %v2375_v44 }
 0x17f   :  { %v1431_v16 = vpop.eup %1430  ;;  %v954_v45 = vsel %vm951_vm11, %v953_v58, %v949_v59  ;;  %v624_v24 = vmul.f32 %v1429_v31, %v623_v23  ;;  %v1160_v8 = vmul.f32 2.1237322e-06, %v2398_v0  ;;  %vm626_vm14 = vweird.f32 %v2342_v57 }
 0x180   :  { %v955_v49 = vmul.f32 %v954_v45, %v2257_v20  ;;  %v982_v1 = vmul.f32 %v1431_v16, %v2375_v44  ;;  %vm631_vm15 = vcmp.eq.f32.partialorder %v630_v48, 8.507059e+37  ;;  %v633_v54 = vor.u32 1.1754944e-38, %v632_v4  ;;  %vm628_vm0 = vmor %vm626_vm14, %vm627_vm13 }
 0x181   :  { %v625_v22 = vadd.f32 %v1429_v31, %v624_v24  ;;  %v1018_v29 = vadd.f32 0.4994258, %v1017_v53  ;;  %vm986_vm1 = vweird.f32 %v2375_v44  ;;  %v691_v37 = vmul.f32 3.8918573e-05, %v2200_v11 }
 0x182   :  { %v1433_v15 = vpop.eup %1432  ;;  %v1344_v46 = vclamps-f32 %v955_v49, 1.0  ;;  %v983_v39 = vsub.f32 1.0, %v982_v1  ;;  %vm2415_vm2 = vcmp.eq.f32.partialorder %v990_v26, 8.507059e+37  ;;  %v993_v57 = vor.u32 1.1754944e-38, %v992_v30 }
 0x183   :  { %v629_v55 = vsel %vm628_vm0, %v1429_v31, %v625_v22  ;;  %v662_v13 = vmul.f32 %v1433_v15, %v2389_v50  ;;  %vm987_vm3 = vweird.f32 %v1431_v16  ;;  %v670_v59 = vand.u32 2147483647, %v2389_v50 }
 0x184   :  { %v1207_v34 = vadd.f32 1.0, %v1344_v46  ;;  %v634_v58 = vsel %vm631_vm15, %v633_v54, %v629_v55  ;;  %v984_v23 = vmul.f32 %v1431_v16, %v983_v39  ;;  %v1019_v53 = vmul.f32 %v1018_v29, %v2152_v17  ;;  %vm988_vm4 = vmor %vm986_vm1, %vm987_vm3 }
 0x185   :  { %v635_v48 = vmul.f32 %v634_v58, %v2276_v6  ;;  %v663_v4 = vsub.f32 1.0, %v662_v13  ;;  %v672_v45 = vand.u32 2147483648, %v2389_v50  ;;  %v692_v24 = vadd.f32 0.001143296, %v691_v37 }
 0x186   :  { %v1223_v31 = vmul.f32 %v1207_v34, %v2138_v14  ;;  %v985_v26 = vadd.f32 %v1431_v16, %v984_v23  ;;  %vm667_vm5 = vweird.f32 %v1433_v15  ;;  %v2427_v1 = vadd.f32 1.0, %v1019_v53 }
 0x187   :  { %v1336_v30 = vclamps-f32 %v635_v48, 1.0  ;;  %v664_v49 = vmul.f32 %v1433_v15, %v663_v4  ;;  %vm666_vm6 = vweird.f32 %v2389_v50  ;;  %v693_v17 = vmul.f32 %v692_v24, %v2200_v11 }
 0x188   :  { %1293 = vmatmul.f32.gmra.mxu3 %v1223_v31  ;;  %v989_v6 = vsel %vm988_vm4, %v1431_v16, %v985_v26  ;;  %v1051_v14 = vmul.f32 3.8918573e-05, %v2202_v36  ;;  %v731_v44 = vmul.f32 3.8918573e-05, %v2214_v2  ;;  %v2437_v46 = vmul.f32 %v2404_v60, %v2404_v60  ;;  %vm668_vm7 = vmor %vm666_vm6, %vm667_vm5 }
 0x189   :  { %v1199_v22 = vadd.f32 1.0, %v1336_v30  ;;  %v994_v54 = vsel %vm2415_vm2, %v993_v57, %v989_v6  ;;  %v665_v29 = vadd.f32 %v1433_v15, %v664_v49  ;;  %v673_v16 = vor.u32 1.1754944e-38, %v672_v45 }
 0x18a   :  { %v995_v39 = vmul.f32 %v994_v54, %v2340_v32  ;;  %1434 = vrcp.f32 %v2427_v1  ;;  %v2441_v50 = vadd.f32 0.00028619796, %v1160_v8  ;;  %vm671_vm8 = vcmp.eq.f32.partialorder %v670_v59, 8.507059e+37 }
 0x18b   :  { %v1215_v37 = vmul.f32 %v1199_v22, %v2143_v5  ;;  %v669_v55 = vsel %vm668_vm7, %v1433_v15, %v665_v29  ;;  %v1030_v13 = vand.u32 2147483647, %v2427_v1  ;;  %v694_v34 = vadd.f32 0.014752088, %v693_v17 }
 0x18c   :  { %v1345_v20 = vclamps-f32 %v995_v39, 1.0  ;;  %v674_v57 = vsel %vm671_vm8, %v673_v16, %v669_v55  ;;  %v1032_v32 = vand.u32 2147483648, %v2427_v1  ;;  %v1052_v23 = vadd.f32 0.001143296, %v1051_v14 }
 0x18d   :  { %1269 = vmatmul.f32.gmra.mxu1 %v1215_v37  ;;  %v675_v58 = vmul.f32 %v674_v57, %v2350_v18  ;;  %v732_v48 = vadd.f32 0.001143296, %v731_v44  ;;  %v695_v8 = vmul.f32 %v694_v34, %v2200_v11  ;;  %v1091_v53 = vmul.f32 3.8918573e-05, %v2211_v51 }
 0x18e   :  { %v1208_v4 = vadd.f32 1.0, %v1345_v20  ;;  %v1131_v5 = vmul.f32 3.8918573e-05, %v2241_v41  ;;  %vm1026_vm9 = vweird.f32 %v2427_v1  ;;  %v1053_v59 = vmul.f32 %v1052_v23, %v2202_v36 }
 0x18f   :  { %v1337_v15 = vclamps-f32 %v675_v58, 1.0  ;;  %v733_v31 = vmul.f32 %v732_v48, %v2214_v2  ;;  %v771_v18 = vmul.f32 3.8918573e-05, %v2262_v38  ;;  %v696_v24 = vadd.f32 0.112945676, %v695_v8 }
 0x190   :  { %v1435_v26 = vpop.eup %1434  ;;  %v1224_v45 = vmul.f32 %v1208_v4, %v2146_v62  ;;  %v1092_v30 = vadd.f32 0.001143296, %v1091_v53  ;;  %v1132_v49 = vadd.f32 0.001143296, %v1131_v5  ;;  %v1054_v14 = vadd.f32 0.014752088, %v1053_v59 }
 0x191   :  { %v1200_v6 = vadd.f32 1.0, %v1337_v15  ;;  %v1022_v17 = vmul.f32 %v1435_v26, %v2427_v1  ;;  %vm1027_vm10 = vweird.f32 %v1435_v26  ;;  %v697_v22 = vmul.f32 %v696_v24, %v2200_v11 }
 0x192   :  { %1296 = vmatmul.f32.gmra.mxu3 %v1224_v45  ;;  %v734_v54 = vadd.f32 0.014752088, %v733_v31  ;;  %v1093_v29 = vmul.f32 %v1092_v30, %v2211_v51  ;;  %v1133_v44 = vmul.f32 %v1132_v49, %v2241_v41  ;;  %v1055_v62 = vmul.f32 %v1054_v14, %v2202_v36  ;;  %vm1028_vm11 = vmor %vm1026_vm9, %vm1027_vm10 }
 0x193   :  { %v1216_v39 = vmul.f32 %v1200_v6, %v2149_v27  ;;  %v1023_v16 = vsub.f32 1.0, %v1022_v17  ;;  %v772_v37 = vadd.f32 0.001143296, %v771_v18  ;;  %v698_v55 = vadd.f32 0.4994258, %v697_v22 }
 0x194   :  { %v735_v20 = vmul.f32 %v734_v54, %v2214_v2  ;;  %v1094_v57 = vadd.f32 0.014752088, %v1093_v29  ;;  %v1134_v34 = vadd.f32 0.014752088, %v1133_v44  ;;  %v1056_v23 = vadd.f32 0.112945676, %v1055_v62 }
 0x195   :  { %1272 = vmatmul.f32.gmra.mxu1 %v1216_v39  ;;  %v1024_v58 = vmul.f32 %v1435_v26, %v1023_v16  ;;  %v773_v48 = vmul.f32 %v772_v37, %v2262_v38  ;;  %v811_v4 = vmul.f32 3.8918573e-05, %v2300_v63  ;;  %v699_v8 = vmul.f32 %v698_v55, %v2200_v11 }
 0x196   :  { %v736_v53 = vadd.f32 0.112945676, %v735_v20  ;;  %v1095_v27 = vmul.f32 %v1094_v57, %v2211_v51  ;;  %v1135_v5 = vmul.f32 %v1134_v34, %v2241_v41  ;;  %v1033_v59 = vor.u32 1.1754944e-38, %v1032_v32 }
 0x197   :  { %v1025_v15 = vadd.f32 %v1435_v26, %v1024_v58  ;;  %v1057_v31 = vmul.f32 %v1056_v23, %v2202_v36  ;;  %v774_v18 = vadd.f32 0.014752088, %v773_v48  ;;  %v2471_v45 = vadd.f32 1.0, %v699_v8 }
 0x198   :  { %v737_v24 = vmul.f32 %v736_v53, %v2214_v2  ;;  %v1096_v30 = vadd.f32 0.112945676, %v1095_v27  ;;  %v1136_v11 = vadd.f32 0.112945676, %v1135_v5  ;;  %v2475_v49 = vmin.f32 %v2437_v46, 16.0 }
 0x199   :  { %v1029_v6 = vsel %vm1028_vm11, %v1435_v26, %v1025_v15  ;;  %vm1031_vm12 = vcmp.eq.f32.partialorder %v1030_v13, 8.507059e+37  ;;  %v1058_v17 = vadd.f32 0.4994258, %v1057_v31  ;;  %1436 = vrcp.f32 %v2471_v45 }
 0x19a   :  { %v1034_v32 = vsel %vm1031_vm12, %v1033_v59, %v1029_v6  ;;  %v775_v14 = vmul.f32 %v774_v18, %v2262_v38  ;;  %v812_v22 = vadd.f32 0.001143296, %v811_v4  ;;  %v806_v1 = vmul.f32 %v2394_v21, %v2300_v63 }
 0x19b   :  { %v1035_v54 = vmul.f32 %v1034_v32, %v2357_v12  ;;  %v1059_v29 = vmul.f32 %v1058_v17, %v2202_v36  ;;  %v738_v44 = vadd.f32 0.4994258, %v737_v24  ;;  %v2484_v46 = vadd.f32 1.1283791, %v2392_v28 }
 0x19c   :  { %v1162_v13 = vmul.f32 %v2441_v50, %v2398_v0  ;;  %v1097_v26 = vmul.f32 %v1096_v30, %v2211_v51  ;;  %v1137_v39 = vmul.f32 %v1136_v11, %v2241_v41  ;;  %v840_v16 = vmul.f32 2.1237322e-06, %v2475_v49 }
 0x19d   :  { %v1346_v62 = vclamps-f32 %v1035_v54, 1.0  ;;  %v2491_v37 = vadd.f32 1.0, %v1059_v29  ;;  %v739_v12 = vmul.f32 %v738_v44, %v2214_v2  ;;  %v776_v55 = vadd.f32 0.112945676, %v775_v14 }
 0x19e   :  { %v1098_v21 = vadd.f32 0.4994258, %v1097_v26  ;;  %v1138_v36 = vadd.f32 0.4994258, %v1137_v39  ;;  %v813_v28 = vmul.f32 %v812_v22, %v2300_v63  ;;  %v2495_v20 = vadd.f32 0.18741608, %v806_v1 }
 0x19f   :  { %v1209_v57 = vadd.f32 1.0, %v1346_v62  ;;  %v710_v50 = vand.u32 2147483647, %v2471_v45  ;;  %1438 = vrcp.f32 %v2491_v37  ;;  %v1437_v34 = vpop.eup %1436  ;;  %v712_v58 = vand.u32 2147483648, %v2471_v45 }
 0x1a0   :  { %v2500_v23 = vadd.f32 1.0, %v739_v12  ;;  %v1099_v48 = vmul.f32 %v1098_v21, %v2211_v51  ;;  %v1139_v2 = vmul.f32 %v1138_v36, %v2241_v41  ;;  %v2504_v4 = vadd.f32 0.0036580483, %v1162_v13 }
 0x1a1   :  { %v2506_v8 = vadd.f32 0.00028619796, %v840_v16  ;;  %v1225_v53 = vmul.f32 %v1209_v57, %v2179_v33  ;;  %v702_v27 = vmul.f32 %v1437_v34, %v2471_v45  ;;  %v1070_v5 = vand.u32 2147483647, %v2491_v37 }
 0x1a2   :  { %1440 = vrcp.f32 %v2500_v23  ;;  %v777_v15 = vmul.f32 %v776_v55, %v2262_v38  ;;  %v814_v59 = vadd.f32 0.014752088, %v813_v28  ;;  %v1072_v51 = vand.u32 2147483648, %v2491_v37 }
 0x1a3   :  { %1299 = vmatmul.f32.gmra.mxu3 %v1225_v53  ;;  %v703_v31 = vsub.f32 1.0, %v702_v27  ;;  %v2514_v41 = vadd.f32 1.0, %v1099_v48  ;;  %v2516_v18 = vadd.f32 1.0, %v1139_v2  ;;  %vm706_vm13 = vweird.f32 %v2471_v45 }
 0x1a4   :  { %vm707_vm14 = vweird.f32 %v1437_v34  ;;  %vm2519_vm15 = vcmp.eq.f32.partialorder %v710_v50, 8.507059e+37  ;;  %v713_v24 = vor.u32 1.1754944e-38, %v712_v58  ;;  %v750_v6 = vand.u32 2147483647, %v2500_v23 }
 0x1a5   :  { %v1439_v30 = vpop.eup %1438  ;;  %v704_v11 = vmul.f32 %v1437_v34, %v703_v31  ;;  %v752_v17 = vand.u32 2147483648, %v2500_v23  ;;  %1442 = vrcp.f32 %v2514_v41  ;;  %vm1066_vm0 = vweird.f32 %v2491_v37  ;;  %vm708_vm2 = vmor %vm706_vm13, %vm707_vm14 }
 0x1a6   :  { %v1062_v32 = vmul.f32 %v1439_v30, %v2491_v37  ;;  %vm2528_vm1 = vcmp.eq.f32.partialorder %v1070_v5, 8.507059e+37  ;;  %v778_v22 = vadd.f32 0.4994258, %v777_v15  ;;  %v1073_v54 = vor.u32 1.1754944e-38, %v1072_v51 }
 0x1a7   :  { %v705_v1 = vadd.f32 %v1437_v34, %v704_v11  ;;  %1444 = vrcp.f32 %v2516_v18  ;;  %v815_v29 = vmul.f32 %v814_v59, %v2300_v63  ;;  %vm746_vm3 = vweird.f32 %v2500_v23 }
 0x1a8   :  { %v1441_v44 = vpop.eup %1440  ;;  %v1063_v13 = vsub.f32 1.0, %v1062_v32  ;;  %v1110_v26 = vand.u32 2147483647, %v2514_v41  ;;  %v1171_v39 = vmul.f32 3.8918573e-05, %v2398_v0  ;;  %vm1067_vm4 = vweird.f32 %v1439_v30 }
 0x1a9   :  { %v709_v16 = vsel %vm708_vm2, %v1437_v34, %v705_v1  ;;  %v742_v62 = vmul.f32 %v1441_v44, %v2500_v23  ;;  %vm2541_vm5 = vcmp.eq.f32.partialorder %v750_v6, 8.507059e+37  ;;  %v753_v21 = vor.u32 1.1754944e-38, %v752_v17  ;;  %vm1068_vm9 = vmor %vm1066_vm0, %vm1067_vm4 }
 0x1aa   :  { %v714_v45 = vsel %vm2519_vm15, %v713_v24, %v709_v16  ;;  %v1064_v36 = vmul.f32 %v1439_v30, %v1063_v13  ;;  %vm1106_vm6 = vweird.f32 %v2514_v41  ;;  %v1112_v55 = vand.u32 2147483648, %v2514_v41 }
 0x1ab   :  { %v779_v28 = vmul.f32 %v778_v22, %v2262_v38  ;;  %v1443_v57 = vpop.eup %1442  ;;  %v715_v50 = vmul.f32 %v714_v45, %v2360_v10  ;;  %v743_v34 = vsub.f32 1.0, %v742_v62  ;;  %v1150_v58 = vand.u32 2147483647, %v2516_v18 }
 0x1ac   :  { %v816_v48 = vadd.f32 0.112945676, %v815_v29  ;;  %v1065_v2 = vadd.f32 %v1439_v30, %v1064_v36  ;;  %v1102_v53 = vmul.f32 %v1443_v57, %v2514_v41  ;;  %vm2553_vm7 = vcmp.eq.f32.partialorder %v1110_v26, 8.507059e+37 }
 0x1ad   :  { %vm1146_vm8 = vweird.f32 %v2516_v18  ;;  %v2558_v5 = vadd.f32 1.0, %v779_v28  ;;  %v1172_v15 = vadd.f32 0.001143296, %v1171_v39  ;;  %v1445_v38 = vpop.eup %1444  ;;  %v1338_v59 = vclamps-f32 %v715_v50, 1.0 }
 0x1ae   :  { %v744_v10 = vmul.f32 %v1441_v44, %v743_v34  ;;  %vm747_vm10 = vweird.f32 %v1441_v44  ;;  %vm1107_vm11 = vweird.f32 %v1443_v57  ;;  %v1069_v31 = vsel %vm1068_vm9, %v1439_v30, %v1065_v2 }
 0x1af   :  { %v1103_v51 = vsub.f32 1.0, %v1102_v53  ;;  %v1142_v33 = vmul.f32 %v1445_v38, %v2516_v18  ;;  %v817_v24 = vmul.f32 %v816_v48, %v2300_v63  ;;  %v1201_v11 = vadd.f32 1.0, %v1338_v59  ;;  %vm748_vm12 = vmor %vm746_vm3, %vm747_vm10 }
 0x1b0   :  { %v1074_v6 = vsel %vm2528_vm1, %v1073_v54, %v1069_v31  ;;  %v745_v17 = vadd.f32 %v1441_v44, %v744_v10  ;;  %1446 = vrcp.f32 %v2558_v5  ;;  %v1173_v30 = vmul.f32 %v1172_v15, %v2398_v0  ;;  %vm1108_vm14 = vmor %vm1106_vm6, %vm1107_vm11 }
 0x1b1   :  { %v1075_v32 = vmul.f32 %v1074_v6, %v2364_v19  ;;  %v1104_v37 = vmul.f32 %v1443_v57, %v1103_v51  ;;  %v1143_v22 = vsub.f32 1.0, %v1142_v33  ;;  %v1217_v1 = vmul.f32 %v1201_v11, %v2229_v25 }
 0x1b2   :  { %v749_v29 = vsel %vm748_vm12, %v1441_v44, %v745_v17  ;;  %vm1147_vm13 = vweird.f32 %v1445_v38  ;;  %v1152_v13 = vand.u32 2147483648, %v2516_v18  ;;  %v1113_v23 = vor.u32 1.1754944e-38, %v1112_v55 }
 0x1b3   :  { %v1347_v14 = vclamps-f32 %v1075_v32, 1.0  ;;  %v754_v54 = vsel %vm2541_vm5, %v753_v21, %v749_v29  ;;  %v1105_v26 = vadd.f32 %v1443_v57, %v1104_v37  ;;  %v1144_v39 = vmul.f32 %v1445_v38, %v1143_v22  ;;  %1275 = vmatmul.f32.gmra.mxu1 %v1217_v1  ;;  %vm1148_vm0 = vmor %vm1146_vm8, %vm1147_vm13 }
 0x1b4   :  { %v755_v19 = vmul.f32 %v754_v54, %v2372_v52  ;;  %vm2580_vm15 = vcmp.eq.f32.partialorder %v1150_v58, 8.507059e+37  ;;  %v818_v44 = vadd.f32 0.4994258, %v817_v24  ;;  %v1174_v12 = vadd.f32 0.014752088, %v1173_v30  ;;  %v2742_v54 = vld [vmem:[#allocation2_spill] sm:$0xff] }
 0x1b5   :  { %v1210_v16 = vadd.f32 1.0, %v1347_v14  ;;  %v1109_v62 = vsel %vm1108_vm14, %v1443_v57, %v1105_v26  ;;  %v1145_v45 = vadd.f32 %v1445_v38, %v1144_v39  ;;  %v1153_v52 = vor.u32 1.1754944e-38, %v1152_v13 }
 0x1b6   :  { %v1447_v21 = vpop.eup %1446  ;;  %v1339_v36 = vclamps-f32 %v755_v19, 1.0  ;;  %v1114_v28 = vsel %vm2553_vm7, %v1113_v23, %v1109_v62  ;;  %v819_v41 = vmul.f32 %v818_v44, %v2300_v63  ;;  %v851_v53 = vmul.f32 3.8918573e-05, %v2475_v49 }
 0x1b7   :  { %v1226_v55 = vmul.f32 %v1210_v16, %v2249_v9  ;;  %v1115_v50 = vmul.f32 %v1114_v28, %v2367_v40  ;;  %v1149_v34 = vsel %vm1148_vm0, %v1445_v38, %v1145_v45  ;;  %v782_v57 = vmul.f32 %v1447_v21, %v2558_v5 }
 0x1b8   :  { %v1202_v58 = vadd.f32 1.0, %v1339_v36  ;;  %v1154_v48 = vsel %vm2580_vm15, %v1153_v52, %v1149_v34  ;;  %v2595_v2 = vadd.f32 1.0, %v819_v41  ;;  %v1175_v9 = vmul.f32 %v1174_v12, %v2398_v0 }
 0x1b9   :  { %1302 = vmatmul.f32.gmra.mxu3 %v1226_v55  ;;  %v1348_v18 = vclamps-f32 %v1115_v50, 1.0  ;;  %v1155_v27 = vmul.f32 %v1154_v48, %v2382_v56  ;;  %v783_v15 = vsub.f32 1.0, %v782_v57  ;;  %v1164_v40 = vmul.f32 %v2504_v4, %v2398_v0  ;;  %v2743_v57 = vld [vmem:[#allocation4_spill] sm:$0xff] }
 0x1ba   :  { %v1218_v38 = vmul.f32 %v1202_v58, %v2345_v7  ;;  %v792_v59 = vand.u32 2147483648, %v2558_v5  ;;  %1448 = vrcp.f32 %v2595_v2  ;;  %vm787_vm1 = vweird.f32 %v1447_v21 }
 0x1bb   :  { %v1211_v10 = vadd.f32 1.0, %v1348_v18  ;;  %v784_v31 = vmul.f32 %v1447_v21, %v783_v15  ;;  %v790_v51 = vand.u32 2147483647, %v2558_v5  ;;  %v770_v56 = vmul.f32 %v2484_v46, %v2244_v35 }
 0x1bc   :  { %1278 = vmatmul.f32.gmra.mxu1 %v1218_v38  ;;  %v1176_v33 = vadd.f32 0.112945676, %v1175_v9  ;;  %v852_v24 = vadd.f32 0.001143296, %v851_v53  ;;  %v1349_v4 = vclamps-f32 %v1155_v27, 1.0  ;;  %vm786_vm2 = vweird.f32 %v2558_v5 }
 0x1bd   :  { %v1227_v11 = vmul.f32 %v1211_v10, %v2293_v43  ;;  %v785_v6 = vadd.f32 %v1447_v21, %v784_v31  ;;  %v842_v7 = vmul.f32 %v2506_v8, %v2475_v49  ;;  %vm788_vm3 = vmor %vm786_vm2, %vm787_vm1  ;;  %v793_v17 = vor.u32 1.1754944e-38, %v792_v59 }
 0x1be   :  { %v1177_v32 = vmul.f32 %v1176_v33, %v2398_v0  ;;  %v853_v37 = vmul.f32 %v852_v24, %v2475_v49  ;;  %v808_v35 = vmul.f32 %v2495_v20, %v2300_v63  ;;  %v1165_v46 = vadd.f32 0.05243302, %v1164_v40 }
 0x1bf   :  { %v789_v22 = vsel %vm788_vm3, %v1447_v21, %v785_v6  ;;  %vm791_vm4 = vcmp.eq.f32.partialorder %v790_v51, 8.507059e+37  ;;  %v540_v5 = vmul.f32 0.5, %v2217_v47  ;;  %v1212_v8 = vadd.f32 1.0, %v1349_v4  ;;  %v2634_v51 = vld [vmem:[%s2712_s6] ss:$0 sm:$0xff] }
 0x1c0   :  { %v1449_v43 = vpop.eup %1448  ;;  %v794_v30 = vsel %vm791_vm4, %v793_v17, %v789_v22  ;;  %v1178_v1 = vadd.f32 0.4994258, %v1177_v32  ;;  %v854_v29 = vadd.f32 0.014752088, %v853_v37  ;;  %v531_v26 = vmul.f32 0.5, %v2742_v54 }
 0x1c1   :  { %1305 = vmatmul.f32.gmra.mxu3 %v1227_v11  ;;  %v795_v13 = vmul.f32 %v794_v30, %v770_v56  ;;  %v822_v14 = vmul.f32 %v1449_v43, %v2595_v2  ;;  %v843_v39 = vadd.f32 0.0036580483, %v842_v7  ;;  %v809_v20 = vadd.f32 1.1283791, %v808_v35  ;;  %v2744_v56 = vld [vmem:[#allocation3_spill] sm:$0xff] }
 0x1c2   :  { %v1179_v19 = vmul.f32 %v1178_v1, %v2398_v0  ;;  %v855_v63 = vmul.f32 %v854_v29, %v2475_v49  ;;  %v1166_v23 = vmul.f32 %v1165_v46, %v2398_v0  ;;  %v830_v16 = vand.u32 2147483647, %v2595_v2 }
 0x1c3   :  { %v1340_v25 = vclamps-f32 %v795_v13, 1.0  ;;  %v823_v44 = vsub.f32 1.0, %v822_v14  ;;  %v832_v47 = vand.u32 2147483648, %v2595_v2  ;;  %v1228_v12 = vmul.f32 %v1212_v8, %v540_v5 }
 0x1c4   :  { %v1180_v62 = vadd.f32 1.0, %v1179_v19  ;;  %v856_v45 = vadd.f32 0.112945676, %v855_v63  ;;  %vm827_vm5 = vweird.f32 %v1449_v43  ;;  %v844_v28 = vmul.f32 %v843_v39, %v2475_v49 }
 0x1c5   :  { %v1203_v21 = vadd.f32 1.0, %v1340_v25  ;;  %v824_v36 = vmul.f32 %v1449_v43, %v823_v44  ;;  %vm826_vm6 = vweird.f32 %v2595_v2  ;;  %v1167_v50 = vadd.f32 0.18741608, %v1166_v23 }
 0x1c6   :  { %1450 = vrcp.f32 %v1180_v62  ;;  %v857_v55 = vmul.f32 %v856_v45, %v2475_v49  ;;  %vm828_vm7 = vmor %vm826_vm6, %vm827_vm5  ;;  %v833_v34 = vor.u32 1.1754944e-38, %v832_v47  ;;  %v810_v58 = vmul.f32 %v809_v20, %v2743_v57 }
 0x1c7   :  { %v1219_v52 = vmul.f32 %v1203_v21, %v531_v26  ;;  %v825_v41 = vadd.f32 %v1449_v43, %v824_v36  ;;  %vm831_vm8 = vcmp.eq.f32.partialorder %v830_v16, 8.507059e+37  ;;  %v845_v18 = vadd.f32 0.05243302, %v844_v28 }
 0x1c8   :  { %v858_v53 = vadd.f32 0.4994258, %v857_v55  ;;  %v1168_v2 = vmul.f32 %v1167_v50, %v2398_v0  ;;  %v532_v33 = vmul.f32 0.5, %v2744_v56  ;;  %v1192_v6 = vand.u32 2147483648, %v1180_v62 }
 0x1c9   :  { %1308 = vmatmul.f32.gmra.mxu3 %v1228_v12  ;;  %1281 = vmatmul.f32.gmra.mxu1 %v1219_v52  ;;  %v829_v48 = vsel %vm828_vm7, %v1449_v43, %v825_v41  ;;  %v846_v31 = vmul.f32 %v845_v18, %v2475_v49  ;;  %v1190_v0 = vand.u32 2147483647, %v1180_v62  ;;  %vm1186_vm10 = vweird.f32 %v1180_v62 }
 0x1ca   :  { %v834_v27 = vsel %vm831_vm8, %v833_v34, %v829_v48  ;;  %v859_v9 = vmul.f32 %v858_v53, %v2475_v49  ;;  %v1169_v4 = vadd.f32 1.1283791, %v1168_v2  ;;  %v1193_v22 = vor.u32 1.1754944e-38, %v1192_v6 }
 0x1cb   :  { %v835_v15 = vmul.f32 %v834_v27, %v810_v58  ;;  %v847_v37 = vadd.f32 0.18741608, %v846_v31  ;;  %vm1191_vm12 = vcmp.eq.f32.partialorder %v1190_v0, 8.507059e+37  ;;  %v541_v20 = vmul.f32 0.5, %v2333_v3 }
 0x1cc   :  { %v1451_v40 = vpop.eup %1450  ;;  %v860_v10 = vadd.f32 1.0, %v859_v9  ;;  %v1170_v30 = vmul.f32 %v1169_v4, %v2353_v42  ;;  %v533_v12 = vmul.f32 0.5, %v2386_v61 }
 0x1cd   :  { %v1341_v38 = vclamps-f32 %v835_v15, 1.0  ;;  %v1182_v59 = vmul.f32 %v1451_v40, %v1180_v62  ;;  %vm1187_vm9 = vweird.f32 %v1451_v40  ;;  %v848_v29 = vmul.f32 %v847_v37, %v2475_v49 }
 0x1ce   :  { %1452 = vrcp.f32 %v860_v10  ;;  %v1267_v32 = vpop.f32.mrf.mxu1  ;;  %vm1188_vm11 = vmor %vm1186_vm10, %vm1187_vm9  ;;  %v872_v26 = vand.u32 2147483648, %v860_v10  ;;  %v870_v63 = vand.u32 2147483647, %v860_v10  ;;  %vm866_vm14 = vweird.f32 %v860_v10 }
 0x1cf   :  { %v1204_v24 = vadd.f32 1.0, %v1341_v38  ;;  %v1183_v11 = vsub.f32 1.0, %v1182_v59  ;;  %v1268_v35 = vadd.f32 %v2634_v51, %v1267_v32  ;;  %v849_v39 = vadd.f32 1.1283791, %v848_v29 }
 0x1d0   :  { %v873_v44 = vor.u32 1.1754944e-38, %v872_v26  ;;  %vm871_vm0 = vcmp.eq.f32.partialorder %v870_v63, 8.507059e+37 }
 0x1d1   :  { %v1220_v7 = vmul.f32 %v1204_v24, %v532_v33  ;;  %v1184_v17 = vmul.f32 %v1451_v40, %v1183_v11  ;;  %1315 = vst [vmem:[%s2713_s7] sm:$0xff] %v1268_v35  ;;  %v850_v49 = vmul.f32 %v849_v39, %v2404_v60 }
 0x1d3   :  { %1284 = vmatmul.f32.gmra.mxu1 %v1220_v7  ;;  %v1185_v46 = vadd.f32 %v1451_v40, %v1184_v17 }
 0x1d4   :  { %v1453_v43 = vpop.eup %1452 }
 0x1d5   :  { %v1189_v1 = vsel %vm1188_vm11, %v1451_v40, %v1185_v46  ;;  %v862_v8 = vmul.f32 %v1453_v43, %v860_v10  ;;  %vm867_vm13 = vweird.f32 %v1453_v43 }
 0x1d6   :  { %v1194_v5 = vsel %vm1191_vm12, %v1193_v22, %v1189_v1  ;;  %vm868_vm15 = vmor %vm866_vm14, %vm867_vm13 }
 0x1d7   :  { %v1195_v13 = vmul.f32 %v1194_v5, %v1170_v30  ;;  %v863_v14 = vsub.f32 1.0, %v862_v8 }
 0x1d9   :  { %v1350_v54 = vclamps-f32 %v1195_v13, 1.0  ;;  %v864_v19 = vmul.f32 %v1453_v43, %v863_v14 }
 0x1db   :  { %v1213_v23 = vadd.f32 1.0, %v1350_v54  ;;  %v865_v25 = vadd.f32 %v1453_v43, %v864_v19 }
 0x1dd   :  { %v1229_v42 = vmul.f32 %v1213_v23, %v541_v20  ;;  %v869_v16 = vsel %vm868_vm15, %v1453_v43, %v865_v25 }
 0x1de   :  { %v874_v47 = vsel %vm871_vm0, %v873_v44, %v869_v16 }
 0x1df   :  { %1311 = vmatmul.f32.gmra.mxu3 %v1229_v42  ;;  %v875_v62 = vmul.f32 %v874_v47, %v850_v49 }
 0x1e1   :  { %v1342_v45 = vclamps-f32 %v875_v62, 1.0 }
 0x1e3   :  { %v1205_v21 = vadd.f32 1.0, %v1342_v45 }
 0x1e5   :  { %v1221_v36 = vmul.f32 %v1205_v21, %v533_v12 }
 0x1e7   :  { %1287 = vmatmul.f32.gmra.mxu1 %v1221_v36 }
 0x1e9   :  { %v1291_v3 = vpop.f32.mrf.mxu3 }
 0x1ea   :  { %v1292_v28 = vadd.f32 %v2634_v51, %v1291_v3 }
 0x1ec   :  { %1323 = vst [vmem:[%s2713_s7 + $0x40] sm:$0xff] %v1292_v28 }
 0x20a   :  { %v1270_v52 = vpop.f32.mrf.mxu1 }
 0x20b   :  { %v1271_v60 = vadd.f32 %v2634_v51, %v1270_v52  ;;  %v1294_v41 = vpop.f32.mrf.mxu3 }
 0x20c   :  { %v1295_v55 = vadd.f32 %v2634_v51, %v1294_v41 }
 0x20d   :  { %1316 = vst [vmem:[%s2713_s7 + $0x8] sm:$0xff] %v1271_v60 }
 0x20e   :  { %1324 = vst [vmem:[%s2713_s7 + $0x48] sm:$0xff] %v1295_v55 }
 0x212   :  { %v1273_v61 = vpop.f32.mrf.mxu1 }
 0x213   :  { %v1274_v50 = vadd.f32 %v2634_v51, %v1273_v61 }
 0x215   :  { %1317 = vst [vmem:[%s2713_s7 + $0x10] sm:$0xff] %v1274_v50  ;;  %v1297_v34 = vpop.f32.mrf.mxu3 }
 0x216   :  { %v1298_v57 = vadd.f32 %v2634_v51, %v1297_v34 }
 0x218   :  { %1325 = vst [vmem:[%s2713_s7 + $0x50] sm:$0xff] %v1298_v57 }
 0x226   :  { %v1300_v58 = vpop.f32.mrf.mxu3 }
 0x227   :  { %v1301_v48 = vadd.f32 %v2634_v51, %v1300_v58 }
 0x229   :  { %1326 = vst [vmem:[%s2713_s7 + $0x58] sm:$0xff] %v1301_v48 }
 0x230   :  { %v1276_v53 = vpop.f32.mrf.mxu1 }
 0x231   :  { %v1277_v18 = vadd.f32 %v2634_v51, %v1276_v53 }
 0x233   :  { %1318 = vst [vmem:[%s2713_s7 + $0x18] sm:$0xff] %v1277_v18 }
 0x239   :  { %v1279_v27 = vpop.f32.mrf.mxu1 }
 0x23a   :  { %v1280_v15 = vadd.f32 %v2634_v51, %v1279_v27 }
 0x23c   :  { %v1303_v9 = vpop.f32.mrf.mxu3  ;;  %1319 = vst [vmem:[%s2713_s7 + $0x20] sm:$0xff] %v1280_v15 }
 0x23d   :  { %v1304_v40 = vadd.f32 %v2634_v51, %v1303_v9 }
 0x23f   :  { %1327 = vst [vmem:[%s2713_s7 + $0x60] sm:$0xff] %v1304_v40 }
 0x244   :  { %v1306_v2 = vpop.f32.mrf.mxu3 }
 0x245   :  { %v1307_v38 = vadd.f32 %v2634_v51, %v1306_v2 }
 0x246   :  { %v1282_v59 = vpop.f32.mrf.mxu1 }
 0x247   :  { %1328 = vst [vmem:[%s2713_s7 + $0x68] sm:$0xff] %v1307_v38  ;;  %v1283_v10 = vadd.f32 %v2634_v51, %v1282_v59 }
 0x249   :  { %1320 = vst [vmem:[%s2713_s7 + $0x28] sm:$0xff] %v1283_v10 }
 0x24c   :  { %v1309_v31 = vpop.f32.mrf.mxu3 }
 0x24d   :  { %v1310_v56 = vadd.f32 %v2634_v51, %v1309_v31 }
 0x24f   :  { %1329 = vst [vmem:[%s2713_s7 + $0x70] sm:$0xff] %v1310_v56 }
 0x250   :  { %v1285_v33 = vpop.f32.mrf.mxu1 }
 0x251   :  { %v1286_v24 = vadd.f32 %v2634_v51, %v1285_v33 }
 0x253   :  { %1321 = vst [vmem:[%s2713_s7 + $0x30] sm:$0xff] %v1286_v24 }
 0x262   :  { %v1312_v11 = vpop.f32.mrf.mxu3 }
 0x263   :  { %v1313_v4 = vadd.f32 %v2634_v51, %v1312_v11 }
 0x264   :  { %v1288_v6 = vpop.f32.mrf.mxu1 }
 0x265   :  { %1330 = vst [vmem:[%s2713_s7 + $0x78] sm:$0xff] %v1313_v4  ;;  %v1289_v7 = vadd.f32 %v2634_v51, %v1288_v6 }
 0x267   :  { %1322 = vst [vmem:[%s2713_s7 + $0x38] sm:$0xff] %v1289_v7 }

</bundles_post_ra>
